<compile_context>
chip_gen: v7x
topology: tpu7x:2x2x1
jax: 0.10.0
libtpu: 0.0.40
codegen_flags: <defaults>
</compile_context>

<pallas_src>
import functools

import jax
import jax.numpy as jnp
from jax import lax
from jax.experimental import pallas as pl
from jax.experimental.pallas import tpu as pltpu

F32 = jnp.float32
BF16 = jnp.bfloat16
EPS = 1e-12
LARGE_NUM = 1e9   # self-similarity mask in NT-Xent (SimCLR / MCN convention)
BIG = 1e9         # "infinity" for soft-DTW boundary cells
LANES = 128
SUBLANES = 8
VMEM_LIMIT = 32 * 1024 * 1024   # explicit budget, valid on v5e / v6e / v7x

_COMPILER_PARAMS = pltpu.CompilerParams(vmem_limit_bytes=VMEM_LIMIT)


def _round_up(x, m):
    return ((x + m - 1) // m) * m


# ----------------------------------------------------------------------------
# small in-kernel helpers (pure jnp/lax, traced inside the Pallas kernels)
# ----------------------------------------------------------------------------
def _l2_normalize(x):
    # F.normalize(p=2, dim=-1); all-zero rows stay zero
    norm = jnp.sqrt(jnp.sum(x * x, axis=-1, keepdims=True))
    return x / jnp.maximum(norm, EPS)


def _dot_t(a, b):
    # a @ b.T without an explicit in-kernel transpose (contract last dims)
    return lax.dot_general(a, b, (((1,), (1,)), ((), ())),
                           preferred_element_type=F32)


def _eye_like(n):
    row = lax.broadcasted_iota(jnp.int32, (n, n), 0)
    col = lax.broadcasted_iota(jnp.int32, (n, n), 1)
    return (row == col).astype(F32)


def _lse_rows(x):
    m = jnp.max(x, axis=1, keepdims=True)
    return m + jnp.log(jnp.sum(jnp.exp(x - m), axis=1, keepdims=True))


def _lse_cols(x):
    m = jnp.max(x, axis=0, keepdims=True)
    return m + jnp.log(jnp.sum(jnp.exp(x - m), axis=0, keepdims=True))


def _symmetric_infonce_from_logits(logits):
    bs = logits.shape[0]
    eye = _eye_like(bs)
    diag_sum = jnp.sum(logits * eye)
    loss_v = (jnp.sum(_lse_rows(logits)) - diag_sum) / bs
    loss_t = (jnp.sum(_lse_cols(logits)) - diag_sum) / bs
    return 0.5 * (loss_v + loss_t)


def _pack_lanes(values):
    # pack scalar losses into one lane-dense (1, 128) row (unmasked vst)
    lane = lax.broadcasted_iota(jnp.int32, (1, LANES), 1)
    out = jnp.zeros((1, LANES), F32)
    for i, v in enumerate(values):
        out = out + jnp.where(lane == i, v, 0.0)
    return out


# ----------------------------------------------------------------------------
# kernel 1: fused InfoNCE / NT-Xent losses (loss_1 .. loss_4)
# ----------------------------------------------------------------------------
def _fused_infonce_kernel(v_ref, t0_ref, agg_ref, o_ref, *, temperature, alpha):
    # normalise each embedding exactly once (shared across the four sub-losses)
    v = _l2_normalize(v_ref[...].astype(F32))        # (bs, d)
    t0 = _l2_normalize(t0_ref[...].astype(F32))      # (bs, d)
    agg = _l2_normalize(agg_ref[...].astype(F32))    # (bs, d)
    bs = v.shape[0]
    eye = _eye_like(bs)
    inv_t = 1.0 / temperature

    # fold 1/temperature into one (bs, d) operand; bf16 MXU operands, f32 acc
    vs = (v * inv_t).astype(BF16)
    t0s = (t0 * inv_t).astype(BF16)
    vb = v.astype(BF16)
    t0b = t0.astype(BF16)
    aggb = agg.astype(BF16)

    lab = _dot_t(vs, t0b)                         # v@t0.T / temp (loss_1 & loss_2)
    laa = _dot_t(vs, vb) - eye * LARGE_NUM        # self-sim masked
    lbb = _dot_t(t0s, t0b) - eye * LARGE_NUM      # self-sim masked (symmetric)
    lva = _dot_t(vs, aggb)                        # loss_3 logits
    lta = _dot_t(t0s, aggb)                       # loss_4 logits

    loss_1 = _symmetric_infonce_from_logits(lab)
    loss_3 = _symmetric_infonce_from_logits(lva)
    loss_4 = _symmetric_infonce_from_logits(lta)

    # NT-Xent.  Direction a: CE over rows of [lab | laa], label = diag(lab).
    # Direction b needs lba = lab.T and lbb; since lbb is symmetric we compute
    # it with column reductions of lab / lbb -> no transpose, no extra matmul.
    def _row_dir(pos, neg):
        m = jnp.maximum(jnp.max(pos, axis=1, keepdims=True),
                        jnp.max(neg, axis=1, keepdims=True))
        z = (jnp.sum(jnp.exp(pos - m), axis=1, keepdims=True)
             + jnp.sum(jnp.exp(neg - m), axis=1, keepdims=True))
        pos_d = jnp.sum(pos * eye, axis=1, keepdims=True)
        return jnp.sum(m + jnp.log(z) - pos_d) / bs

    def _col_dir(pos, neg):
        m = jnp.maximum(jnp.max(pos, axis=0, keepdims=True),
                        jnp.max(neg, axis=0, keepdims=True))
        z = (jnp.sum(jnp.exp(pos - m), axis=0, keepdims=True)
             + jnp.sum(jnp.exp(neg - m), axis=0, keepdims=True))
        pos_d = jnp.sum(pos * eye, axis=0, keepdims=True)
        return jnp.sum(m + jnp.log(z) - pos_d) / bs

    loss_2 = alpha * _row_dir(lab, laa) + (1.0 - alpha) * _col_dir(lab, lbb)

    o_ref[...] = _pack_lanes([loss_1, loss_2, loss_3, loss_4])


# ----------------------------------------------------------------------------
# kernel 2: soft-DTW contrastive loss
# ----------------------------------------------------------------------------
def _dtw_contrastive_kernel(vp_ref, tp_ref, tl_ref, sl_ref, o_ref, *,
                            bs, T, S, dtw_beta, dtw_scale_factor):
    # Padded block layout: each video contributes (1 zero boundary row + T frame
    # rows), each text (1 zero boundary row + S step rows); tails are zero-padded
    # so the DP matrix is (mult-of-8, mult-of-128).  The soft-DTW recursion for
    # ALL (video, text) pairs advances one anti-diagonal per iteration.
    rp = vp_ref.shape[0]                               # padded rows (mult of 8)
    cp = tp_ref.shape[0]                               # padded cols (mult of 128)
    vp = _l2_normalize(vp_ref[...].astype(F32))        # zero/pad rows stay zero
    tp = _l2_normalize(tp_ref[...].astype(F32))
    cost = 1.0 - _dot_t(vp.astype(BF16), tp.astype(BF16))       # (rp, cp) f32

    # wavefront bookkeeping from tiny per-axis index vectors (-1 marks padding);
    # replaces the old HBM-resident dshift/ushift/init/ksum helper matrices.
    tl = tl_ref[...]                                   # (rp, 1) int32 in-block t
    sl = sl_ref[...]                                   # (1, cp) int32 in-block s
    interior = jnp.logical_and(tl >= 1, sl >= 1)       # broadcast -> (rp, cp)
    ksum = jnp.where(interior, tl + sl, -1)            # int32 wavefront index
    start = jnp.logical_and(tl == 0, sl == 0)
    init = jnp.where(start, 0.0, BIG).astype(F32)      # DP boundary conditions

    inv_beta = 1.0 / dtw_beta

    def softmin3(a, b, c):
        m = jnp.minimum(jnp.minimum(a, b), c)
        z = (jnp.exp((m - a) * inv_beta) + jnp.exp((m - b) * inv_beta)
             + jnp.exp((m - c) * inv_beta))
        return m - dtw_beta * jnp.log(z)

    def body(k, R):
        # XLU rolls instead of dense shift matmuls; wrapped rows/cols only land
        # on boundary/padded cells, which always have ksum == -1 and are never
        # selected by the wavefront mask.
        up = pltpu.roll(R, 1, 0)        # R[r-1, c]
        left = pltpu.roll(R, 1, 1)      # R[r,   c-1]
        diag = pltpu.roll(up, 1, 1)     # R[r-1, c-1]
        cand = cost + softmin3(up, left, diag)
        return jnp.where(ksum == k, cand, R)            # advance one diagonal

    # TODO(synk): only ~bs^2*T*S cells are active overall; a banded carry would
    # cut EUP work by ~(T+S)x if this ever becomes the bottleneck.
    R = lax.fori_loop(2, T + S + 1, body, init, unroll=True)

    # logits[i, j] = -dtw_scale_factor * R[i*(T+1)+T, j*(S+1)+S]
    # (one-time selector matmuls built from iota; scale folded into selr)
    ir = lax.broadcasted_iota(jnp.int32, (bs, rp), 0)
    rr = lax.broadcasted_iota(jnp.int32, (bs, rp), 1)
    selr = (rr == ir * (T + 1) + T).astype(F32) * (-dtw_scale_factor)
    jc = lax.broadcasted_iota(jnp.int32, (bs, cp), 0)
    cc = lax.broadcasted_iota(jnp.int32, (bs, cp), 1)
    selc = (cc == jc * (S + 1) + S).astype(F32)
    logits = _dot_t(jnp.dot(selr, R, preferred_element_type=F32), selc)  # (bs,bs)

    loss = _symmetric_infonce_from_logits(logits)
    o_ref[...] = _pack_lanes([loss])


# ----------------------------------------------------------------------------
# wrappers (glue)
# ----------------------------------------------------------------------------
def _vmem_specs(n):
    return [pl.BlockSpec(memory_space=pltpu.MemorySpace.VMEM)] * n


def fused_infonce_losses(video_embd, text_embd, aggregate_text,
                         temperature, alpha_weight):
    kernel = functools.partial(_fused_infonce_kernel,
                               temperature=float(temperature),
                               alpha=float(alpha_weight))
    out = pl.pallas_call(
        kernel,
        out_shape=jax.ShapeDtypeStruct((1, LANES), F32),
        in_specs=_vmem_specs(3),
        out_specs=pl.BlockSpec(memory_space=pltpu.MemorySpace.VMEM),
        compiler_params=_COMPILER_PARAMS,
    )(video_embd, text_embd, aggregate_text)
    return out[0, 0], out[0, 1], out[0, 2], out[0, 3]


def dtw_contrastive_loss(embs_v, embs_t, dtw_beta, dtw_ratio, dtw_scale_factor,
                         pos_step=None):
    # TODO(synk): reference dtw() source unavailable; dtw_ratio, pos_indices and
    # cyclic_action semantics are unknown and unused here.
    # TODO(synk): for large bs, tile the (video, text) pair matrix over a
    # "parallel" grid (uses both v7x TensorCores, caps per-tile VMEM < ~24 MiB).
    bs, T, d = embs_v.shape
    _, S, _ = embs_t.shape
    Rn, Cn = bs * (T + 1), bs * (S + 1)
    rp, cp = _round_up(Rn, SUBLANES), _round_up(Cn, LANES)

    # per-sequence zero boundary row + zero tail padding to (8, 128)-aligned
    vp = jnp.concatenate([jnp.zeros((bs, 1, d), F32), embs_v.astype(F32)],
                         axis=1).reshape(Rn, d)
    tp = jnp.concatenate([jnp.zeros((bs, 1, d), F32), embs_t.astype(F32)],
                         axis=1).reshape(Cn, d)
    vp = jnp.pad(vp, ((0, rp - Rn), (0, 0)))
    tp = jnp.pad(tp, ((0, cp - Cn), (0, 0)))

    # tiny O(R)+O(C) per-axis index vectors (t/s position within each block,
    # -1 on padded rows/cols); the 2-D masks are rebuilt in-kernel by broadcast.
    rr = jnp.arange(rp)
    cc = jnp.arange(cp)
    tl = jnp.where(rr < Rn, rr % (T + 1), -1).astype(jnp.int32).reshape(rp, 1)
    sl = jnp.where(cc < Cn, cc % (S + 1), -1).astype(jnp.int32).reshape(1, cp)

    kernel = functools.partial(_dtw_contrastive_kernel, bs=bs, T=T, S=S,
                               dtw_beta=float(dtw_beta),
                               dtw_scale_factor=float(dtw_scale_factor))
    out = pl.pallas_call(
        kernel,
        out_shape=jax.ShapeDtypeStruct((1, LANES), F32),
        in_specs=_vmem_specs(4),
        out_specs=pl.BlockSpec(memory_space=pltpu.MemorySpace.VMEM),
        compiler_params=_COMPILER_PARAMS,
    )(vp, tp, tl, sl)
    return out[0, 0]


def abstract_loss_forward(video_embd, text_embds, video_embd_frame,
                          pos_step=None, logit_scale=None, *,
                          dtw_beta, dtw_ratio, dtw_scale_factor,
                          temperature=0.1, alpha_weight=0.5, reg_weight=0.1):
    # tiny candidate-mean kept as XLA glue (cheaper than DMAing the 3-D tensor)
    aggregate_text = jnp.mean(text_embds[1], axis=1)
    loss_1, loss_2, loss_3, loss_4 = fused_infonce_losses(
        video_embd, text_embds[0], aggregate_text, temperature, alpha_weight)
    loss_dtw = dtw_contrastive_loss(video_embd_frame, text_embds[1],
                                    dtw_beta, dtw_ratio, dtw_scale_factor,
                                    pos_step)
    return (loss_1 + loss_2 + loss_3 + loss_4 + reg_weight * loss_dtw) / 5.0


if __name__ == "__main__":
    key = jax.random.PRNGKey(0)
    bs, d, n_frames, n_cand = 2, 32, 8, 8
    k1, k2, k3, k4 = jax.random.split(key, 4)

    video_embd = jax.random.normal(k1, (bs, d), F32)                  # (bs, d)
    text_embd_0 = jax.random.normal(k2, (bs, d), F32)                 # (bs, d)
    text_embd_1 = jax.random.normal(k3, (bs, n_cand, d), F32)         # (bs, n_candidate, d)
    video_embd_frame = jax.random.normal(k4, (bs, n_frames, d), F32)  # (bs, n_frames, d)
    pos_step = jnp.tile(jnp.arange(n_frames, dtype=jnp.int32)[None, :], (bs, 1))

    fwd = jax.jit(functools.partial(
        abstract_loss_forward,
        dtw_beta=0.1, dtw_ratio=1.0, dtw_scale_factor=1.0,
        temperature=0.1, alpha_weight=0.5, reg_weight=0.1))

    loss = fwd(video_embd, [text_embd_0, text_embd_1], video_embd_frame, pos_step)
    jax.block_until_ready(loss)
    assert loss.shape == () and bool(jnp.isfinite(loss))
    print("KERNEL_OK")
</pallas_src>

<mosaic_0001>
module attributes {stable_mosaic.version = 11 : i64} {
  func.func @_fused_infonce_kernel(%arg0: memref<2x32xf32, #tpu.memory_space<vmem>>, %arg1: memref<2x32xf32, #tpu.memory_space<vmem>>, %arg2: memref<2x32xf32, #tpu.memory_space<vmem>>, %arg3: memref<1x128xf32, #tpu.memory_space<vmem>>) attributes {dimension_semantics = [], scalar_prefetch = 0 : i64, scratch_operands = 0 : i64, tpu.core_type = #tpu.core_type<tc>} {
    %c0 = arith.constant 0 : index
    %c0_0 = arith.constant 0 : index
    %0 = vector.load %arg0[%c0, %c0_0] : memref<2x32xf32, #tpu.memory_space<vmem>>, vector<2x32xf32>
    %1 = arith.mulf %0, %0 : vector<2x32xf32>
    %cst = arith.constant dense<0.000000e+00> : vector<2xf32>
    %2 = vector.multi_reduction <add>, %1, %cst [1] : vector<2x32xf32> to vector<2xf32>
    %3 = vector.shape_cast %2 : vector<2xf32> to vector<2x1xf32>
    %4 = math.sqrt %3 : vector<2x1xf32>
    %cst_1 = arith.constant 9.99999996E-13 : f32
    %5 = vector.broadcast %cst_1 : f32 to vector<2x1xf32>
    %6 = arith.maximumf %4, %5 : vector<2x1xf32>
    %7 = vector.broadcast %6 : vector<2x1xf32> to vector<2x32xf32>
    %8 = arith.divf %0, %7 : vector<2x32xf32>
    %c0_2 = arith.constant 0 : index
    %c0_3 = arith.constant 0 : index
    %9 = vector.load %arg1[%c0_2, %c0_3] : memref<2x32xf32, #tpu.memory_space<vmem>>, vector<2x32xf32>
    %10 = arith.mulf %9, %9 : vector<2x32xf32>
    %cst_4 = arith.constant dense<0.000000e+00> : vector<2xf32>
    %11 = vector.multi_reduction <add>, %10, %cst_4 [1] : vector<2x32xf32> to vector<2xf32>
    %12 = vector.shape_cast %11 : vector<2xf32> to vector<2x1xf32>
    %13 = math.sqrt %12 : vector<2x1xf32>
    %cst_5 = arith.constant 9.99999996E-13 : f32
    %14 = vector.broadcast %cst_5 : f32 to vector<2x1xf32>
    %15 = arith.maximumf %13, %14 : vector<2x1xf32>
    %16 = vector.broadcast %15 : vector<2x1xf32> to vector<2x32xf32>
    %17 = arith.divf %9, %16 : vector<2x32xf32>
    %c0_6 = arith.constant 0 : index
    %c0_7 = arith.constant 0 : index
    %18 = vector.load %arg2[%c0_6, %c0_7] : memref<2x32xf32, #tpu.memory_space<vmem>>, vector<2x32xf32>
    %19 = arith.mulf %18, %18 : vector<2x32xf32>
    %cst_8 = arith.constant dense<0.000000e+00> : vector<2xf32>
    %20 = vector.multi_reduction <add>, %19, %cst_8 [1] : vector<2x32xf32> to vector<2xf32>
    %21 = vector.shape_cast %20 : vector<2xf32> to vector<2x1xf32>
    %22 = math.sqrt %21 : vector<2x1xf32>
    %cst_9 = arith.constant 9.99999996E-13 : f32
    %23 = vector.broadcast %cst_9 : f32 to vector<2x1xf32>
    %24 = arith.maximumf %22, %23 : vector<2x1xf32>
    %25 = vector.broadcast %24 : vector<2x1xf32> to vector<2x32xf32>
    %26 = arith.divf %18, %25 : vector<2x32xf32>
    %27 = tpu.iota {dimensions = array<i32: 0>} : vector<2x2xi32>
    %28 = tpu.iota {dimensions = array<i32: 1>} : vector<2x2xi32>
    %29 = arith.cmpi eq, %27, %28 : vector<2x2xi32>
    %30 = arith.extui %29 : vector<2x2xi1> to vector<2x2xi32>
    %31 = arith.sitofp %30 : vector<2x2xi32> to vector<2x2xf32>
    %cst_10 = arith.constant 1.000000e+01 : f32
    %32 = vector.broadcast %cst_10 : f32 to vector<2x32xf32>
    %33 = arith.mulf %8, %32 : vector<2x32xf32>
    %34 = arith.truncf %33 : vector<2x32xf32> to vector<2x32xbf16>
    %cst_11 = arith.constant 1.000000e+01 : f32
    %35 = vector.broadcast %cst_11 : f32 to vector<2x32xf32>
    %36 = arith.mulf %17, %35 : vector<2x32xf32>
    %37 = arith.truncf %36 : vector<2x32xf32> to vector<2x32xbf16>
    %38 = arith.truncf %8 : vector<2x32xf32> to vector<2x32xbf16>
    %39 = arith.truncf %17 : vector<2x32xf32> to vector<2x32xbf16>
    %40 = arith.truncf %26 : vector<2x32xf32> to vector<2x32xbf16>
    %cst_12 = arith.constant dense<0.000000e+00> : vector<2x2xf32>
    %41 = tpu.matmul %34, %39, %cst_12 {dimension_numbers = #tpu.dot_dimension_numbers<[1], [1], [0], [0], [0, 0, 1, 0], [], []>} : vector<2x32xbf16>, vector<2x32xbf16>, vector<2x2xf32> -> vector<2x2xf32>
    %cst_13 = arith.constant dense<0.000000e+00> : vector<2x2xf32>
    %42 = tpu.matmul %34, %38, %cst_13 {dimension_numbers = #tpu.dot_dimension_numbers<[1], [1], [0], [0], [0, 0, 1, 0], [], []>} : vector<2x32xbf16>, vector<2x32xbf16>, vector<2x2xf32> -> vector<2x2xf32>
    %cst_14 = arith.constant 1.000000e+09 : f32
    %43 = vector.broadcast %cst_14 : f32 to vector<2x2xf32>
    %44 = arith.mulf %31, %43 : vector<2x2xf32>
    %45 = arith.subf %42, %44 : vector<2x2xf32>
    %cst_15 = arith.constant dense<0.000000e+00> : vector<2x2xf32>
    %46 = tpu.matmul %37, %39, %cst_15 {dimension_numbers = #tpu.dot_dimension_numbers<[1], [1], [0], [0], [0, 0, 1, 0], [], []>} : vector<2x32xbf16>, vector<2x32xbf16>, vector<2x2xf32> -> vector<2x2xf32>
    %cst_16 = arith.constant 1.000000e+09 : f32
    %47 = vector.broadcast %cst_16 : f32 to vector<2x2xf32>
    %48 = arith.mulf %31, %47 : vector<2x2xf32>
    %49 = arith.subf %46, %48 : vector<2x2xf32>
    %cst_17 = arith.constant dense<0.000000e+00> : vector<2x2xf32>
    %50 = tpu.matmul %34, %40, %cst_17 {dimension_numbers = #tpu.dot_dimension_numbers<[1], [1], [0], [0], [0, 0, 1, 0], [], []>} : vector<2x32xbf16>, vector<2x32xbf16>, vector<2x2xf32> -> vector<2x2xf32>
    %cst_18 = arith.constant dense<0.000000e+00> : vector<2x2xf32>
    %51 = tpu.matmul %37, %40, %cst_18 {dimension_numbers = #tpu.dot_dimension_numbers<[1], [1], [0], [0], [0, 0, 1, 0], [], []>} : vector<2x32xbf16>, vector<2x32xbf16>, vector<2x2xf32> -> vector<2x2xf32>
    %52 = tpu.iota {dimensions = array<i32: 0>} : vector<2x2xi32>
    %53 = tpu.iota {dimensions = array<i32: 1>} : vector<2x2xi32>
    %54 = arith.cmpi eq, %52, %53 : vector<2x2xi32>
    %55 = arith.extui %54 : vector<2x2xi1> to vector<2x2xi32>
    %56 = arith.sitofp %55 : vector<2x2xi32> to vector<2x2xf32>
    %57 = arith.mulf %41, %56 : vector<2x2xf32>
    %58 = vector.shape_cast %57 : vector<2x2xf32> to vector<1x2x2xf32>
    %cst_19 = arith.constant dense<0.000000e+00> : vector<1xf32>
    %59 = vector.multi_reduction <add>, %58, %cst_19 [1, 2] : vector<1x2x2xf32> to vector<1xf32>
    %60 = vector.shape_cast %59 : vector<1xf32> to vector<1x1x1xf32>
    %61 = vector.extract %60[0, 0, 0] : f32 from vector<1x1x1xf32>
    %cst_20 = arith.constant dense<0xFF800000> : vector<2xf32>
    %62 = vector.multi_reduction <maximumf>, %41, %cst_20 [1] : vector<2x2xf32> to vector<2xf32>
    %63 = vector.shape_cast %62 : vector<2xf32> to vector<2x1xf32>
    %64 = vector.broadcast %63 : vector<2x1xf32> to vector<2x2xf32>
    %65 = arith.subf %41, %64 : vector<2x2xf32>
    %66 = math.exp %65 : vector<2x2xf32>
    %cst_21 = arith.constant dense<0.000000e+00> : vector<2xf32>
    %67 = vector.multi_reduction <add>, %66, %cst_21 [1] : vector<2x2xf32> to vector<2xf32>
    %68 = vector.shape_cast %67 : vector<2xf32> to vector<2x1xf32>
    %69 = math.log %68 : vector<2x1xf32>
    %70 = arith.addf %63, %69 : vector<2x1xf32>
    %71 = vector.shape_cast %70 : vector<2x1xf32> to vector<1x2x1xf32>
    %cst_22 = arith.constant dense<0.000000e+00> : vector<1xf32>
    %72 = vector.multi_reduction <add>, %71, %cst_22 [1, 2] : vector<1x2x1xf32> to vector<1xf32>
    %73 = vector.shape_cast %72 : vector<1xf32> to vector<1x1x1xf32>
    %74 = vector.extract %73[0, 0, 0] : f32 from vector<1x1x1xf32>
    %75 = arith.subf %74, %61 : f32
    %cst_23 = arith.constant 2.000000e+00 : f32
    %76 = arith.divf %75, %cst_23 : f32
    %cst_24 = arith.constant dense<0xFF800000> : vector<2xf32>
    %77 = vector.multi_reduction <maximumf>, %41, %cst_24 [0] : vector<2x2xf32> to vector<2xf32>
    %78 = vector.shape_cast %77 : vector<2xf32> to vector<1x2xf32>
    %79 = vector.broadcast %78 : vector<1x2xf32> to vector<2x2xf32>
    %80 = arith.subf %41, %79 : vector<2x2xf32>
    %81 = math.exp %80 : vector<2x2xf32>
    %cst_25 = arith.constant dense<0.000000e+00> : vector<2xf32>
    %82 = vector.multi_reduction <add>, %81, %cst_25 [0] : vector<2x2xf32> to vector<2xf32>
    %83 = vector.shape_cast %82 : vector<2xf32> to vector<1x2xf32>
    %84 = math.log %83 : vector<1x2xf32>
    %85 = arith.addf %78, %84 : vector<1x2xf32>
    %86 = vector.shape_cast %85 : vector<1x2xf32> to vector<1x1x2xf32>
    %cst_26 = arith.constant dense<0.000000e+00> : vector<1xf32>
    %87 = vector.multi_reduction <add>, %86, %cst_26 [1, 2] : vector<1x1x2xf32> to vector<1xf32>
    %88 = vector.shape_cast %87 : vector<1xf32> to vector<1x1x1xf32>
    %89 = vector.extract %88[0, 0, 0] : f32 from vector<1x1x1xf32>
    %90 = arith.subf %89, %61 : f32
    %cst_27 = arith.constant 2.000000e+00 : f32
    %91 = arith.divf %90, %cst_27 : f32
    %92 = arith.addf %76, %91 : f32
    %cst_28 = arith.constant 5.000000e-01 : f32
    %93 = arith.mulf %cst_28, %92 : f32
    %94 = tpu.iota {dimensions = array<i32: 0>} : vector<2x2xi32>
    %95 = tpu.iota {dimensions = array<i32: 1>} : vector<2x2xi32>
    %96 = arith.cmpi eq, %94, %95 : vector<2x2xi32>
    %97 = arith.extui %96 : vector<2x2xi1> to vector<2x2xi32>
    %98 = arith.sitofp %97 : vector<2x2xi32> to vector<2x2xf32>
    %99 = arith.mulf %50, %98 : vector<2x2xf32>
    %100 = vector.shape_cast %99 : vector<2x2xf32> to vector<1x2x2xf32>
    %cst_29 = arith.constant dense<0.000000e+00> : vector<1xf32>
    %101 = vector.multi_reduction <add>, %100, %cst_29 [1, 2] : vector<1x2x2xf32> to vector<1xf32>
    %102 = vector.shape_cast %101 : vector<1xf32> to vector<1x1x1xf32>
    %103 = vector.extract %102[0, 0, 0] : f32 from vector<1x1x1xf32>
    %cst_30 = arith.constant dense<0xFF800000> : vector<2xf32>
    %104 = vector.multi_reduction <maximumf>, %50, %cst_30 [1] : vector<2x2xf32> to vector<2xf32>
    %105 = vector.shape_cast %104 : vector<2xf32> to vector<2x1xf32>
    %106 = vector.broadcast %105 : vector<2x1xf32> to vector<2x2xf32>
    %107 = arith.subf %50, %106 : vector<2x2xf32>
    %108 = math.exp %107 : vector<2x2xf32>
    %cst_31 = arith.constant dense<0.000000e+00> : vector<2xf32>
    %109 = vector.multi_reduction <add>, %108, %cst_31 [1] : vector<2x2xf32> to vector<2xf32>
    %110 = vector.shape_cast %109 : vector<2xf32> to vector<2x1xf32>
    %111 = math.log %110 : vector<2x1xf32>
    %112 = arith.addf %105, %111 : vector<2x1xf32>
    %113 = vector.shape_cast %112 : vector<2x1xf32> to vector<1x2x1xf32>
    %cst_32 = arith.constant dense<0.000000e+00> : vector<1xf32>
    %114 = vector.multi_reduction <add>, %113, %cst_32 [1, 2] : vector<1x2x1xf32> to vector<1xf32>
    %115 = vector.shape_cast %114 : vector<1xf32> to vector<1x1x1xf32>
    %116 = vector.extract %115[0, 0, 0] : f32 from vector<1x1x1xf32>
    %117 = arith.subf %116, %103 : f32
    %cst_33 = arith.constant 2.000000e+00 : f32
    %118 = arith.divf %117, %cst_33 : f32
    %cst_34 = arith.constant dense<0xFF800000> : vector<2xf32>
    %119 = vector.multi_reduction <maximumf>, %50, %cst_34 [0] : vector<2x2xf32> to vector<2xf32>
    %120 = vector.shape_cast %119 : vector<2xf32> to vector<1x2xf32>
    %121 = vector.broadcast %120 : vector<1x2xf32> to vector<2x2xf32>
    %122 = arith.subf %50, %121 : vector<2x2xf32>
    %123 = math.exp %122 : vector<2x2xf32>
    %cst_35 = arith.constant dense<0.000000e+00> : vector<2xf32>
    %124 = vector.multi_reduction <add>, %123, %cst_35 [0] : vector<2x2xf32> to vector<2xf32>
    %125 = vector.shape_cast %124 : vector<2xf32> to vector<1x2xf32>
    %126 = math.log %125 : vector<1x2xf32>
    %127 = arith.addf %120, %126 : vector<1x2xf32>
    %128 = vector.shape_cast %127 : vector<1x2xf32> to vector<1x1x2xf32>
    %cst_36 = arith.constant dense<0.000000e+00> : vector<1xf32>
    %129 = vector.multi_reduction <add>, %128, %cst_36 [1, 2] : vector<1x1x2xf32> to vector<1xf32>
    %130 = vector.shape_cast %129 : vector<1xf32> to vector<1x1x1xf32>
    %131 = vector.extract %130[0, 0, 0] : f32 from vector<1x1x1xf32>
    %132 = arith.subf %131, %103 : f32
    %cst_37 = arith.constant 2.000000e+00 : f32
    %133 = arith.divf %132, %cst_37 : f32
    %134 = arith.addf %118, %133 : f32
    %cst_38 = arith.constant 5.000000e-01 : f32
    %135 = arith.mulf %cst_38, %134 : f32
    %136 = tpu.iota {dimensions = array<i32: 0>} : vector<2x2xi32>
    %137 = tpu.iota {dimensions = array<i32: 1>} : vector<2x2xi32>
    %138 = arith.cmpi eq, %136, %137 : vector<2x2xi32>
    %139 = arith.extui %138 : vector<2x2xi1> to vector<2x2xi32>
    %140 = arith.sitofp %139 : vector<2x2xi32> to vector<2x2xf32>
    %141 = arith.mulf %51, %140 : vector<2x2xf32>
    %142 = vector.shape_cast %141 : vector<2x2xf32> to vector<1x2x2xf32>
    %cst_39 = arith.constant dense<0.000000e+00> : vector<1xf32>
    %143 = vector.multi_reduction <add>, %142, %cst_39 [1, 2] : vector<1x2x2xf32> to vector<1xf32>
    %144 = vector.shape_cast %143 : vector<1xf32> to vector<1x1x1xf32>
    %145 = vector.extract %144[0, 0, 0] : f32 from vector<1x1x1xf32>
    %cst_40 = arith.constant dense<0xFF800000> : vector<2xf32>
    %146 = vector.multi_reduction <maximumf>, %51, %cst_40 [1] : vector<2x2xf32> to vector<2xf32>
    %147 = vector.shape_cast %146 : vector<2xf32> to vector<2x1xf32>
    %148 = vector.broadcast %147 : vector<2x1xf32> to vector<2x2xf32>
    %149 = arith.subf %51, %148 : vector<2x2xf32>
    %150 = math.exp %149 : vector<2x2xf32>
    %cst_41 = arith.constant dense<0.000000e+00> : vector<2xf32>
    %151 = vector.multi_reduction <add>, %150, %cst_41 [1] : vector<2x2xf32> to vector<2xf32>
    %152 = vector.shape_cast %151 : vector<2xf32> to vector<2x1xf32>
    %153 = math.log %152 : vector<2x1xf32>
    %154 = arith.addf %147, %153 : vector<2x1xf32>
    %155 = vector.shape_cast %154 : vector<2x1xf32> to vector<1x2x1xf32>
    %cst_42 = arith.constant dense<0.000000e+00> : vector<1xf32>
    %156 = vector.multi_reduction <add>, %155, %cst_42 [1, 2] : vector<1x2x1xf32> to vector<1xf32>
    %157 = vector.shape_cast %156 : vector<1xf32> to vector<1x1x1xf32>
    %158 = vector.extract %157[0, 0, 0] : f32 from vector<1x1x1xf32>
    %159 = arith.subf %158, %145 : f32
    %cst_43 = arith.constant 2.000000e+00 : f32
    %160 = arith.divf %159, %cst_43 : f32
    %cst_44 = arith.constant dense<0xFF800000> : vector<2xf32>
    %161 = vector.multi_reduction <maximumf>, %51, %cst_44 [0] : vector<2x2xf32> to vector<2xf32>
    %162 = vector.shape_cast %161 : vector<2xf32> to vector<1x2xf32>
    %163 = vector.broadcast %162 : vector<1x2xf32> to vector<2x2xf32>
    %164 = arith.subf %51, %163 : vector<2x2xf32>
    %165 = math.exp %164 : vector<2x2xf32>
    %cst_45 = arith.constant dense<0.000000e+00> : vector<2xf32>
    %166 = vector.multi_reduction <add>, %165, %cst_45 [0] : vector<2x2xf32> to vector<2xf32>
    %167 = vector.shape_cast %166 : vector<2xf32> to vector<1x2xf32>
    %168 = math.log %167 : vector<1x2xf32>
    %169 = arith.addf %162, %168 : vector<1x2xf32>
    %170 = vector.shape_cast %169 : vector<1x2xf32> to vector<1x1x2xf32>
    %cst_46 = arith.constant dense<0.000000e+00> : vector<1xf32>
    %171 = vector.multi_reduction <add>, %170, %cst_46 [1, 2] : vector<1x1x2xf32> to vector<1xf32>
    %172 = vector.shape_cast %171 : vector<1xf32> to vector<1x1x1xf32>
    %173 = vector.extract %172[0, 0, 0] : f32 from vector<1x1x1xf32>
    %174 = arith.subf %173, %145 : f32
    %cst_47 = arith.constant 2.000000e+00 : f32
    %175 = arith.divf %174, %cst_47 : f32
    %176 = arith.addf %160, %175 : f32
    %cst_48 = arith.constant 5.000000e-01 : f32
    %177 = arith.mulf %cst_48, %176 : f32
    %cst_49 = arith.constant dense<0xFF800000> : vector<2xf32>
    %178 = vector.multi_reduction <maximumf>, %41, %cst_49 [1] : vector<2x2xf32> to vector<2xf32>
    %179 = vector.shape_cast %178 : vector<2xf32> to vector<2x1xf32>
    %cst_50 = arith.constant dense<0xFF800000> : vector<2xf32>
    %180 = vector.multi_reduction <maximumf>, %45, %cst_50 [1] : vector<2x2xf32> to vector<2xf32>
    %181 = vector.shape_cast %180 : vector<2xf32> to vector<2x1xf32>
    %182 = arith.maximumf %179, %181 : vector<2x1xf32>
    %183 = vector.broadcast %182 : vector<2x1xf32> to vector<2x2xf32>
    %184 = arith.subf %41, %183 : vector<2x2xf32>
    %185 = math.exp %184 : vector<2x2xf32>
    %cst_51 = arith.constant dense<0.000000e+00> : vector<2xf32>
    %186 = vector.multi_reduction <add>, %185, %cst_51 [1] : vector<2x2xf32> to vector<2xf32>
    %187 = vector.shape_cast %186 : vector<2xf32> to vector<2x1xf32>
    %188 = vector.broadcast %182 : vector<2x1xf32> to vector<2x2xf32>
    %189 = arith.subf %45, %188 : vector<2x2xf32>
    %190 = math.exp %189 : vector<2x2xf32>
    %cst_52 = arith.constant dense<0.000000e+00> : vector<2xf32>
    %191 = vector.multi_reduction <add>, %190, %cst_52 [1] : vector<2x2xf32> to vector<2xf32>
    %192 = vector.shape_cast %191 : vector<2xf32> to vector<2x1xf32>
    %193 = arith.addf %187, %192 : vector<2x1xf32>
    %194 = arith.mulf %41, %31 : vector<2x2xf32>
    %cst_53 = arith.constant dense<0.000000e+00> : vector<2xf32>
    %195 = vector.multi_reduction <add>, %194, %cst_53 [1] : vector<2x2xf32> to vector<2xf32>
    %196 = vector.shape_cast %195 : vector<2xf32> to vector<2x1xf32>
    %197 = math.log %193 : vector<2x1xf32>
    %198 = arith.addf %182, %197 : vector<2x1xf32>
    %199 = arith.subf %198, %196 : vector<2x1xf32>
    %200 = vector.shape_cast %199 : vector<2x1xf32> to vector<1x2x1xf32>
    %cst_54 = arith.constant dense<0.000000e+00> : vector<1xf32>
    %201 = vector.multi_reduction <add>, %200, %cst_54 [1, 2] : vector<1x2x1xf32> to vector<1xf32>
    %202 = vector.shape_cast %201 : vector<1xf32> to vector<1x1x1xf32>
    %203 = vector.extract %202[0, 0, 0] : f32 from vector<1x1x1xf32>
    %cst_55 = arith.constant 2.000000e+00 : f32
    %204 = arith.divf %203, %cst_55 : f32
    %cst_56 = arith.constant 5.000000e-01 : f32
    %205 = arith.mulf %cst_56, %204 : f32
    %cst_57 = arith.constant dense<0xFF800000> : vector<2xf32>
    %206 = vector.multi_reduction <maximumf>, %41, %cst_57 [0] : vector<2x2xf32> to vector<2xf32>
    %207 = vector.shape_cast %206 : vector<2xf32> to vector<1x2xf32>
    %cst_58 = arith.constant dense<0xFF800000> : vector<2xf32>
    %208 = vector.multi_reduction <maximumf>, %49, %cst_58 [0] : vector<2x2xf32> to vector<2xf32>
    %209 = vector.shape_cast %208 : vector<2xf32> to vector<1x2xf32>
    %210 = arith.maximumf %207, %209 : vector<1x2xf32>
    %211 = vector.broadcast %210 : vector<1x2xf32> to vector<2x2xf32>
    %212 = arith.subf %41, %211 : vector<2x2xf32>
    %213 = math.exp %212 : vector<2x2xf32>
    %cst_59 = arith.constant dense<0.000000e+00> : vector<2xf32>
    %214 = vector.multi_reduction <add>, %213, %cst_59 [0] : vector<2x2xf32> to vector<2xf32>
    %215 = vector.shape_cast %214 : vector<2xf32> to vector<1x2xf32>
    %216 = vector.broadcast %210 : vector<1x2xf32> to vector<2x2xf32>
    %217 = arith.subf %49, %216 : vector<2x2xf32>
    %218 = math.exp %217 : vector<2x2xf32>
    %cst_60 = arith.constant dense<0.000000e+00> : vector<2xf32>
    %219 = vector.multi_reduction <add>, %218, %cst_60 [0] : vector<2x2xf32> to vector<2xf32>
    %220 = vector.shape_cast %219 : vector<2xf32> to vector<1x2xf32>
    %221 = arith.addf %215, %220 : vector<1x2xf32>
    %222 = arith.mulf %41, %31 : vector<2x2xf32>
    %cst_61 = arith.constant dense<0.000000e+00> : vector<2xf32>
    %223 = vector.multi_reduction <add>, %222, %cst_61 [0] : vector<2x2xf32> to vector<2xf32>
    %224 = vector.shape_cast %223 : vector<2xf32> to vector<1x2xf32>
    %225 = math.log %221 : vector<1x2xf32>
    %226 = arith.addf %210, %225 : vector<1x2xf32>
    %227 = arith.subf %226, %224 : vector<1x2xf32>
    %228 = vector.shape_cast %227 : vector<1x2xf32> to vector<1x1x2xf32>
    %cst_62 = arith.constant dense<0.000000e+00> : vector<1xf32>
    %229 = vector.multi_reduction <add>, %228, %cst_62 [1, 2] : vector<1x1x2xf32> to vector<1xf32>
    %230 = vector.shape_cast %229 : vector<1xf32> to vector<1x1x1xf32>
    %231 = vector.extract %230[0, 0, 0] : f32 from vector<1x1x1xf32>
    %cst_63 = arith.constant 2.000000e+00 : f32
    %232 = arith.divf %231, %cst_63 : f32
    %cst_64 = arith.constant 5.000000e-01 : f32
    %233 = arith.mulf %cst_64, %232 : f32
    %234 = arith.addf %205, %233 : f32
    %235 = tpu.iota {dimensions = array<i32: 1>} : vector<1x128xi32>
    %cst_65 = arith.constant 0.000000e+00 : f32
    %236 = vector.broadcast %cst_65 : f32 to vector<1x128xf32>
    %c0_i32 = arith.constant 0 : i32
    %237 = vector.broadcast %c0_i32 : i32 to vector<1x128xi32>
    %238 = arith.cmpi eq, %235, %237 : vector<1x128xi32>
    %cst_66 = arith.constant 0.000000e+00 : f32
    %239 = vector.broadcast %93 : f32 to vector<1x128xf32>
    %240 = vector.broadcast %cst_66 : f32 to vector<1x128xf32>
    %241 = arith.select %238, %239, %240 : vector<1x128xi1>, vector<1x128xf32>
    %242 = arith.addf %236, %241 : vector<1x128xf32>
    %c1_i32 = arith.constant 1 : i32
    %243 = vector.broadcast %c1_i32 : i32 to vector<1x128xi32>
    %244 = arith.cmpi eq, %235, %243 : vector<1x128xi32>
    %cst_67 = arith.constant 0.000000e+00 : f32
    %245 = vector.broadcast %234 : f32 to vector<1x128xf32>
    %246 = vector.broadcast %cst_67 : f32 to vector<1x128xf32>
    %247 = arith.select %244, %245, %246 : vector<1x128xi1>, vector<1x128xf32>
    %248 = arith.addf %242, %247 : vector<1x128xf32>
    %c2_i32 = arith.constant 2 : i32
    %249 = vector.broadcast %c2_i32 : i32 to vector<1x128xi32>
    %250 = arith.cmpi eq, %235, %249 : vector<1x128xi32>
    %cst_68 = arith.constant 0.000000e+00 : f32
    %251 = vector.broadcast %135 : f32 to vector<1x128xf32>
    %252 = vector.broadcast %cst_68 : f32 to vector<1x128xf32>
    %253 = arith.select %250, %251, %252 : vector<1x128xi1>, vector<1x128xf32>
    %254 = arith.addf %248, %253 : vector<1x128xf32>
    %c3_i32 = arith.constant 3 : i32
    %255 = vector.broadcast %c3_i32 : i32 to vector<1x128xi32>
    %256 = arith.cmpi eq, %235, %255 : vector<1x128xi32>
    %cst_69 = arith.constant 0.000000e+00 : f32
    %257 = vector.broadcast %177 : f32 to vector<1x128xf32>
    %258 = vector.broadcast %cst_69 : f32 to vector<1x128xf32>
    %259 = arith.select %256, %257, %258 : vector<1x128xi1>, vector<1x128xf32>
    %260 = arith.addf %254, %259 : vector<1x128xf32>
    %c0_70 = arith.constant 0 : index
    %c0_71 = arith.constant 0 : index
    %261 = vector.load %arg3[%c0_70, %c0_71] : memref<1x128xf32, #tpu.memory_space<vmem>>, vector<1x128xf32>
    tpu.vector_store %arg3[%c0_70, %c0_71], %260 {strides = array<i32>} : memref<1x128xf32, #tpu.memory_space<vmem>>, vector<1x128xf32>,
    return
  }
}

module attributes {stable_mosaic.version = 11 : i64} {
  func.func @_dtw_contrastive_kernel(%arg0: memref<24x32xf32, #tpu.memory_space<vmem>>, %arg1: memref<128x32xf32, #tpu.memory_space<vmem>>, %arg2: memref<24x1xi32, #tpu.memory_space<vmem>>, %arg3: memref<1x128xi32, #tpu.memory_space<vmem>>, %arg4: memref<1x128xf32, #tpu.memory_space<vmem>>) attributes {dimension_semantics = [], scalar_prefetch = 0 : i64, scratch_operands = 0 : i64, tpu.core_type = #tpu.core_type<tc>} {
    %c0 = arith.constant 0 : index
    %c0_0 = arith.constant 0 : index
    %0 = vector.load %arg0[%c0, %c0_0] : memref<24x32xf32, #tpu.memory_space<vmem>>, vector<24x32xf32>
    %1 = arith.mulf %0, %0 : vector<24x32xf32>
    %cst = arith.constant dense<0.000000e+00> : vector<24xf32>
    %2 = vector.multi_reduction <add>, %1, %cst [1] : vector<24x32xf32> to vector<24xf32>
    %3 = vector.shape_cast %2 : vector<24xf32> to vector<24x1xf32>
    %4 = math.sqrt %3 : vector<24x1xf32>
    %cst_1 = arith.constant 9.99999996E-13 : f32
    %5 = vector.broadcast %cst_1 : f32 to vector<24x1xf32>
    %6 = arith.maximumf %4, %5 : vector<24x1xf32>
    %7 = vector.broadcast %6 : vector<24x1xf32> to vector<24x32xf32>
    %8 = arith.divf %0, %7 : vector<24x32xf32>
    %c0_2 = arith.constant 0 : index
    %c0_3 = arith.constant 0 : index
    %9 = vector.load %arg1[%c0_2, %c0_3] : memref<128x32xf32, #tpu.memory_space<vmem>>, vector<128x32xf32>
    %10 = arith.mulf %9, %9 : vector<128x32xf32>
    %cst_4 = arith.constant dense<0.000000e+00> : vector<128xf32>
    %11 = vector.multi_reduction <add>, %10, %cst_4 [1] : vector<128x32xf32> to vector<128xf32>
    %12 = vector.shape_cast %11 : vector<128xf32> to vector<128x1xf32>
    %13 = math.sqrt %12 : vector<128x1xf32>
    %cst_5 = arith.constant 9.99999996E-13 : f32
    %14 = vector.broadcast %cst_5 : f32 to vector<128x1xf32>
    %15 = arith.maximumf %13, %14 : vector<128x1xf32>
    %16 = vector.broadcast %15 : vector<128x1xf32> to vector<128x32xf32>
    %17 = arith.divf %9, %16 : vector<128x32xf32>
    %18 = arith.truncf %8 : vector<24x32xf32> to vector<24x32xbf16>
    %19 = arith.truncf %17 : vector<128x32xf32> to vector<128x32xbf16>
    %cst_6 = arith.constant dense<0.000000e+00> : vector<24x128xf32>
    %20 = tpu.matmul %18, %19, %cst_6 {dimension_numbers = #tpu.dot_dimension_numbers<[1], [1], [0], [0], [0, 0, 1, 0], [], []>} : vector<24x32xbf16>, vector<128x32xbf16>, vector<24x128xf32> -> vector<24x128xf32>
    %cst_7 = arith.constant 1.000000e+00 : f32
    %21 = vector.broadcast %cst_7 : f32 to vector<24x128xf32>
    %22 = arith.subf %21, %20 : vector<24x128xf32>
    %c0_8 = arith.constant 0 : index
    %c0_9 = arith.constant 0 : index
    %23 = vector.load %arg2[%c0_8, %c0_9] : memref<24x1xi32, #tpu.memory_space<vmem>>, vector<24x1xi32>
    %c0_10 = arith.constant 0 : index
    %c0_11 = arith.constant 0 : index
    %24 = vector.load %arg3[%c0_10, %c0_11] : memref<1x128xi32, #tpu.memory_space<vmem>>, vector<1x128xi32>
    %c1_i32 = arith.constant 1 : i32
    %25 = vector.broadcast %c1_i32 : i32 to vector<24x1xi32>
    %26 = arith.cmpi sge, %23, %25 : vector<24x1xi32>
    %c1_i32_12 = arith.constant 1 : i32
    %27 = vector.broadcast %c1_i32_12 : i32 to vector<1x128xi32>
    %28 = arith.cmpi sge, %24, %27 : vector<1x128xi32>
    %29 = vector.broadcast %26 : vector<24x1xi1> to vector<24x128xi1>
    %30 = vector.broadcast %28 : vector<1x128xi1> to vector<24x128xi1>
    %31 = arith.andi %29, %30 : vector<24x128xi1>
    %32 = vector.broadcast %23 : vector<24x1xi32> to vector<24x128xi32>
    %33 = vector.broadcast %24 : vector<1x128xi32> to vector<24x128xi32>
    %34 = arith.addi %32, %33 : vector<24x128xi32>
    %c-1_i32 = arith.constant -1 : i32
    %35 = vector.broadcast %c-1_i32 : i32 to vector<24x128xi32>
    %36 = arith.select %31, %34, %35 : vector<24x128xi1>, vector<24x128xi32>
    %c0_i32 = arith.constant 0 : i32
    %37 = vector.broadcast %c0_i32 : i32 to vector<24x1xi32>
    %38 = arith.cmpi eq, %23, %37 : vector<24x1xi32>
    %c0_i32_13 = arith.constant 0 : i32
    %39 = vector.broadcast %c0_i32_13 : i32 to vector<1x128xi32>
    %40 = arith.cmpi eq, %24, %39 : vector<1x128xi32>
    %41 = vector.broadcast %38 : vector<24x1xi1> to vector<24x128xi1>
    %42 = vector.broadcast %40 : vector<1x128xi1> to vector<24x128xi1>
    %43 = arith.andi %41, %42 : vector<24x128xi1>
    %cst_14 = arith.constant 0.000000e+00 : f32
    %cst_15 = arith.constant 1.000000e+09 : f32
    %44 = vector.broadcast %cst_14 : f32 to vector<24x128xf32>
    %45 = vector.broadcast %cst_15 : f32 to vector<24x128xf32>
    %46 = arith.select %43, %44, %45 : vector<24x128xi1>, vector<24x128xf32>
    %c2_i32 = arith.constant 2 : i32
    %c1_i32_16 = arith.constant 1 : i32
    %47 = tpu.dynamic_rotate %46 by %c1_i32_16 dim 0 : vector<24x128xf32>, i32 -> vector<24x128xf32>
    %c1_i32_17 = arith.constant 1 : i32
    %48 = tpu.dynamic_rotate %46 by %c1_i32_17 dim 1 : vector<24x128xf32>, i32 -> vector<24x128xf32>
    %c1_i32_18 = arith.constant 1 : i32
    %49 = tpu.dynamic_rotate %47 by %c1_i32_18 dim 1 : vector<24x128xf32>, i32 -> vector<24x128xf32>
    %50 = arith.minimumf %47, %48 : vector<24x128xf32>
    %51 = arith.minimumf %50, %49 : vector<24x128xf32>
    %52 = arith.subf %51, %47 : vector<24x128xf32>
    %cst_19 = arith.constant 1.000000e+01 : f32
    %53 = vector.broadcast %cst_19 : f32 to vector<24x128xf32>
    %54 = arith.mulf %52, %53 : vector<24x128xf32>
    %55 = math.exp %54 : vector<24x128xf32>
    %56 = arith.subf %51, %48 : vector<24x128xf32>
    %cst_20 = arith.constant 1.000000e+01 : f32
    %57 = vector.broadcast %cst_20 : f32 to vector<24x128xf32>
    %58 = arith.mulf %56, %57 : vector<24x128xf32>
    %59 = math.exp %58 : vector<24x128xf32>
    %60 = arith.addf %55, %59 : vector<24x128xf32>
    %61 = arith.subf %51, %49 : vector<24x128xf32>
    %cst_21 = arith.constant 1.000000e+01 : f32
    %62 = vector.broadcast %cst_21 : f32 to vector<24x128xf32>
    %63 = arith.mulf %61, %62 : vector<24x128xf32>
    %64 = math.exp %63 : vector<24x128xf32>
    %65 = arith.addf %60, %64 : vector<24x128xf32>
    %66 = math.log %65 : vector<24x128xf32>
    %cst_22 = arith.constant 1.000000e-01 : f32
    %67 = vector.broadcast %cst_22 : f32 to vector<24x128xf32>
    %68 = arith.mulf %67, %66 : vector<24x128xf32>
    %69 = arith.subf %51, %68 : vector<24x128xf32>
    %70 = arith.addf %22, %69 : vector<24x128xf32>
    %71 = vector.broadcast %c2_i32 : i32 to vector<24x128xi32>
    %72 = arith.cmpi eq, %36, %71 : vector<24x128xi32>
    %73 = arith.select %72, %70, %46 : vector<24x128xi1>, vector<24x128xf32>
    %c3_i32 = arith.constant 3 : i32
    %c1_i32_23 = arith.constant 1 : i32
    %74 = tpu.dynamic_rotate %73 by %c1_i32_23 dim 0 : vector<24x128xf32>, i32 -> vector<24x128xf32>
    %c1_i32_24 = arith.constant 1 : i32
    %75 = tpu.dynamic_rotate %73 by %c1_i32_24 dim 1 : vector<24x128xf32>, i32 -> vector<24x128xf32>
    %c1_i32_25 = arith.constant 1 : i32
    %76 = tpu.dynamic_rotate %74 by %c1_i32_25 dim 1 : vector<24x128xf32>, i32 -> vector<24x128xf32>
    %77 = arith.minimumf %74, %75 : vector<24x128xf32>
    %78 = arith.minimumf %77, %76 : vector<24x128xf32>
    %79 = arith.subf %78, %74 : vector<24x128xf32>
    %cst_26 = arith.constant 1.000000e+01 : f32
    %80 = vector.broadcast %cst_26 : f32 to vector<24x128xf32>
    %81 = arith.mulf %79, %80 : vector<24x128xf32>
    %82 = math.exp %81 : vector<24x128xf32>
    %83 = arith.subf %78, %75 : vector<24x128xf32>
    %cst_27 = arith.constant 1.000000e+01 : f32
    %84 = vector.broadcast %cst_27 : f32 to vector<24x128xf32>
    %85 = arith.mulf %83, %84 : vector<24x128xf32>
    %86 = math.exp %85 : vector<24x128xf32>
    %87 = arith.addf %82, %86 : vector<24x128xf32>
    %88 = arith.subf %78, %76 : vector<24x128xf32>
    %cst_28 = arith.constant 1.000000e+01 : f32
    %89 = vector.broadcast %cst_28 : f32 to vector<24x128xf32>
    %90 = arith.mulf %88, %89 : vector<24x128xf32>
    %91 = math.exp %90 : vector<24x128xf32>
    %92 = arith.addf %87, %91 : vector<24x128xf32>
    %93 = math.log %92 : vector<24x128xf32>
    %cst_29 = arith.constant 1.000000e-01 : f32
    %94 = vector.broadcast %cst_29 : f32 to vector<24x128xf32>
    %95 = arith.mulf %94, %93 : vector<24x128xf32>
    %96 = arith.subf %78, %95 : vector<24x128xf32>
    %97 = arith.addf %22, %96 : vector<24x128xf32>
    %98 = vector.broadcast %c3_i32 : i32 to vector<24x128xi32>
    %99 = arith.cmpi eq, %36, %98 : vector<24x128xi32>
    %100 = arith.select %99, %97, %73 : vector<24x128xi1>, vector<24x128xf32>
    %c4_i32 = arith.constant 4 : i32
    %c1_i32_30 = arith.constant 1 : i32
    %101 = tpu.dynamic_rotate %100 by %c1_i32_30 dim 0 : vector<24x128xf32>, i32 -> vector<24x128xf32>
    %c1_i32_31 = arith.constant 1 : i32
    %102 = tpu.dynamic_rotate %100 by %c1_i32_31 dim 1 : vector<24x128xf32>, i32 -> vector<24x128xf32>
    %c1_i32_32 = arith.constant 1 : i32
    %103 = tpu.dynamic_rotate %101 by %c1_i32_32 dim 1 : vector<24x128xf32>, i32 -> vector<24x128xf32>
    %104 = arith.minimumf %101, %102 : vector<24x128xf32>
    %105 = arith.minimumf %104, %103 : vector<24x128xf32>
    %106 = arith.subf %105, %101 : vector<24x128xf32>
    %cst_33 = arith.constant 1.000000e+01 : f32
    %107 = vector.broadcast %cst_33 : f32 to vector<24x128xf32>
    %108 = arith.mulf %106, %107 : vector<24x128xf32>
    %109 = math.exp %108 : vector<24x128xf32>
    %110 = arith.subf %105, %102 : vector<24x128xf32>
    %cst_34 = arith.constant 1.000000e+01 : f32
    %111 = vector.broadcast %cst_34 : f32 to vector<24x128xf32>
    %112 = arith.mulf %110, %111 : vector<24x128xf32>
    %113 = math.exp %112 : vector<24x128xf32>
    %114 = arith.addf %109, %113 : vector<24x128xf32>
    %115 = arith.subf %105, %103 : vector<24x128xf32>
    %cst_35 = arith.constant 1.000000e+01 : f32
    %116 = vector.broadcast %cst_35 : f32 to vector<24x128xf32>
    %117 = arith.mulf %115, %116 : vector<24x128xf32>
    %118 = math.exp %117 : vector<24x128xf32>
    %119 = arith.addf %114, %118 : vector<24x128xf32>
    %120 = math.log %119 : vector<24x128xf32>
    %cst_36 = arith.constant 1.000000e-01 : f32
    %121 = vector.broadcast %cst_36 : f32 to vector<24x128xf32>
    %122 = arith.mulf %121, %120 : vector<24x128xf32>
    %123 = arith.subf %105, %122 : vector<24x128xf32>
    %124 = arith.addf %22, %123 : vector<24x128xf32>
    %125 = vector.broadcast %c4_i32 : i32 to vector<24x128xi32>
    %126 = arith.cmpi eq, %36, %125 : vector<24x128xi32>
    %127 = arith.select %126, %124, %100 : vector<24x128xi1>, vector<24x128xf32>
    %c5_i32 = arith.constant 5 : i32
    %c1_i32_37 = arith.constant 1 : i32
    %128 = tpu.dynamic_rotate %127 by %c1_i32_37 dim 0 : vector<24x128xf32>, i32 -> vector<24x128xf32>
    %c1_i32_38 = arith.constant 1 : i32
    %129 = tpu.dynamic_rotate %127 by %c1_i32_38 dim 1 : vector<24x128xf32>, i32 -> vector<24x128xf32>
    %c1_i32_39 = arith.constant 1 : i32
    %130 = tpu.dynamic_rotate %128 by %c1_i32_39 dim 1 : vector<24x128xf32>, i32 -> vector<24x128xf32>
    %131 = arith.minimumf %128, %129 : vector<24x128xf32>
    %132 = arith.minimumf %131, %130 : vector<24x128xf32>
    %133 = arith.subf %132, %128 : vector<24x128xf32>
    %cst_40 = arith.constant 1.000000e+01 : f32
    %134 = vector.broadcast %cst_40 : f32 to vector<24x128xf32>
    %135 = arith.mulf %133, %134 : vector<24x128xf32>
    %136 = math.exp %135 : vector<24x128xf32>
    %137 = arith.subf %132, %129 : vector<24x128xf32>
    %cst_41 = arith.constant 1.000000e+01 : f32
    %138 = vector.broadcast %cst_41 : f32 to vector<24x128xf32>
    %139 = arith.mulf %137, %138 : vector<24x128xf32>
    %140 = math.exp %139 : vector<24x128xf32>
    %141 = arith.addf %136, %140 : vector<24x128xf32>
    %142 = arith.subf %132, %130 : vector<24x128xf32>
    %cst_42 = arith.constant 1.000000e+01 : f32
    %143 = vector.broadcast %cst_42 : f32 to vector<24x128xf32>
    %144 = arith.mulf %142, %143 : vector<24x128xf32>
    %145 = math.exp %144 : vector<24x128xf32>
    %146 = arith.addf %141, %145 : vector<24x128xf32>
    %147 = math.log %146 : vector<24x128xf32>
    %cst_43 = arith.constant 1.000000e-01 : f32
    %148 = vector.broadcast %cst_43 : f32 to vector<24x128xf32>
    %149 = arith.mulf %148, %147 : vector<24x128xf32>
    %150 = arith.subf %132, %149 : vector<24x128xf32>
    %151 = arith.addf %22, %150 : vector<24x128xf32>
    %152 = vector.broadcast %c5_i32 : i32 to vector<24x128xi32>
    %153 = arith.cmpi eq, %36, %152 : vector<24x128xi32>
    %154 = arith.select %153, %151, %127 : vector<24x128xi1>, vector<24x128xf32>
    %c6_i32 = arith.constant 6 : i32
    %c1_i32_44 = arith.constant 1 : i32
    %155 = tpu.dynamic_rotate %154 by %c1_i32_44 dim 0 : vector<24x128xf32>, i32 -> vector<24x128xf32>
    %c1_i32_45 = arith.constant 1 : i32
    %156 = tpu.dynamic_rotate %154 by %c1_i32_45 dim 1 : vector<24x128xf32>, i32 -> vector<24x128xf32>
    %c1_i32_46 = arith.constant 1 : i32
    %157 = tpu.dynamic_rotate %155 by %c1_i32_46 dim 1 : vector<24x128xf32>, i32 -> vector<24x128xf32>
    %158 = arith.minimumf %155, %156 : vector<24x128xf32>
    %159 = arith.minimumf %158, %157 : vector<24x128xf32>
    %160 = arith.subf %159, %155 : vector<24x128xf32>
    %cst_47 = arith.constant 1.000000e+01 : f32
    %161 = vector.broadcast %cst_47 : f32 to vector<24x128xf32>
    %162 = arith.mulf %160, %161 : vector<24x128xf32>
    %163 = math.exp %162 : vector<24x128xf32>
    %164 = arith.subf %159, %156 : vector<24x128xf32>
    %cst_48 = arith.constant 1.000000e+01 : f32
    %165 = vector.broadcast %cst_48 : f32 to vector<24x128xf32>
    %166 = arith.mulf %164, %165 : vector<24x128xf32>
    %167 = math.exp %166 : vector<24x128xf32>
    %168 = arith.addf %163, %167 : vector<24x128xf32>
    %169 = arith.subf %159, %157 : vector<24x128xf32>
    %cst_49 = arith.constant 1.000000e+01 : f32
    %170 = vector.broadcast %cst_49 : f32 to vector<24x128xf32>
    %171 = arith.mulf %169, %170 : vector<24x128xf32>
    %172 = math.exp %171 : vector<24x128xf32>
    %173 = arith.addf %168, %172 : vector<24x128xf32>
    %174 = math.log %173 : vector<24x128xf32>
    %cst_50 = arith.constant 1.000000e-01 : f32
    %175 = vector.broadcast %cst_50 : f32 to vector<24x128xf32>
    %176 = arith.mulf %175, %174 : vector<24x128xf32>
    %177 = arith.subf %159, %176 : vector<24x128xf32>
    %178 = arith.addf %22, %177 : vector<24x128xf32>
    %179 = vector.broadcast %c6_i32 : i32 to vector<24x128xi32>
    %180 = arith.cmpi eq, %36, %179 : vector<24x128xi32>
    %181 = arith.select %180, %178, %154 : vector<24x128xi1>, vector<24x128xf32>
    %c7_i32 = arith.constant 7 : i32
    %c1_i32_51 = arith.constant 1 : i32
    %182 = tpu.dynamic_rotate %181 by %c1_i32_51 dim 0 : vector<24x128xf32>, i32 -> vector<24x128xf32>
    %c1_i32_52 = arith.constant 1 : i32
    %183 = tpu.dynamic_rotate %181 by %c1_i32_52 dim 1 : vector<24x128xf32>, i32 -> vector<24x128xf32>
    %c1_i32_53 = arith.constant 1 : i32
    %184 = tpu.dynamic_rotate %182 by %c1_i32_53 dim 1 : vector<24x128xf32>, i32 -> vector<24x128xf32>
    %185 = arith.minimumf %182, %183 : vector<24x128xf32>
    %186 = arith.minimumf %185, %184 : vector<24x128xf32>
    %187 = arith.subf %186, %182 : vector<24x128xf32>
    %cst_54 = arith.constant 1.000000e+01 : f32
    %188 = vector.broadcast %cst_54 : f32 to vector<24x128xf32>
    %189 = arith.mulf %187, %188 : vector<24x128xf32>
    %190 = math.exp %189 : vector<24x128xf32>
    %191 = arith.subf %186, %183 : vector<24x128xf32>
    %cst_55 = arith.constant 1.000000e+01 : f32
    %192 = vector.broadcast %cst_55 : f32 to vector<24x128xf32>
    %193 = arith.mulf %191, %192 : vector<24x128xf32>
    %194 = math.exp %193 : vector<24x128xf32>
    %195 = arith.addf %190, %194 : vector<24x128xf32>
    %196 = arith.subf %186, %184 : vector<24x128xf32>
    %cst_56 = arith.constant 1.000000e+01 : f32
    %197 = vector.broadcast %cst_56 : f32 to vector<24x128xf32>
    %198 = arith.mulf %196, %197 : vector<24x128xf32>
    %199 = math.exp %198 : vector<24x128xf32>
    %200 = arith.addf %195, %199 : vector<24x128xf32>
    %201 = math.log %200 : vector<24x128xf32>
    %cst_57 = arith.constant 1.000000e-01 : f32
    %202 = vector.broadcast %cst_57 : f32 to vector<24x128xf32>
    %203 = arith.mulf %202, %201 : vector<24x128xf32>
    %204 = arith.subf %186, %203 : vector<24x128xf32>
    %205 = arith.addf %22, %204 : vector<24x128xf32>
    %206 = vector.broadcast %c7_i32 : i32 to vector<24x128xi32>
    %207 = arith.cmpi eq, %36, %206 : vector<24x128xi32>
    %208 = arith.select %207, %205, %181 : vector<24x128xi1>, vector<24x128xf32>
    %c8_i32 = arith.constant 8 : i32
    %c1_i32_58 = arith.constant 1 : i32
    %209 = tpu.dynamic_rotate %208 by %c1_i32_58 dim 0 : vector<24x128xf32>, i32 -> vector<24x128xf32>
    %c1_i32_59 = arith.constant 1 : i32
    %210 = tpu.dynamic_rotate %208 by %c1_i32_59 dim 1 : vector<24x128xf32>, i32 -> vector<24x128xf32>
    %c1_i32_60 = arith.constant 1 : i32
    %211 = tpu.dynamic_rotate %209 by %c1_i32_60 dim 1 : vector<24x128xf32>, i32 -> vector<24x128xf32>
    %212 = arith.minimumf %209, %210 : vector<24x128xf32>
    %213 = arith.minimumf %212, %211 : vector<24x128xf32>
    %214 = arith.subf %213, %209 : vector<24x128xf32>
    %cst_61 = arith.constant 1.000000e+01 : f32
    %215 = vector.broadcast %cst_61 : f32 to vector<24x128xf32>
    %216 = arith.mulf %214, %215 : vector<24x128xf32>
    %217 = math.exp %216 : vector<24x128xf32>
    %218 = arith.subf %213, %210 : vector<24x128xf32>
    %cst_62 = arith.constant 1.000000e+01 : f32
    %219 = vector.broadcast %cst_62 : f32 to vector<24x128xf32>
    %220 = arith.mulf %218, %219 : vector<24x128xf32>
    %221 = math.exp %220 : vector<24x128xf32>
    %222 = arith.addf %217, %221 : vector<24x128xf32>
    %223 = arith.subf %213, %211 : vector<24x128xf32>
    %cst_63 = arith.constant 1.000000e+01 : f32
    %224 = vector.broadcast %cst_63 : f32 to vector<24x128xf32>
    %225 = arith.mulf %223, %224 : vector<24x128xf32>
    %226 = math.exp %225 : vector<24x128xf32>
    %227 = arith.addf %222, %226 : vector<24x128xf32>
    %228 = math.log %227 : vector<24x128xf32>
    %cst_64 = arith.constant 1.000000e-01 : f32
    %229 = vector.broadcast %cst_64 : f32 to vector<24x128xf32>
    %230 = arith.mulf %229, %228 : vector<24x128xf32>
    %231 = arith.subf %213, %230 : vector<24x128xf32>
    %232 = arith.addf %22, %231 : vector<24x128xf32>
    %233 = vector.broadcast %c8_i32 : i32 to vector<24x128xi32>
    %234 = arith.cmpi eq, %36, %233 : vector<24x128xi32>
    %235 = arith.select %234, %232, %208 : vector<24x128xi1>, vector<24x128xf32>
    %c9_i32 = arith.constant 9 : i32
    %c1_i32_65 = arith.constant 1 : i32
    %236 = tpu.dynamic_rotate %235 by %c1_i32_65 dim 0 : vector<24x128xf32>, i32 -> vector<24x128xf32>
    %c1_i32_66 = arith.constant 1 : i32
    %237 = tpu.dynamic_rotate %235 by %c1_i32_66 dim 1 : vector<24x128xf32>, i32 -> vector<24x128xf32>
    %c1_i32_67 = arith.constant 1 : i32
    %238 = tpu.dynamic_rotate %236 by %c1_i32_67 dim 1 : vector<24x128xf32>, i32 -> vector<24x128xf32>
    %239 = arith.minimumf %236, %237 : vector<24x128xf32>
    %240 = arith.minimumf %239, %238 : vector<24x128xf32>
    %241 = arith.subf %240, %236 : vector<24x128xf32>
    %cst_68 = arith.constant 1.000000e+01 : f32
    %242 = vector.broadcast %cst_68 : f32 to vector<24x128xf32>
    %243 = arith.mulf %241, %242 : vector<24x128xf32>
    %244 = math.exp %243 : vector<24x128xf32>
    %245 = arith.subf %240, %237 : vector<24x128xf32>
    %cst_69 = arith.constant 1.000000e+01 : f32
    %246 = vector.broadcast %cst_69 : f32 to vector<24x128xf32>
    %247 = arith.mulf %245, %246 : vector<24x128xf32>
    %248 = math.exp %247 : vector<24x128xf32>
    %249 = arith.addf %244, %248 : vector<24x128xf32>
    %250 = arith.subf %240, %238 : vector<24x128xf32>
    %cst_70 = arith.constant 1.000000e+01 : f32
    %251 = vector.broadcast %cst_70 : f32 to vector<24x128xf32>
    %252 = arith.mulf %250, %251 : vector<24x128xf32>
    %253 = math.exp %252 : vector<24x128xf32>
    %254 = arith.addf %249, %253 : vector<24x128xf32>
    %255 = math.log %254 : vector<24x128xf32>
    %cst_71 = arith.constant 1.000000e-01 : f32
    %256 = vector.broadcast %cst_71 : f32 to vector<24x128xf32>
    %257 = arith.mulf %256, %255 : vector<24x128xf32>
    %258 = arith.subf %240, %257 : vector<24x128xf32>
    %259 = arith.addf %22, %258 : vector<24x128xf32>
    %260 = vector.broadcast %c9_i32 : i32 to vector<24x128xi32>
    %261 = arith.cmpi eq, %36, %260 : vector<24x128xi32>
    %262 = arith.select %261, %259, %235 : vector<24x128xi1>, vector<24x128xf32>
    %c10_i32 = arith.constant 10 : i32
    %c1_i32_72 = arith.constant 1 : i32
    %263 = tpu.dynamic_rotate %262 by %c1_i32_72 dim 0 : vector<24x128xf32>, i32 -> vector<24x128xf32>
    %c1_i32_73 = arith.constant 1 : i32
    %264 = tpu.dynamic_rotate %262 by %c1_i32_73 dim 1 : vector<24x128xf32>, i32 -> vector<24x128xf32>
    %c1_i32_74 = arith.constant 1 : i32
    %265 = tpu.dynamic_rotate %263 by %c1_i32_74 dim 1 : vector<24x128xf32>, i32 -> vector<24x128xf32>
    %266 = arith.minimumf %263, %264 : vector<24x128xf32>
    %267 = arith.minimumf %266, %265 : vector<24x128xf32>
    %268 = arith.subf %267, %263 : vector<24x128xf32>
    %cst_75 = arith.constant 1.000000e+01 : f32
    %269 = vector.broadcast %cst_75 : f32 to vector<24x128xf32>
    %270 = arith.mulf %268, %269 : vector<24x128xf32>
    %271 = math.exp %270 : vector<24x128xf32>
    %272 = arith.subf %267, %264 : vector<24x128xf32>
    %cst_76 = arith.constant 1.000000e+01 : f32
    %273 = vector.broadcast %cst_76 : f32 to vector<24x128xf32>
    %274 = arith.mulf %272, %273 : vector<24x128xf32>
    %275 = math.exp %274 : vector<24x128xf32>
    %276 = arith.addf %271, %275 : vector<24x128xf32>
    %277 = arith.subf %267, %265 : vector<24x128xf32>
    %cst_77 = arith.constant 1.000000e+01 : f32
    %278 = vector.broadcast %cst_77 : f32 to vector<24x128xf32>
    %279 = arith.mulf %277, %278 : vector<24x128xf32>
    %280 = math.exp %279 : vector<24x128xf32>
    %281 = arith.addf %276, %280 : vector<24x128xf32>
    %282 = math.log %281 : vector<24x128xf32>
    %cst_78 = arith.constant 1.000000e-01 : f32
    %283 = vector.broadcast %cst_78 : f32 to vector<24x128xf32>
    %284 = arith.mulf %283, %282 : vector<24x128xf32>
    %285 = arith.subf %267, %284 : vector<24x128xf32>
    %286 = arith.addf %22, %285 : vector<24x128xf32>
    %287 = vector.broadcast %c10_i32 : i32 to vector<24x128xi32>
    %288 = arith.cmpi eq, %36, %287 : vector<24x128xi32>
    %289 = arith.select %288, %286, %262 : vector<24x128xi1>, vector<24x128xf32>
    %c11_i32 = arith.constant 11 : i32
    %c1_i32_79 = arith.constant 1 : i32
    %290 = tpu.dynamic_rotate %289 by %c1_i32_79 dim 0 : vector<24x128xf32>, i32 -> vector<24x128xf32>
    %c1_i32_80 = arith.constant 1 : i32
    %291 = tpu.dynamic_rotate %289 by %c1_i32_80 dim 1 : vector<24x128xf32>, i32 -> vector<24x128xf32>
    %c1_i32_81 = arith.constant 1 : i32
    %292 = tpu.dynamic_rotate %290 by %c1_i32_81 dim 1 : vector<24x128xf32>, i32 -> vector<24x128xf32>
    %293 = arith.minimumf %290, %291 : vector<24x128xf32>
    %294 = arith.minimumf %293, %292 : vector<24x128xf32>
    %295 = arith.subf %294, %290 : vector<24x128xf32>
    %cst_82 = arith.constant 1.000000e+01 : f32
    %296 = vector.broadcast %cst_82 : f32 to vector<24x128xf32>
    %297 = arith.mulf %295, %296 : vector<24x128xf32>
    %298 = math.exp %297 : vector<24x128xf32>
    %299 = arith.subf %294, %291 : vector<24x128xf32>
    %cst_83 = arith.constant 1.000000e+01 : f32
    %300 = vector.broadcast %cst_83 : f32 to vector<24x128xf32>
    %301 = arith.mulf %299, %300 : vector<24x128xf32>
    %302 = math.exp %301 : vector<24x128xf32>
    %303 = arith.addf %298, %302 : vector<24x128xf32>
    %304 = arith.subf %294, %292 : vector<24x128xf32>
    %cst_84 = arith.constant 1.000000e+01 : f32
    %305 = vector.broadcast %cst_84 : f32 to vector<24x128xf32>
    %306 = arith.mulf %304, %305 : vector<24x128xf32>
    %307 = math.exp %306 : vector<24x128xf32>
    %308 = arith.addf %303, %307 : vector<24x128xf32>
    %309 = math.log %308 : vector<24x128xf32>
    %cst_85 = arith.constant 1.000000e-01 : f32
    %310 = vector.broadcast %cst_85 : f32 to vector<24x128xf32>
    %311 = arith.mulf %310, %309 : vector<24x128xf32>
    %312 = arith.subf %294, %311 : vector<24x128xf32>
    %313 = arith.addf %22, %312 : vector<24x128xf32>
    %314 = vector.broadcast %c11_i32 : i32 to vector<24x128xi32>
    %315 = arith.cmpi eq, %36, %314 : vector<24x128xi32>
    %316 = arith.select %315, %313, %289 : vector<24x128xi1>, vector<24x128xf32>
    %c12_i32 = arith.constant 12 : i32
    %c1_i32_86 = arith.constant 1 : i32
    %317 = tpu.dynamic_rotate %316 by %c1_i32_86 dim 0 : vector<24x128xf32>, i32 -> vector<24x128xf32>
    %c1_i32_87 = arith.constant 1 : i32
    %318 = tpu.dynamic_rotate %316 by %c1_i32_87 dim 1 : vector<24x128xf32>, i32 -> vector<24x128xf32>
    %c1_i32_88 = arith.constant 1 : i32
    %319 = tpu.dynamic_rotate %317 by %c1_i32_88 dim 1 : vector<24x128xf32>, i32 -> vector<24x128xf32>
    %320 = arith.minimumf %317, %318 : vector<24x128xf32>
    %321 = arith.minimumf %320, %319 : vector<24x128xf32>
    %322 = arith.subf %321, %317 : vector<24x128xf32>
    %cst_89 = arith.constant 1.000000e+01 : f32
    %323 = vector.broadcast %cst_89 : f32 to vector<24x128xf32>
    %324 = arith.mulf %322, %323 : vector<24x128xf32>
    %325 = math.exp %324 : vector<24x128xf32>
    %326 = arith.subf %321, %318 : vector<24x128xf32>
    %cst_90 = arith.constant 1.000000e+01 : f32
    %327 = vector.broadcast %cst_90 : f32 to vector<24x128xf32>
    %328 = arith.mulf %326, %327 : vector<24x128xf32>
    %329 = math.exp %328 : vector<24x128xf32>
    %330 = arith.addf %325, %329 : vector<24x128xf32>
    %331 = arith.subf %321, %319 : vector<24x128xf32>
    %cst_91 = arith.constant 1.000000e+01 : f32
    %332 = vector.broadcast %cst_91 : f32 to vector<24x128xf32>
    %333 = arith.mulf %331, %332 : vector<24x128xf32>
    %334 = math.exp %333 : vector<24x128xf32>
    %335 = arith.addf %330, %334 : vector<24x128xf32>
    %336 = math.log %335 : vector<24x128xf32>
    %cst_92 = arith.constant 1.000000e-01 : f32
    %337 = vector.broadcast %cst_92 : f32 to vector<24x128xf32>
    %338 = arith.mulf %337, %336 : vector<24x128xf32>
    %339 = arith.subf %321, %338 : vector<24x128xf32>
    %340 = arith.addf %22, %339 : vector<24x128xf32>
    %341 = vector.broadcast %c12_i32 : i32 to vector<24x128xi32>
    %342 = arith.cmpi eq, %36, %341 : vector<24x128xi32>
    %343 = arith.select %342, %340, %316 : vector<24x128xi1>, vector<24x128xf32>
    %c13_i32 = arith.constant 13 : i32
    %c1_i32_93 = arith.constant 1 : i32
    %344 = tpu.dynamic_rotate %343 by %c1_i32_93 dim 0 : vector<24x128xf32>, i32 -> vector<24x128xf32>
    %c1_i32_94 = arith.constant 1 : i32
    %345 = tpu.dynamic_rotate %343 by %c1_i32_94 dim 1 : vector<24x128xf32>, i32 -> vector<24x128xf32>
    %c1_i32_95 = arith.constant 1 : i32
    %346 = tpu.dynamic_rotate %344 by %c1_i32_95 dim 1 : vector<24x128xf32>, i32 -> vector<24x128xf32>
    %347 = arith.minimumf %344, %345 : vector<24x128xf32>
    %348 = arith.minimumf %347, %346 : vector<24x128xf32>
    %349 = arith.subf %348, %344 : vector<24x128xf32>
    %cst_96 = arith.constant 1.000000e+01 : f32
    %350 = vector.broadcast %cst_96 : f32 to vector<24x128xf32>
    %351 = arith.mulf %349, %350 : vector<24x128xf32>
    %352 = math.exp %351 : vector<24x128xf32>
    %353 = arith.subf %348, %345 : vector<24x128xf32>
    %cst_97 = arith.constant 1.000000e+01 : f32
    %354 = vector.broadcast %cst_97 : f32 to vector<24x128xf32>
    %355 = arith.mulf %353, %354 : vector<24x128xf32>
    %356 = math.exp %355 : vector<24x128xf32>
    %357 = arith.addf %352, %356 : vector<24x128xf32>
    %358 = arith.subf %348, %346 : vector<24x128xf32>
    %cst_98 = arith.constant 1.000000e+01 : f32
    %359 = vector.broadcast %cst_98 : f32 to vector<24x128xf32>
    %360 = arith.mulf %358, %359 : vector<24x128xf32>
    %361 = math.exp %360 : vector<24x128xf32>
    %362 = arith.addf %357, %361 : vector<24x128xf32>
    %363 = math.log %362 : vector<24x128xf32>
    %cst_99 = arith.constant 1.000000e-01 : f32
    %364 = vector.broadcast %cst_99 : f32 to vector<24x128xf32>
    %365 = arith.mulf %364, %363 : vector<24x128xf32>
    %366 = arith.subf %348, %365 : vector<24x128xf32>
    %367 = arith.addf %22, %366 : vector<24x128xf32>
    %368 = vector.broadcast %c13_i32 : i32 to vector<24x128xi32>
    %369 = arith.cmpi eq, %36, %368 : vector<24x128xi32>
    %370 = arith.select %369, %367, %343 : vector<24x128xi1>, vector<24x128xf32>
    %c14_i32 = arith.constant 14 : i32
    %c1_i32_100 = arith.constant 1 : i32
    %371 = tpu.dynamic_rotate %370 by %c1_i32_100 dim 0 : vector<24x128xf32>, i32 -> vector<24x128xf32>
    %c1_i32_101 = arith.constant 1 : i32
    %372 = tpu.dynamic_rotate %370 by %c1_i32_101 dim 1 : vector<24x128xf32>, i32 -> vector<24x128xf32>
    %c1_i32_102 = arith.constant 1 : i32
    %373 = tpu.dynamic_rotate %371 by %c1_i32_102 dim 1 : vector<24x128xf32>, i32 -> vector<24x128xf32>
    %374 = arith.minimumf %371, %372 : vector<24x128xf32>
    %375 = arith.minimumf %374, %373 : vector<24x128xf32>
    %376 = arith.subf %375, %371 : vector<24x128xf32>
    %cst_103 = arith.constant 1.000000e+01 : f32
    %377 = vector.broadcast %cst_103 : f32 to vector<24x128xf32>
    %378 = arith.mulf %376, %377 : vector<24x128xf32>
    %379 = math.exp %378 : vector<24x128xf32>
    %380 = arith.subf %375, %372 : vector<24x128xf32>
    %cst_104 = arith.constant 1.000000e+01 : f32
    %381 = vector.broadcast %cst_104 : f32 to vector<24x128xf32>
    %382 = arith.mulf %380, %381 : vector<24x128xf32>
    %383 = math.exp %382 : vector<24x128xf32>
    %384 = arith.addf %379, %383 : vector<24x128xf32>
    %385 = arith.subf %375, %373 : vector<24x128xf32>
    %cst_105 = arith.constant 1.000000e+01 : f32
    %386 = vector.broadcast %cst_105 : f32 to vector<24x128xf32>
    %387 = arith.mulf %385, %386 : vector<24x128xf32>
    %388 = math.exp %387 : vector<24x128xf32>
    %389 = arith.addf %384, %388 : vector<24x128xf32>
    %390 = math.log %389 : vector<24x128xf32>
    %cst_106 = arith.constant 1.000000e-01 : f32
    %391 = vector.broadcast %cst_106 : f32 to vector<24x128xf32>
    %392 = arith.mulf %391, %390 : vector<24x128xf32>
    %393 = arith.subf %375, %392 : vector<24x128xf32>
    %394 = arith.addf %22, %393 : vector<24x128xf32>
    %395 = vector.broadcast %c14_i32 : i32 to vector<24x128xi32>
    %396 = arith.cmpi eq, %36, %395 : vector<24x128xi32>
    %397 = arith.select %396, %394, %370 : vector<24x128xi1>, vector<24x128xf32>
    %c15_i32 = arith.constant 15 : i32
    %c1_i32_107 = arith.constant 1 : i32
    %398 = tpu.dynamic_rotate %397 by %c1_i32_107 dim 0 : vector<24x128xf32>, i32 -> vector<24x128xf32>
    %c1_i32_108 = arith.constant 1 : i32
    %399 = tpu.dynamic_rotate %397 by %c1_i32_108 dim 1 : vector<24x128xf32>, i32 -> vector<24x128xf32>
    %c1_i32_109 = arith.constant 1 : i32
    %400 = tpu.dynamic_rotate %398 by %c1_i32_109 dim 1 : vector<24x128xf32>, i32 -> vector<24x128xf32>
    %401 = arith.minimumf %398, %399 : vector<24x128xf32>
    %402 = arith.minimumf %401, %400 : vector<24x128xf32>
    %403 = arith.subf %402, %398 : vector<24x128xf32>
    %cst_110 = arith.constant 1.000000e+01 : f32
    %404 = vector.broadcast %cst_110 : f32 to vector<24x128xf32>
    %405 = arith.mulf %403, %404 : vector<24x128xf32>
    %406 = math.exp %405 : vector<24x128xf32>
    %407 = arith.subf %402, %399 : vector<24x128xf32>
    %cst_111 = arith.constant 1.000000e+01 : f32
    %408 = vector.broadcast %cst_111 : f32 to vector<24x128xf32>
    %409 = arith.mulf %407, %408 : vector<24x128xf32>
    %410 = math.exp %409 : vector<24x128xf32>
    %411 = arith.addf %406, %410 : vector<24x128xf32>
    %412 = arith.subf %402, %400 : vector<24x128xf32>
    %cst_112 = arith.constant 1.000000e+01 : f32
    %413 = vector.broadcast %cst_112 : f32 to vector<24x128xf32>
    %414 = arith.mulf %412, %413 : vector<24x128xf32>
    %415 = math.exp %414 : vector<24x128xf32>
    %416 = arith.addf %411, %415 : vector<24x128xf32>
    %417 = math.log %416 : vector<24x128xf32>
    %cst_113 = arith.constant 1.000000e-01 : f32
    %418 = vector.broadcast %cst_113 : f32 to vector<24x128xf32>
    %419 = arith.mulf %418, %417 : vector<24x128xf32>
    %420 = arith.subf %402, %419 : vector<24x128xf32>
    %421 = arith.addf %22, %420 : vector<24x128xf32>
    %422 = vector.broadcast %c15_i32 : i32 to vector<24x128xi32>
    %423 = arith.cmpi eq, %36, %422 : vector<24x128xi32>
    %424 = arith.select %423, %421, %397 : vector<24x128xi1>, vector<24x128xf32>
    %c16_i32 = arith.constant 16 : i32
    %c1_i32_114 = arith.constant 1 : i32
    %425 = tpu.dynamic_rotate %424 by %c1_i32_114 dim 0 : vector<24x128xf32>, i32 -> vector<24x128xf32>
    %c1_i32_115 = arith.constant 1 : i32
    %426 = tpu.dynamic_rotate %424 by %c1_i32_115 dim 1 : vector<24x128xf32>, i32 -> vector<24x128xf32>
    %c1_i32_116 = arith.constant 1 : i32
    %427 = tpu.dynamic_rotate %425 by %c1_i32_116 dim 1 : vector<24x128xf32>, i32 -> vector<24x128xf32>
    %428 = arith.minimumf %425, %426 : vector<24x128xf32>
    %429 = arith.minimumf %428, %427 : vector<24x128xf32>
    %430 = arith.subf %429, %425 : vector<24x128xf32>
    %cst_117 = arith.constant 1.000000e+01 : f32
    %431 = vector.broadcast %cst_117 : f32 to vector<24x128xf32>
    %432 = arith.mulf %430, %431 : vector<24x128xf32>
    %433 = math.exp %432 : vector<24x128xf32>
    %434 = arith.subf %429, %426 : vector<24x128xf32>
    %cst_118 = arith.constant 1.000000e+01 : f32
    %435 = vector.broadcast %cst_118 : f32 to vector<24x128xf32>
    %436 = arith.mulf %434, %435 : vector<24x128xf32>
    %437 = math.exp %436 : vector<24x128xf32>
    %438 = arith.addf %433, %437 : vector<24x128xf32>
    %439 = arith.subf %429, %427 : vector<24x128xf32>
    %cst_119 = arith.constant 1.000000e+01 : f32
    %440 = vector.broadcast %cst_119 : f32 to vector<24x128xf32>
    %441 = arith.mulf %439, %440 : vector<24x128xf32>
    %442 = math.exp %441 : vector<24x128xf32>
    %443 = arith.addf %438, %442 : vector<24x128xf32>
    %444 = math.log %443 : vector<24x128xf32>
    %cst_120 = arith.constant 1.000000e-01 : f32
    %445 = vector.broadcast %cst_120 : f32 to vector<24x128xf32>
    %446 = arith.mulf %445, %444 : vector<24x128xf32>
    %447 = arith.subf %429, %446 : vector<24x128xf32>
    %448 = arith.addf %22, %447 : vector<24x128xf32>
    %449 = vector.broadcast %c16_i32 : i32 to vector<24x128xi32>
    %450 = arith.cmpi eq, %36, %449 : vector<24x128xi32>
    %451 = arith.select %450, %448, %424 : vector<24x128xi1>, vector<24x128xf32>
    %c15_i32_121 = arith.constant 15 : i32
    %452 = tpu.iota {dimensions = array<i32: 0>} : vector<2x24xi32>
    %453 = tpu.iota {dimensions = array<i32: 1>} : vector<2x24xi32>
    %c9_i32_122 = arith.constant 9 : i32
    %454 = vector.broadcast %c9_i32_122 : i32 to vector<2x24xi32>
    %455 = arith.muli %452, %454 : vector<2x24xi32>
    %c8_i32_123 = arith.constant 8 : i32
    %456 = vector.broadcast %c8_i32_123 : i32 to vector<2x24xi32>
    %457 = arith.addi %455, %456 : vector<2x24xi32>
    %458 = arith.cmpi eq, %453, %457 : vector<2x24xi32>
    %459 = arith.extui %458 : vector<2x24xi1> to vector<2x24xi32>
    %460 = arith.sitofp %459 : vector<2x24xi32> to vector<2x24xf32>
    %cst_124 = arith.constant -1.000000e+00 : f32
    %461 = vector.broadcast %cst_124 : f32 to vector<2x24xf32>
    %462 = arith.mulf %460, %461 : vector<2x24xf32>
    %463 = tpu.iota {dimensions = array<i32: 0>} : vector<2x128xi32>
    %464 = tpu.iota {dimensions = array<i32: 1>} : vector<2x128xi32>
    %c9_i32_125 = arith.constant 9 : i32
    %465 = vector.broadcast %c9_i32_125 : i32 to vector<2x128xi32>
    %466 = arith.muli %463, %465 : vector<2x128xi32>
    %c8_i32_126 = arith.constant 8 : i32
    %467 = vector.broadcast %c8_i32_126 : i32 to vector<2x128xi32>
    %468 = arith.addi %466, %467 : vector<2x128xi32>
    %469 = arith.cmpi eq, %464, %468 : vector<2x128xi32>
    %470 = arith.extui %469 : vector<2x128xi1> to vector<2x128xi32>
    %471 = arith.sitofp %470 : vector<2x128xi32> to vector<2x128xf32>
    %cst_127 = arith.constant dense<0.000000e+00> : vector<2x128xf32>
    %472 = tpu.matmul %462, %451, %cst_127 {dimension_numbers = #tpu.dot_dimension_numbers<[1], [0], [0], [1], [0, 0, 1, 1], [], []>} : vector<2x24xf32>, vector<24x128xf32>, vector<2x128xf32> -> vector<2x128xf32>
    %cst_128 = arith.constant dense<0.000000e+00> : vector<2x2xf32>
    %473 = tpu.matmul %472, %471, %cst_128 {dimension_numbers = #tpu.dot_dimension_numbers<[1], [1], [0], [0], [0, 0, 1, 0], [], []>} : vector<2x128xf32>, vector<2x128xf32>, vector<2x2xf32> -> vector<2x2xf32>
    %474 = tpu.iota {dimensions = array<i32: 0>} : vector<2x2xi32>
    %475 = tpu.iota {dimensions = array<i32: 1>} : vector<2x2xi32>
    %476 = arith.cmpi eq, %474, %475 : vector<2x2xi32>
    %477 = arith.extui %476 : vector<2x2xi1> to vector<2x2xi32>
    %478 = arith.sitofp %477 : vector<2x2xi32> to vector<2x2xf32>
    %479 = arith.mulf %473, %478 : vector<2x2xf32>
    %480 = vector.shape_cast %479 : vector<2x2xf32> to vector<1x2x2xf32>
    %cst_129 = arith.constant dense<0.000000e+00> : vector<1xf32>
    %481 = vector.multi_reduction <add>, %480, %cst_129 [1, 2] : vector<1x2x2xf32> to vector<1xf32>
    %482 = vector.shape_cast %481 : vector<1xf32> to vector<1x1x1xf32>
    %483 = vector.extract %482[0, 0, 0] : f32 from vector<1x1x1xf32>
    %cst_130 = arith.constant dense<0xFF800000> : vector<2xf32>
    %484 = vector.multi_reduction <maximumf>, %473, %cst_130 [1] : vector<2x2xf32> to vector<2xf32>
    %485 = vector.shape_cast %484 : vector<2xf32> to vector<2x1xf32>
    %486 = vector.broadcast %485 : vector<2x1xf32> to vector<2x2xf32>
    %487 = arith.subf %473, %486 : vector<2x2xf32>
    %488 = math.exp %487 : vector<2x2xf32>
    %cst_131 = arith.constant dense<0.000000e+00> : vector<2xf32>
    %489 = vector.multi_reduction <add>, %488, %cst_131 [1] : vector<2x2xf32> to vector<2xf32>
    %490 = vector.shape_cast %489 : vector<2xf32> to vector<2x1xf32>
    %491 = math.log %490 : vector<2x1xf32>
    %492 = arith.addf %485, %491 : vector<2x1xf32>
    %493 = vector.shape_cast %492 : vector<2x1xf32> to vector<1x2x1xf32>
    %cst_132 = arith.constant dense<0.000000e+00> : vector<1xf32>
    %494 = vector.multi_reduction <add>, %493, %cst_132 [1, 2] : vector<1x2x1xf32> to vector<1xf32>
    %495 = vector.shape_cast %494 : vector<1xf32> to vector<1x1x1xf32>
    %496 = vector.extract %495[0, 0, 0] : f32 from vector<1x1x1xf32>
    %497 = arith.subf %496, %483 : f32
    %cst_133 = arith.constant 2.000000e+00 : f32
    %498 = arith.divf %497, %cst_133 : f32
    %cst_134 = arith.constant dense<0xFF800000> : vector<2xf32>
    %499 = vector.multi_reduction <maximumf>, %473, %cst_134 [0] : vector<2x2xf32> to vector<2xf32>
    %500 = vector.shape_cast %499 : vector<2xf32> to vector<1x2xf32>
    %501 = vector.broadcast %500 : vector<1x2xf32> to vector<2x2xf32>
    %502 = arith.subf %473, %501 : vector<2x2xf32>
    %503 = math.exp %502 : vector<2x2xf32>
    %cst_135 = arith.constant dense<0.000000e+00> : vector<2xf32>
    %504 = vector.multi_reduction <add>, %503, %cst_135 [0] : vector<2x2xf32> to vector<2xf32>
    %505 = vector.shape_cast %504 : vector<2xf32> to vector<1x2xf32>
    %506 = math.log %505 : vector<1x2xf32>
    %507 = arith.addf %500, %506 : vector<1x2xf32>
    %508 = vector.shape_cast %507 : vector<1x2xf32> to vector<1x1x2xf32>
    %cst_136 = arith.constant dense<0.000000e+00> : vector<1xf32>
    %509 = vector.multi_reduction <add>, %508, %cst_136 [1, 2] : vector<1x1x2xf32> to vector<1xf32>
    %510 = vector.shape_cast %509 : vector<1xf32> to vector<1x1x1xf32>
    %511 = vector.extract %510[0, 0, 0] : f32 from vector<1x1x1xf32>
    %512 = arith.subf %511, %483 : f32
    %cst_137 = arith.constant 2.000000e+00 : f32
    %513 = arith.divf %512, %cst_137 : f32
    %514 = arith.addf %498, %513 : f32
    %cst_138 = arith.constant 5.000000e-01 : f32
    %515 = arith.mulf %cst_138, %514 : f32
    %516 = tpu.iota {dimensions = array<i32: 1>} : vector<1x128xi32>
    %cst_139 = arith.constant 0.000000e+00 : f32
    %517 = vector.broadcast %cst_139 : f32 to vector<1x128xf32>
    %c0_i32_140 = arith.constant 0 : i32
    %518 = vector.broadcast %c0_i32_140 : i32 to vector<1x128xi32>
    %519 = arith.cmpi eq, %516, %518 : vector<1x128xi32>
    %cst_141 = arith.constant 0.000000e+00 : f32
    %520 = vector.broadcast %515 : f32 to vector<1x128xf32>
    %521 = vector.broadcast %cst_141 : f32 to vector<1x128xf32>
    %522 = arith.select %519, %520, %521 : vector<1x128xi1>, vector<1x128xf32>
    %523 = arith.addf %517, %522 : vector<1x128xf32>
    %c0_142 = arith.constant 0 : index
    %c0_143 = arith.constant 0 : index
    %524 = vector.load %arg4[%c0_142, %c0_143] : memref<1x128xf32, #tpu.memory_space<vmem>>, vector<1x128xf32>
    tpu.vector_store %arg4[%c0_142, %c0_143], %523 {strides = array<i32>} : memref<1x128xf32, #tpu.memory_space<vmem>>, vector<1x128xf32>,
    return
  }
}

</mosaic_0001>

<bundles_post_ra>
// kernel: abstract_loss_forward.2
= control target key start
LH: loop header
LB: loop body
LE: loop exit
PB: predicated region body
PF: predicated region fallthrough
CT: control target
= control target key end

     0   :  { %vm17_vm0 = vcmask 254976   ;;  %v741_v9 = vmov 0.0   ;;  %vm742_vm1 = vmmov 0   ;;  %vm75_vm8 = vcmask 261120   ;;  %s906_s1 = inlined_call_operand.vmem [shape: f32[2,32], index: 1, kind: input, shape index: {}]   ;;  %s907_s2 = inlined_call_operand.vmem [shape: f32[2,32], index: 2, kind: input, shape index: {}]   ;;  %s908_s0 = inlined_call_operand.vmem [shape: f32[2,32], index: 0, kind: input, shape index: {}]   ;;  %s909_s3 = inlined_call_operand.vmem [shape: f32[1,128], index: 3, kind: output, shape index: {}]  }
   0x1   :  { %v31_v0 = vld [vmem:[%s906_s1] sm:$0x3]  ;;  %639 = vmatprep.subr.bf16.mxu0 %v741_v9  ;;  %645 = vmatprep.subr.bf16.mxu1 %v741_v9  ;;  %v61_v47 = vlaneseq  ;;  %vm295_vm10 = vcmask 9216   ;;  %vm352_vm11 = vcmask 8192   ;;  %vm318_vm12 = vcmask 1024  }
   0x2   :  { %v769_v1 = vld [vmem:[%s907_s2] sm:$0x3]  ;;  %v32_v3 = vmul.f32 %v31_v0, %v31_v0  ;;  %641 = vmatprep.mubr.msk.bf16.mxu0 %vm742_vm1, %v741_v9  ;;  %647 = vmatprep.mubr.msk.bf16.mxu1 %vm742_vm1, %v741_v9 }
   0x3   :  { %v15_v2 = vld [vmem:[%s908_s0] sm:$0x3]  ;;  %v47_v4 = vmul.f32 %v769_v1, %v769_v1  ;;  %v62_v48 = vshrl.u32 %v61_v47, 7  ;;  %v800_v49 = vand.u32 127, %v61_v47 }
   0x4   :  { %v16_v5 = vmul.f32 %v15_v2, %v15_v2  ;;  %v33_v6 = vsel %vm17_vm0, %v32_v3, 0.0 }
   0x5   :  { %v48_v7 = vsel %vm17_vm0, %v47_v4, 0.0  ;;  %34 = vadd.xlane.f32.xlu0 %v33_v6  ;;  %vm65_vm9 = vcmp.eq.s32.totalorder %v62_v48, %v800_v49  ;;  %vm602_vm13 = vcmp.eq.s32.totalorder %v800_v49, 0  ;;  %vm606_vm14 = vcmp.eq.s32.totalorder %v800_v49, 1 }
   0x6   :  { %49 = vadd.xlane.f32.xlu1 %v48_v7  ;;  %v18_v8 = vsel %vm17_vm0, %v16_v5, 0.0  ;;  %v806_v51 = vsel %vm65_vm9, 1.0, %v741_v9  ;;  %vm610_vm15 = vcmp.eq.s32.totalorder %v800_v49, 2  ;;  %vm614_vm0 = vcmp.eq.s32.totalorder %v800_v49, 3 }
   0x7   :  { %v165_v54 = vmul.f32 1e+09, %v806_v51 }
   0x9   :  { %19 = vadd.xlane.f32.xlu0 %v18_v8 }
  0x92   :  { %v35_v10 = vpop.xlane.xlu0 %34 }
  0x93   :  { %v50_v11 = vpop.xlane.xlu1 %49  ;;  %693 = vrsqrt.f32 %v35_v10  ;;  %vm38_vm3 = vcmp.eq.f32.partialorder %v35_v10, inf  ;;  %v41_v16 = vand.u32 2147483648, %v35_v10  ;;  %vm40_vm4 = vcmp.eq.f32.partialorder %v35_v10, 0.0 }
  0x94   :  { %695 = vrsqrt.f32 %v50_v11  ;;  %vm53_vm2 = vcmp.eq.f32.partialorder %v50_v11, inf  ;;  %v56_v18 = vand.u32 2147483648, %v50_v11  ;;  %vm55_vm5 = vcmp.eq.f32.partialorder %v50_v11, 0.0 }
  0x96   :  { %v20_v12 = vpop.xlane.xlu0 %19 }
  0x97   :  { %697 = vrsqrt.f32 %v20_v12  ;;  %vm23_vm6 = vcmp.eq.f32.partialorder %v20_v12, inf  ;;  %v26_v26 = vand.u32 2147483648, %v20_v12  ;;  %vm25_vm7 = vcmp.eq.f32.partialorder %v20_v12, 0.0 }
  0x9d   :  { %v694_v13 = vpop.eup %693 }
  0x9e   :  { %v696_v14 = vpop.eup %695  ;;  %v37_v15 = vmul.f32 %v694_v13, %v35_v10 }
  0x9f   :  { %v52_v17 = vmul.f32 %v696_v14, %v50_v11 }
  0xa0   :  { %v39_v19 = vsel %vm38_vm3, %v35_v10, %v37_v15 }
  0xa1   :  { %v698_v20 = vpop.eup %697  ;;  %v42_v21 = vsel %vm40_vm4, %v41_v16, %v39_v19  ;;  %v54_v22 = vsel %vm53_vm2, %v50_v11, %v52_v17 }
  0xa2   :  { %v43_v23 = vmax.f32 %v42_v21, 1e-12  ;;  %v22_v24 = vmul.f32 %v698_v20, %v20_v12  ;;  %v57_v25 = vsel %vm55_vm5, %v56_v18, %v54_v22 }
  0xa3   :  { %v58_v29 = vmax.f32 %v57_v25, 1e-12 }
  0xa4   :  { %699 = vrcp.f32 %v43_v23  ;;  %v24_v27 = vsel %vm23_vm6, %v20_v12, %v22_v24 }
  0xa5   :  { %v27_v28 = vsel %vm25_vm7, %v26_v26, %v24_v27 }
  0xa6   :  { %v28_v30 = vmax.f32 %v27_v28, 1e-12 }
  0xa8   :  { %701 = vrcp.f32 %v28_v30 }
  0xa9   :  { %703 = vrcp.f32 %v58_v29 }
  0xae   :  { %v700_v31 = vpop.eup %699 }
  0xaf   :  { %v45_v32 = vmul.f32 %v700_v31, %v31_v0 }
  0xb1   :  { %v73_v33 = vpack.c.bf16 %v45_v32, %v45_v32  ;;  %v70_v44 = vmul.f32 10.0, %v45_v32 }
  0xb2   :  { %v702_v34 = vpop.eup %701 }
  0xb3   :  { %v80_v35 = vsel %vm75_vm8, %v73_v33, 0  ;;  %v30_v36 = vmul.f32 %v702_v34, %v15_v2  ;;  %v704_v37 = vpop.eup %703  ;;  %v71_v46 = vpack.c.bf16 %v70_v44, %v70_v44 }
  0xb4   :  { %640 = vmatpush3.bf16.xpose.msra.mxu0 %v80_v35  ;;  %v60_v41 = vmul.f32 %v704_v37, %v769_v1 }
  0xb5   :  { %v68_v38 = vmul.f32 10.0, %v30_v36  ;;  %v72_v39 = vpack.c.bf16 %v30_v36, %v30_v36  ;;  %651 = vmatprep.subr.bf16.mxu0 %v741_v9 }
  0xb6   :  { %v74_v43 = vpack.c.bf16 %v60_v41, %v60_v41 }
  0xb7   :  { %v123_v40 = vsel %vm75_vm8, %v72_v39, 0  ;;  %v69_v42 = vpack.c.bf16 %v68_v38, %v68_v38 }
  0xb8   :  { %646 = vmatpush3.bf16.xpose.msra.mxu1 %v123_v40  ;;  %v212_v45 = vsel %vm75_vm8, %v74_v43, 0 }
  0xb9   :  { %657 = vmatprep.subr.bf16.mxu1 %v741_v9 }
  0xbb   :  { %642 = vmatmul.mubr.msk.bf16.vlgmr.msra.gmra.mrb[0].mxu0 %vm75_vm8, %v69_v42 }
  0xbc   :  { %652 = vmatpush3.bf16.xpose.msra.mxu0 %v80_v35  ;;  %653 = vmatprep.mubr.msk.bf16.mxu0 %vm742_vm1, %v741_v9 }
  0xbd   :  { %663 = vmatprep.subr.bf16.mxu0 %v741_v9 }
  0xbf   :  { %648 = vmatmul.mubr.msk.bf16.vlgmr.msra.gmra.mrb[0].mxu1 %vm75_vm8, %v69_v42 }
  0xc0   :  { %658 = vmatpush3.bf16.xpose.msra.mxu1 %v212_v45  ;;  %659 = vmatprep.mubr.msk.bf16.mxu1 %vm742_vm1, %v741_v9 }
  0xc3   :  { %654 = vmatmul.mubr.msk.bf16.vlgmr.msra.gmra.mrb[4].mxu0 %vm75_vm8, %v71_v46 }
  0xc4   :  { %664 = vmatpush3.bf16.xpose.msra.mxu0 %v212_v45  ;;  %665 = vmatprep.mubr.msk.bf16.mxu0 %vm742_vm1, %v741_v9 }
  0xc7   :  { %660 = vmatmul.mubr.msk.bf16.vlgmr.msra.gmra.mrb[4].mxu1 %vm75_vm8, %v69_v42 }
  0xcb   :  { %666 = vmatmul.mubr.msk.bf16.vlgmr.msra.gmra.mrb[8].mxu0 %vm75_vm8, %v71_v46 }
 0x18e   :  { %v803_v50 = vpop.f32.mrb[0].mxu0 }
 0x18f   :  { %v643_v52 = vpop.f32.mrb[1].mxu0  ;;  %v306_v53 = vsel %vm295_vm10, %v803_v50, -inf }
 0x190   :  { %307 = vmax.xlane.f32.xlu1 %v306_v53  ;;  %v333_v55 = vrot.slane %v306_v53, 4  ;;  %v119_v56 = vpop.f32.mrb[2].mxu0 }
 0x191   :  { %v644_v57 = vpop.f32.mrb[3].mxu0 }
 0x192   :  { %v334_v58 = vmax.f32 %v306_v53, %v333_v55  ;;  %v159_v59 = vpop.f32.mrb[0].mxu1 }
 0x193   :  { %v811_v60 = vsub.f32 %v159_v59, %v165_v54  ;;  %v649_v61 = vpop.f32.mrb[1].mxu1 }
 0x194   :  { %v335_v62 = vrot.slane %v334_v58, 2  ;;  %v162_v63 = vpop.f32.mrb[2].mxu1 }
 0x195   :  { %v650_v0 = vpop.f32.mrb[3].mxu1  ;;  %v513_v1 = vsel %vm295_vm10, %v811_v60, -inf }
 0x196   :  { %v336_v2 = vmax.f32 %v334_v58, %v335_v62  ;;  %514 = vmax.xlane.f32.xlu0 %v513_v1  ;;  %v204_v3 = vpop.f32.mrb[4].mxu0 }
 0x197   :  { %v210_v4 = vsub.f32 %v204_v3, %v165_v54  ;;  %v655_v5 = vpop.f32.mrb[5].mxu0 }
 0x198   :  { %v337_v6 = vrot.slane %v336_v2, 1  ;;  %v207_v7 = vpop.f32.mrb[6].mxu0  ;;  %v294_v5 = vmul.f32 %v806_v51, %v803_v50 }
 0x199   :  { %v548_v8 = vsel %vm295_vm10, %v210_v4, -inf  ;;  %v656_v9 = vpop.f32.mrb[7].mxu0 }
 0x19a   :  { %v816_v10 = vmax.f32 %v336_v2, %v337_v6  ;;  %v549_v11 = vrot.slane %v548_v8, 4  ;;  %v818_v12 = vpop.f32.mrb[4].mxu1 }
 0x19b   :  { %v661_v13 = vpop.f32.mrb[5].mxu1  ;;  %v380_v14 = vsel %vm295_vm10, %v818_v12, -inf }
 0x19c   :  { %v339_v15 = vsub.f32 %v803_v50, %v816_v10  ;;  %v550_v16 = vmax.f32 %v548_v8, %v549_v11  ;;  %v251_v17 = vpop.f32.mrb[6].mxu1  ;;  %v406_v18 = vrot.slane %v380_v14, 4  ;;  %381 = vmax.xlane.f32.xlu1 %v380_v14 }
 0x19d   :  { %v662_v19 = vpop.f32.mrb[7].mxu1  ;;  %v850_v17 = vsel %vm295_vm10, %v294_v5, 0.0 }
 0x19e   :  { %v340_v20 = vmul.f32 1.442695, %v339_v15  ;;  %v551_v21 = vrot.slane %v550_v16, 2  ;;  %v407_v22 = vmax.f32 %v380_v14, %v406_v18  ;;  %v824_v23 = vpop.f32.mrb[8].mxu0 }
 0x19f   :  { %v667_v24 = vpop.f32.mrb[9].mxu0  ;;  %v452_v25 = vsel %vm295_vm10, %v824_v23, -inf }
 0x1a0   :  { %705 = vpow2.f32 %v340_v20  ;;  %v552_v26 = vmax.f32 %v550_v16, %v551_v21  ;;  %v408_v27 = vrot.slane %v407_v22, 2  ;;  %453 = vmax.xlane.f32.xlu0 %v452_v25  ;;  %v478_v28 = vrot.slane %v452_v25, 4  ;;  %v291_v29 = vpop.f32.mrb[10].mxu0 }
 0x1a1   :  { %v668_v30 = vpop.f32.mrb[11].mxu0  ;;  %v577_v24 = vrot.slane %v850_v17, 4 }
 0x1a2   :  { %v553_v31 = vrot.slane %v552_v26, 1  ;;  %v409_v32 = vmax.f32 %v407_v22, %v408_v27  ;;  %v479_v33 = vmax.f32 %v452_v25, %v478_v28 }
 0x1a4   :  { %v554_v34 = vmax.f32 %v552_v26, %v553_v31  ;;  %v480_v35 = vrot.slane %v479_v33, 2  ;;  %v410_v36 = vrot.slane %v409_v32, 1 }
 0x1a6   :  { %v829_v37 = vmax.f32 %v816_v10, %v554_v34  ;;  %v481_v38 = vmax.f32 %v479_v33, %v480_v35  ;;  %v831_v39 = vmax.f32 %v409_v32, %v410_v36  ;;  %v578_v35 = vadd.f32 %v577_v24, %v850_v17 }
 0x1a8   :  { %v556_v40 = vsub.f32 %v803_v50, %v829_v37  ;;  %v566_v41 = vsub.f32 %v210_v4, %v829_v37  ;;  %v412_v42 = vsub.f32 %v818_v12, %v831_v39  ;;  %v482_v43 = vrot.slane %v481_v38, 1 }
 0x1aa   :  { %v706_v44 = vpop.eup %705  ;;  %v557_v45 = vmul.f32 1.442695, %v556_v40  ;;  %v567_v46 = vmul.f32 1.442695, %v566_v41  ;;  %v413_v47 = vmul.f32 1.442695, %v412_v42  ;;  %v838_v48 = vmax.f32 %v481_v38, %v482_v43 }
 0x1ab   :  { %v342_v52 = vsel %vm295_vm10, %v706_v44, 0.0  ;;  %v579_v43 = vrot.slane %v578_v35, 2 }
 0x1ac   :  { %707 = vpow2.f32 %v557_v45  ;;  %v343_v53 = vrot.slane %v342_v52, 4  ;;  %v484_v54 = vsub.f32 %v824_v23, %v838_v48 }
 0x1ad   :  { %709 = vpow2.f32 %v567_v46  ;;  %v580_v44 = vadd.f32 %v579_v43, %v578_v35 }
 0x1ae   :  { %v344_v55 = vadd.f32 %v343_v53, %v342_v52  ;;  %711 = vpow2.f32 %v413_v47  ;;  %v485_v56 = vmul.f32 1.442695, %v484_v54 }
 0x1af   :  { %v581_v46 = vrot.slane %v580_v44, 1 }
 0x1b0   :  { %v345_v57 = vrot.slane %v344_v55, 2  ;;  %713 = vpow2.f32 %v485_v56 }
 0x1b2   :  { %v346_v58 = vadd.f32 %v345_v57, %v344_v55  ;;  %v582_v57 = vadd.f32 %v581_v46, %v580_v44 }
 0x1b4   :  { %v347_v59 = vrot.slane %v346_v58, 1 }
 0x1b6   :  { %v708_v61 = vpop.eup %707  ;;  %v348_v62 = vadd.f32 %v347_v59, %v346_v58 }
 0x1b7   :  { %v710_v63 = vpop.eup %709  ;;  %v559_v0 = vsel %vm295_vm10, %v708_v61, 0.0 }
 0x1b8   :  { %v712_v1 = vpop.eup %711  ;;  %v569_v2 = vsel %vm295_vm10, %v710_v63, 0.0  ;;  %715 = vlog2.f32 %v348_v62  ;;  %v560_v3 = vrot.slane %v559_v0, 4 }
 0x1b9   :  { %v570_v4 = vrot.slane %v569_v2, 4  ;;  %v415_v6 = vsel %vm295_vm10, %v712_v1, 0.0 }
 0x1ba   :  { %v714_v7 = vpop.eup %713  ;;  %v416_v8 = vrot.slane %v415_v6, 4  ;;  %v561_v9 = vadd.f32 %v560_v3, %v559_v0 }
 0x1bb   :  { %v571_v11 = vadd.f32 %v570_v4, %v569_v2  ;;  %v487_v13 = vsel %vm295_vm10, %v714_v7, 0.0 }
 0x1bc   :  { %v417_v14 = vadd.f32 %v416_v8, %v415_v6  ;;  %v488_v15 = vrot.slane %v487_v13, 4  ;;  %v562_v16 = vrot.slane %v561_v9, 2 }
 0x1bd   :  { %v572_v18 = vrot.slane %v571_v11, 2 }
 0x1be   :  { %v418_v19 = vrot.slane %v417_v14, 2  ;;  %v489_v20 = vadd.f32 %v488_v15, %v487_v13  ;;  %v563_v21 = vadd.f32 %v562_v16, %v561_v9 }
 0x1bf   :  { %v573_v22 = vadd.f32 %v572_v18, %v571_v11 }
 0x1c0   :  { %v419_v25 = vadd.f32 %v418_v19, %v417_v14  ;;  %v490_v26 = vrot.slane %v489_v20, 2  ;;  %v564_v27 = vrot.slane %v563_v21, 1 }
 0x1c1   :  { %v574_v28 = vrot.slane %v573_v22, 1 }
 0x1c2   :  { %v716_v29 = vpop.eup %715  ;;  %v420_v30 = vrot.slane %v419_v25, 1  ;;  %v491_v31 = vadd.f32 %v490_v26, %v489_v20  ;;  %v565_v32 = vadd.f32 %v564_v27, %v563_v21  ;;  %v369_v21 = vmul.f32 %v806_v51, %v818_v12 }
 0x1c3   :  { %v350_v33 = vmul.f32 0.6931472, %v716_v29  ;;  %v575_v34 = vadd.f32 %v574_v28, %v573_v22 }
 0x1c4   :  { %v421_v36 = vadd.f32 %v420_v30, %v419_v25  ;;  %v492_v38 = vrot.slane %v491_v31, 1  ;;  %v370_v22 = vsel %vm295_vm10, %v369_v21, 0.0  ;;  %v441_v25 = vmul.f32 %v806_v51, %v824_v23 }
 0x1c5   :  { %v351_v40 = vadd.f32 %v350_v33, %v816_v10  ;;  %v576_v41 = vadd.f32 %v575_v34, %v565_v32 }
 0x1c6   :  { %717 = vlog2.f32 %v421_v36  ;;  %v493_v42 = vadd.f32 %v492_v38, %v491_v31  ;;  %v442_v27 = vsel %vm295_vm10, %v441_v25, 0.0 }
 0x1c7   :  { %719 = vlog2.f32 %v576_v41  ;;  %v353_v24 = vsel %vm352_vm11, %v351_v40, 0.0 }
 0x1c8   :  { %721 = vlog2.f32 %v493_v42 }
 0x1d0   :  { %v718_v45 = vpop.eup %717 }
 0x1d1   :  { %v720_v47 = vpop.eup %719  ;;  %v423_v52 = vmul.f32 0.6931472, %v718_v45 }
 0x1d2   :  { %v722_v53 = vpop.eup %721  ;;  %v584_v54 = vmul.f32 0.6931472, %v720_v47 }
 0x1d3   :  { %v424_v55 = vadd.f32 %v423_v52, %v831_v39  ;;  %v495_v56 = vmul.f32 0.6931472, %v722_v53 }
 0x1d4   :  { %v585_v58 = vadd.f32 %v584_v54, %v829_v37 }
 0x1d5   :  { %v496_v10 = vadd.f32 %v495_v56, %v838_v48  ;;  %v425_v26 = vsel %vm352_vm11, %v424_v55, 0.0 }
 0x1d6   :  { %v586_v59 = vsub.f32 %v585_v58, %v582_v57 }
 0x1d8   :  { %v859_v61 = vsel %vm352_vm11, %v586_v59, 0.0 }
 0x21d   :  { %v308_v62 = vpop.xlane.xlu1 %307 }
 0x21e   :  { %v309_v63 = vsub.f32 %v803_v50, %v308_v62 }
 0x220   :  { %v310_v0 = vmul.f32 1.442695, %v309_v63 }
 0x222   :  { %723 = vpow2.f32 %v310_v0 }
 0x223   :  { %v515_v1 = vpop.xlane.xlu0 %514 }
 0x224   :  { %v862_v2 = vmax.f32 %v308_v62, %v515_v1 }
 0x226   :  { %v517_v39 = vsub.f32 %v803_v50, %v862_v2  ;;  %v523_v37 = vsub.f32 %v811_v60, %v862_v2 }
 0x228   :  { %v518_v48 = vmul.f32 1.442695, %v517_v39  ;;  %v524_v3 = vmul.f32 1.442695, %v523_v37 }
 0x229   :  { %v868_v4 = vpop.xlane.xlu1 %381 }
 0x22a   :  { %725 = vpow2.f32 %v518_v48  ;;  %v383_v5 = vsub.f32 %v818_v12, %v868_v4  ;;  %v497_v12 = vsel %vm352_vm11, %v496_v10, 0.0 }
 0x22b   :  { %727 = vpow2.f32 %v524_v3 }
 0x22c   :  { %v724_v6 = vpop.eup %723  ;;  %v384_v7 = vmul.f32 1.442695, %v383_v5 }
 0x22d   :  { %v872_v8 = vpop.xlane.xlu0 %453  ;;  %v312_v9 = vsel %vm295_vm10, %v724_v6, 0.0 }
 0x22e   :  { %729 = vpow2.f32 %v384_v7  ;;  %v455_v50 = vsub.f32 %v824_v23, %v872_v8  ;;  %313 = vadd.xlane.f32.xlu1 %v312_v9 }
 0x230   :  { %v456_v60 = vmul.f32 1.442695, %v455_v50 }
 0x232   :  { %731 = vpow2.f32 %v456_v60 }
 0x234   :  { %v726_v11 = vpop.eup %725 }
 0x235   :  { %v728_v13 = vpop.eup %727  ;;  %v520_v14 = vsel %vm295_vm10, %v726_v11, 0.0 }
 0x236   :  { %521 = vadd.xlane.f32.xlu1 %v520_v14  ;;  %v526_v15 = vsel %vm295_vm10, %v728_v13, 0.0 }
 0x237   :  { %527 = vadd.xlane.f32.xlu0 %v526_v15 }
 0x238   :  { %v730_v16 = vpop.eup %729 }
 0x239   :  { %v386_v18 = vsel %vm295_vm10, %v730_v16, 0.0 }
 0x23b   :  { %387 = vadd.xlane.f32.xlu0 %v386_v18 }
 0x23c   :  { %v732_v19 = vpop.eup %731 }
 0x23d   :  { %v458_v20 = vsel %vm295_vm10, %v732_v19, 0.0 }
 0x23e   :  { %459 = vadd.xlane.f32.xlu1 %v458_v20 }
 0x23f   :  { %297 = vadd.xlane.f32.xlu0 %v850_v17 }
 0x242   :  { %371 = vadd.xlane.f32.xlu1 %v370_v22 }
 0x243   :  { %354 = vadd.xlane.f32.xlu0 %v353_v24 }
 0x246   :  { %426 = vadd.xlane.f32.xlu1 %v425_v26 }
 0x247   :  { %443 = vadd.xlane.f32.xlu0 %v442_v27 }
 0x24b   :  { %498 = vadd.xlane.f32.xlu0 %v497_v12 }
 0x2bb   :  { %v314_v28 = vpop.xlane.xlu1 %313 }
 0x2bc   :  { %733 = vlog2.f32 %v314_v28 }
 0x2c3   :  { %v522_v17 = vpop.xlane.xlu1 %521 }
 0x2c4   :  { %v528_v29 = vpop.xlane.xlu0 %527 }
 0x2c5   :  { %v529_v30 = vadd.f32 %v528_v29, %v522_v17 }
 0x2c6   :  { %v734_v31 = vpop.eup %733 }
 0x2c7   :  { %v316_v32 = vmul.f32 0.6931472, %v734_v31  ;;  %735 = vlog2.f32 %v529_v30 }
 0x2c8   :  { %v388_v33 = vpop.xlane.xlu0 %387 }
 0x2c9   :  { %737 = vlog2.f32 %v388_v33  ;;  %v317_v51 = vadd.f32 %v316_v32, %v308_v62 }
 0x2cb   :  { %v460_v23 = vpop.xlane.xlu1 %459  ;;  %v319_v34 = vsel %vm318_vm12, %v317_v51, 0.0 }
 0x2cc   :  { %739 = vlog2.f32 %v460_v23  ;;  %v298_v35 = vpop.xlane.xlu0 %297  ;;  %320 = vadd.xlane.f32.xlu1 %v319_v34 }
 0x2cd   :  { %v299_v36 = vrot.slane %v298_v35, 4 }
 0x2cf   :  { %v300_v38 = vadd.f32 %v299_v36, %v298_v35  ;;  %v372_v63 = vpop.xlane.xlu1 %371 }
 0x2d0   :  { %v355_v62 = vpop.xlane.xlu0 %354  ;;  %v373_v1 = vrot.slane %v372_v63, 4 }
 0x2d1   :  { %v736_v40 = vpop.eup %735  ;;  %v301_v41 = vrot.slane %v300_v38, 2  ;;  %v356_v0 = vrot.slane %v355_v62, 4 }
 0x2d2   :  { %v531_v43 = vmul.f32 0.6931472, %v736_v40  ;;  %v374_v37 = vadd.f32 %v373_v1, %v372_v63 }
 0x2d3   :  { %v738_v42 = vpop.eup %737  ;;  %v302_v44 = vadd.f32 %v301_v41, %v300_v38  ;;  %v427_v39 = vpop.xlane.xlu1 %426 }
 0x2d4   :  { %v390_v45 = vmul.f32 0.6931472, %v738_v42  ;;  %v532_v55 = vadd.f32 %v531_v43, %v862_v2  ;;  %v357_v2 = vadd.f32 %v356_v0, %v355_v62  ;;  %v444_v48 = vpop.xlane.xlu0 %443  ;;  %v375_v5 = vrot.slane %v374_v37, 2 }
 0x2d5   :  { %v303_v46 = vrot.slane %v302_v44, 1  ;;  %v428_v9 = vrot.slane %v427_v39, 4  ;;  %v445_v11 = vrot.slane %v444_v48, 4 }
 0x2d6   :  { %v740_v47 = vpop.eup %739  ;;  %v391_v52 = vadd.f32 %v390_v45, %v868_v4  ;;  %v533_v10 = vsub.f32 %v532_v55, %v298_v35  ;;  %v358_v3 = vrot.slane %v357_v2, 2  ;;  %v376_v60 = vadd.f32 %v375_v5, %v374_v37 }
 0x2d7   :  { %v462_v53 = vmul.f32 0.6931472, %v740_v47  ;;  %v304_v54 = vadd.f32 %v303_v46, %v302_v44  ;;  %v429_v16 = vadd.f32 %v428_v9, %v427_v39  ;;  %v446_v20 = vadd.f32 %v445_v11, %v444_v48 }
 0x2d8   :  { %v392_v56 = vsel %vm318_vm12, %v391_v52, 0.0  ;;  %v534_v59 = vsel %vm318_vm12, %v533_v10, 0.0  ;;  %v499_v50 = vpop.xlane.xlu0 %498  ;;  %v377_v19 = vrot.slane %v376_v60, 1 }
 0x2d9   :  { %669 = vpush %v304_v54  ;;  %393 = vadd.xlane.f32.xlu0 %v392_v56  ;;  %v463_v57 = vadd.f32 %v462_v53, %v872_v8  ;;  %v359_v8 = vadd.f32 %v358_v3, %v357_v2  ;;  %v500_v14 = vrot.slane %v499_v50, 4  ;;  %v430_v25 = vrot.slane %v429_v16, 2 }
 0x2da   :  { %v378_v27 = vadd.f32 %v377_v19, %v376_v60  ;;  %v447_v12 = vrot.slane %v446_v20, 2 }
 0x2db   :  { %v464_v58 = vsel %vm318_vm12, %v463_v57, 0.0  ;;  %v360_v15 = vrot.slane %v359_v8, 1  ;;  %v501_v22 = vadd.f32 %v500_v14, %v499_v50  ;;  %v431_v33 = vadd.f32 %v430_v25, %v429_v16 }
 0x2dc   :  { %465 = vadd.xlane.f32.xlu1 %v464_v58  ;;  %v448_v34 = vadd.f32 %v447_v12, %v446_v20 }
 0x2dd   :  { %588 = vadd.xlane.f32.xlu0 %v859_v61  ;;  %v361_v24 = vadd.f32 %v360_v15, %v359_v8  ;;  %v502_v17 = vrot.slane %v501_v22, 2  ;;  %v432_v44 = vrot.slane %v431_v33, 1 }
 0x2de   :  { %v449_v47 = vrot.slane %v448_v34, 1 }
 0x2df   :  { %v503_v41 = vadd.f32 %v502_v17, %v501_v22  ;;  %v433_v58 = vadd.f32 %v432_v44, %v431_v33 }
 0x2e0   :  { %535 = vadd.xlane.f32.xlu1 %v534_v59  ;;  %v450_v59 = vadd.f32 %v449_v47, %v448_v34 }
 0x2e1   :  { %v504_v56 = vrot.slane %v503_v41, 1 }
 0x2e3   :  { %v505_v0 = vadd.f32 %v504_v56, %v503_v41 }
 0x30a   :  { %s670_s0 = spop %669 }
 0x359   :  { %v321_v4 = vpop.xlane.xlu1 %320 }
 0x35a   :  { %v322_v6 = vrot.slane %v321_v4, 4 }
 0x35c   :  { %v323_v7 = vadd.f32 %v322_v6, %v321_v4 }
 0x35e   :  { %v324_v61 = vrot.slane %v323_v7, 2 }
 0x360   :  { %v325_v13 = vadd.f32 %v324_v61, %v323_v7 }
 0x362   :  { %v326_v18 = vrot.slane %v325_v13, 1 }
 0x364   :  { %v327_v21 = vadd.f32 %v326_v18, %v325_v13 }
 0x366   :  { %v394_v26 = vpop.xlane.xlu0 %393  ;;  %671 = vpush %v327_v21 }
 0x367   :  { %v395_v28 = vrot.slane %v394_v26, 4  ;;  %673 = vpush %v361_v24 }
 0x368   :  { %675 = vpush %v378_v27 }
 0x369   :  { %v396_v29 = vadd.f32 %v395_v28, %v394_v26  ;;  %v466_v30 = vpop.xlane.xlu1 %465 }
 0x36a   :  { %v467_v31 = vrot.slane %v466_v30, 4  ;;  %v589_v32 = vpop.xlane.xlu0 %588 }
 0x36b   :  { %v397_v51 = vrot.slane %v396_v29, 2  ;;  %v590_v23 = vrot.slane %v589_v32, 4 }
 0x36c   :  { %v468_v35 = vadd.f32 %v467_v31, %v466_v30 }
 0x36d   :  { %v591_v36 = vadd.f32 %v590_v23, %v589_v32  ;;  %v536_v38 = vpop.xlane.xlu1 %535  ;;  %v398_v40 = vadd.f32 %v397_v51, %v396_v29 }
 0x36e   :  { %v469_v42 = vrot.slane %v468_v35, 2  ;;  %v537_v43 = vrot.slane %v536_v38, 4 }
 0x36f   :  { %v592_v45 = vrot.slane %v591_v36, 2  ;;  %v399_v46 = vrot.slane %v398_v40, 1 }
 0x370   :  { %v538_v52 = vadd.f32 %v537_v43, %v536_v38  ;;  %v470_v53 = vadd.f32 %v469_v42, %v468_v35 }
 0x371   :  { %v593_v54 = vadd.f32 %v592_v45, %v591_v36  ;;  %v400_v55 = vadd.f32 %v399_v46, %v398_v40 }
 0x372   :  { %v539_v57 = vrot.slane %v538_v52, 2  ;;  %v471_v10 = vrot.slane %v470_v53, 1 }
 0x373   :  { %677 = vpush %v400_v55  ;;  %v594_v1 = vrot.slane %v593_v54, 1 }
 0x374   :  { %v540_v62 = vadd.f32 %v539_v57, %v538_v52  ;;  %679 = vpush %v433_v58  ;;  %v472_v63 = vadd.f32 %v471_v10, %v470_v53 }
 0x375   :  { %681 = vpush %v450_v59  ;;  %v595_v37 = vadd.f32 %v594_v1, %v593_v54 }
 0x376   :  { %683 = vpush %v472_v63  ;;  %v541_v2 = vrot.slane %v540_v62, 1 }
 0x377   :  { %685 = vpush %v505_v0 }
 0x378   :  { %v542_v39 = vadd.f32 %v541_v2, %v540_v62 }
 0x37a   :  { %687 = vpush %v542_v39 }
 0x37b   :  { %689 = vpush %v595_v37 }
 0x397   :  { %s672_s1 = spop %671 }
 0x398   :  { %s674_s2 = spop %673  ;;  %s329_s18 = ssub.f32 %s672_s1, %s670_s0 }
 0x399   :  { %s363_s19 = ssub.f32 %s674_s2, %s670_s0  ;;  %s676_s22 = spop %675 }
 0x39a   :  { %s332_s20 = smul.f32 0.5, %s329_s18 }
 0x39b   :  { %s366_s21 = smul.f32 0.5, %s363_s19 }
 0x39d   :  { %s367_s23 = sadd.f32 %s366_s21, %s332_s20 }
 0x39f   :  { %s368_s7 = smul.f32 0.5, %s367_s23 }
 0x3a1   :  { %v603_v48 = vstv %s368_s7 }
 0x3a2   :  { %v604_v5 = vsel %vm602_vm13, %v603_v48, 0.0 }
 0x3a4   :  { %s678_s24 = spop %677 }
 0x3a5   :  { %s402_s25 = ssub.f32 %s678_s24, %s676_s22  ;;  %s680_s26 = spop %679 }
 0x3a6   :  { %s435_s27 = ssub.f32 %s680_s26, %s676_s22  ;;  %s682_s28 = spop %681 }
 0x3a7   :  { %s684_s29 = spop %683  ;;  %s405_s30 = smul.f32 0.5, %s402_s25 }
 0x3a8   :  { %s474_s4 = ssub.f32 %s684_s29, %s682_s28  ;;  %s438_s5 = smul.f32 0.5, %s435_s27 }
 0x3a9   :  { %s686_s6 = spop %685 }
 0x3aa   :  { %s507_s8 = ssub.f32 %s686_s6, %s682_s28  ;;  %s477_s10 = smul.f32 0.5, %s474_s4 }
 0x3ab   :  { %s688_s9 = spop %687  ;;  %s439_s12 = sadd.f32 %s438_s5, %s405_s30 }
 0x3ac   :  { %s690_s11 = spop %689  ;;  %s510_s13 = smul.f32 0.5, %s507_s8 }
 0x3ad   :  { %s546_s14 = smul.f32 0.5, %s688_s9 }
 0x3ae   :  { %s599_s15 = smul.f32 0.5, %s690_s11  ;;  %s511_s16 = sadd.f32 %s510_s13, %s477_s10 }
 0x3af   :  { %s547_s17 = smul.f32 0.5, %s546_s14 }
 0x3b0   :  { %s440_s0 = smul.f32 0.5, %s439_s12 }
 0x3b1   :  { %s600_s1 = smul.f32 0.5, %s599_s15 }
 0x3b2   :  { %s512_s2 = smul.f32 0.5, %s511_s16  ;;  %v611_v3 = vstv %s440_s0 }
 0x3b3   :  { %s601_s18 = sadd.f32 %s600_s1, %s547_s17  ;;  %v612_v9 = vsel %vm610_vm15, %v611_v3, 0.0 }
 0x3b4   :  { %v615_v7 = vstv %s512_s2 }
 0x3b5   :  { %v607_v4 = vstv %s601_s18  ;;  %v616_v61 = vsel %vm614_vm0, %v615_v7, 0.0 }
 0x3b6   :  { %v608_v6 = vsel %vm606_vm14, %v607_v4, 0.0 }
 0x3b7   :  { %v609_v8 = vadd.f32 %v608_v6, %v604_v5 }
 0x3b9   :  { %v613_v50 = vadd.f32 %v612_v9, %v609_v8 }
 0x3bb   :  { %v617_v60 = vadd.f32 %v616_v61, %v613_v50 }
 0x3bd   :  { %618 = vst [vmem:[%s909_s3] sm:$0x1] %v617_v60 }

// kernel: abstract_loss_forward.3
= control target key start
LH: loop header
LB: loop body
LE: loop exit
PB: predicated region body
PF: predicated region fallthrough
CT: control target
= control target key end

     0   :  { %vm24_vm0 = vcmask 261120   ;;  %v3860_v3 = vmov 0   ;;  %s3854_s1 = inlined_call_operand.vmem [shape: f32[128,32], index: 1, kind: input, shape index: {}]   ;;  %s3855_s0 = inlined_call_operand.vmem [shape: f32[24,32], index: 0, kind: input, shape index: {}]   ;;  %s3856_s2 = inlined_call_operand.vmem [shape: s32[24,1], index: 2, kind: input, shape index: {}]   ;;  %s3857_s3 = inlined_call_operand.vmem [shape: s32[1,128], index: 3, kind: input, shape index: {}]   ;;  %s3858_s4 = inlined_call_operand.vmem [shape: f32[1,128], index: 4, kind: output, shape index: {}]  }
   0x1   :  { %v2585_v0 = vld [vmem:[%s3854_s1 + $0x10] sm:$0xff]  ;;  %v2590_v1 = vld [vmem:[%s3854_s1] sm:$0xff]  ;;  %v2595_v2 = vld [vmem:[%s3854_s1 + $0x18] sm:$0xff]  ;;  %2104 = vset.pattern.permute.xlu1 %v3860_v3  ;;  %2105 = vset.pattern.permute.xlu0 %v3860_v3 }
   0x2   :  { %v82_v4 = vmul.f32 %v2585_v0, %v2585_v0  ;;  %v80_v5 = vmul.f32 %v2590_v1, %v2590_v1  ;;  %v83_v6 = vmul.f32 %v2595_v2, %v2595_v2  ;;  %v2608_v7 = vld [vmem:[%s3854_s1 + $0x8] sm:$0xff]  ;;  %v2620_v10 = vld [vmem:[%s3854_s1 + $0x20] sm:$0xff]  ;;  %v2633_v17 = vld [vmem:[%s3854_s1 + $0x38] sm:$0xff] }
   0x3   :  { %v81_v8 = vmul.f32 %v2608_v7, %v2608_v7  ;;  %v2615_v9 = vld [vmem:[%s3854_s1 + $0x28] sm:$0xff]  ;;  %v84_v16 = vmul.f32 %v2620_v10, %v2620_v10  ;;  %v2638_v18 = vld [vmem:[%s3854_s1 + $0x30] sm:$0xff]  ;;  %v87_v21 = vmul.f32 %v2633_v17, %v2633_v17  ;;  %v2654_v24 = vld [vmem:[%s3854_s1 + $0x40] sm:$0xff] }
   0x4   :  { %v102_v11 = vsel %vm24_vm0, %v82_v4, 0.0  ;;  %v96_v12 = vsel %vm24_vm0, %v80_v5, 0.0  ;;  %v105_v13 = vsel %vm24_vm0, %v83_v6, 0.0  ;;  %v85_v15 = vmul.f32 %v2615_v9, %v2615_v9  ;;  %v2649_v23 = vld [vmem:[%s3854_s1 + $0x48] sm:$0xff]  ;;  %v2665_v29 = vld [vmem:[%s3854_s1 + $0x58] sm:$0xff]  ;;  %v2670_v30 = vld [vmem:[%s3854_s1 + $0x50] sm:$0xff] }
   0x5   :  { %103 = vadd.xlane.f32.xlu1 %v102_v11  ;;  %97 = vadd.xlane.f32.xlu0 %v96_v12  ;;  %v99_v14 = vsel %vm24_vm0, %v81_v8, 0.0  ;;  %v108_v20 = vsel %vm24_vm0, %v84_v16, 0.0  ;;  %v86_v22 = vmul.f32 %v2638_v18, %v2638_v18  ;;  %v117_v25 = vsel %vm24_vm0, %v87_v21, 0.0  ;;  %v2681_v35 = vld [vmem:[%s3854_s1 + $0x68] sm:$0xff]  ;;  %v2686_v36 = vld [vmem:[%s3854_s1 + $0x60] sm:$0xff]  ;;  %v2697_v41 = vld [vmem:[%s3854_s1 + $0x78] sm:$0xff] }
   0x6   :  { %v111_v19 = vsel %vm24_vm0, %v85_v15, 0.0  ;;  %v89_v27 = vmul.f32 %v2649_v23, %v2649_v23  ;;  %v88_v28 = vmul.f32 %v2654_v24, %v2654_v24  ;;  %v91_v33 = vmul.f32 %v2665_v29, %v2665_v29  ;;  %v2702_v42 = vld [vmem:[%s3854_s1 + $0x70] sm:$0xff]  ;;  %v2713_v47 = vld [vmem:[%s3855_s0 + $0x8] sm:$0xff]  ;;  %v2718_v48 = vld [vmem:[%s3855_s0] sm:$0xff] }
   0x7   :  { %v114_v26 = vsel %vm24_vm0, %v86_v22, 0.0  ;;  %v90_v34 = vmul.f32 %v2670_v30, %v2670_v30  ;;  %v93_v39 = vmul.f32 %v2681_v35, %v2681_v35  ;;  %v92_v40 = vmul.f32 %v2686_v36, %v2686_v36  ;;  %v2729_v53 = vld [vmem:[%s3855_s0 + $0x10] sm:$0xff]  ;;  %v2739_v58 = vld [vmem:[%s3856_s2] sm:$0xff]  ;;  %v2752_v61 = vld [vmem:[%s3856_s2 + $0x8] sm:$0xff] }
   0x8   :  { %v123_v31 = vsel %vm24_vm0, %v89_v27, 0.0  ;;  %v120_v32 = vsel %vm24_vm0, %v88_v28, 0.0  ;;  %v129_v37 = vsel %vm24_vm0, %v91_v33, 0.0  ;;  %v95_v45 = vmul.f32 %v2697_v41, %v2697_v41  ;;  %v2745_v59 = vld [vmem:[%s3856_s2 + $0x10] sm:$0xff] }
   0x9   :  { %106 = vadd.xlane.f32.xlu1 %v105_v13  ;;  %100 = vadd.xlane.f32.xlu0 %v99_v14  ;;  %v126_v38 = vsel %vm24_vm0, %v90_v34, 0.0  ;;  %v135_v43 = vsel %vm24_vm0, %v93_v39, 0.0  ;;  %v132_v44 = vsel %vm24_vm0, %v92_v40, 0.0  ;;  %v94_v46 = vmul.f32 %v2702_v42, %v2702_v42 }
   0xa   :  { %v141_v49 = vsel %vm24_vm0, %v95_v45, 0.0  ;;  %v22_v51 = vmul.f32 %v2713_v47, %v2713_v47  ;;  %v21_v52 = vmul.f32 %v2718_v48, %v2718_v48  ;;  %v23_v56 = vmul.f32 %v2729_v53, %v2729_v53 }
   0xb   :  { %v138_v50 = vsel %vm24_vm0, %v94_v46, 0.0  ;;  %vm446_vm1 = vcmp.eq.s32.totalorder %v2739_v58, 0  ;;  %vm448_vm2 = vcmp.eq.s32.totalorder %v2745_v59, 0  ;;  %vm447_vm3 = vcmp.eq.s32.totalorder %v2752_v61, 0 }
   0xc   :  { %v28_v54 = vsel %vm24_vm0, %v22_v51, 0.0  ;;  %v25_v55 = vsel %vm24_vm0, %v21_v52, 0.0  ;;  %v31_v57 = vsel %vm24_vm0, %v23_v56, 0.0  ;;  %v450_v60 = vsel %vm446_vm1, 1, %v3860_v3 }
   0xd   :  { %112 = vadd.xlane.f32.xlu1 %v111_v19  ;;  %109 = vadd.xlane.f32.xlu0 %v108_v20  ;;  %v452_v62 = vsel %vm448_vm2, 1, %v3860_v3  ;;  %v451_v63 = vsel %vm447_vm3, 1, %v3860_v3  ;;  %vm400_vm4 = vcmp.ge.s32.totalorder %v2752_v61, 1  ;;  %v3859_v16 = vlaneseq  ;;  %v2782_v19 = vld [vmem:[%s3857_s3] sm:$0x1]  ;;  %s2552_s3 = smov 1  }
   0xe   :  { %v404_v4 = vsel %vm400_vm4, 1, %v3860_v3  ;;  %vm449_vm5 = vcmp.eq.s32.totalorder %v2782_v19, 0 }
   0xf   :  { %v2790_v22 = vshrl.u32 %v3859_v16, 7  ;;  %v465_v28 = vsel %vm449_vm5, 1, %v3860_v3 }
  0x11   :  { %118 = vadd.xlane.f32.xlu1 %v117_v25  ;;  %115 = vadd.xlane.f32.xlu0 %v114_v26  ;;  %v2801_v27 = vsub.s32 0, %v2790_v22 }
  0x15   :  { %124 = vadd.xlane.f32.xlu1 %v123_v31  ;;  %121 = vadd.xlane.f32.xlu0 %v120_v32 }
  0x19   :  { %130 = vadd.xlane.f32.xlu1 %v129_v37  ;;  %127 = vadd.xlane.f32.xlu0 %v126_v38  ;;  %v469_v37 = vrot.slane %v465_v28, %v2801_v27 }
  0x1b   :  { %vm2819_vm8 = vcmp.eq.s32.totalorder %v469_v37, 1 }
  0x1d   :  { %136 = vadd.xlane.f32.xlu1 %v135_v43  ;;  %133 = vadd.xlane.f32.xlu0 %v132_v44 }
  0x21   :  { %142 = vadd.xlane.f32.xlu1 %v141_v49  ;;  %139 = vadd.xlane.f32.xlu0 %v138_v50 }
  0x25   :  { %29 = vadd.xlane.f32.xlu1 %v28_v54  ;;  %26 = vadd.xlane.f32.xlu0 %v25_v55 }
  0x29   :  { %32 = vadd.xlane.f32.xlu0 %v31_v57 }
  0x36   :  { %454 = vperm.xlu1 %2104, %v450_v60  }
  0x3a   :  { %460 = vperm.xlu1 %2104, %v452_v62  }
  0x3f   :  { %457 = vperm.xlu0 %2105, %v451_v63  }
  0x43   :  { %410 = vperm.xlu0 %2105, %v404_v4  }
  0x47   :  { %428 = vperm.xlu0 %2105, %v2739_v58  }
  0x4b   :  { %434 = vperm.xlu0 %2105, %v2745_v59  }
  0x92   :  { %v2761_v5 = vpop.xlane.xlu1 %103  ;;  %v2763_v6 = vpop.xlane.xlu0 %97 }
  0x93   :  { %2106 = vrsqrt.f32 %v2761_v5  ;;  %vm160_vm6 = vcmp.eq.f32.partialorder %v2761_v5, inf  ;;  %vm162_vm7 = vcmp.eq.f32.partialorder %v2761_v5, 0.0  ;;  %v163_v50 = vand.u32 2147483648, %v2761_v5 }
  0x94   :  { %vm146_vm9 = vcmp.eq.f32.partialorder %v2763_v6, inf  ;;  %vm148_vm10 = vcmp.eq.f32.partialorder %v2763_v6, 0.0  ;;  %v149_v55 = vand.u32 2147483648, %v2763_v6 }
  0x96   :  { %v2765_v8 = vpop.xlane.xlu1 %106  ;;  %v2767_v11 = vpop.xlane.xlu0 %100 }
  0x97   :  { %2108 = vrsqrt.f32 %v2765_v8  ;;  %vm167_vm11 = vcmp.eq.f32.partialorder %v2765_v8, inf  ;;  %vm169_vm12 = vcmp.eq.f32.partialorder %v2765_v8, 0.0  ;;  %v170_v57 = vand.u32 2147483648, %v2765_v8 }
  0x98   :  { %2110 = vrsqrt.f32 %v2763_v6  ;;  %vm153_vm13 = vcmp.eq.f32.partialorder %v2767_v11, inf  ;;  %vm155_vm14 = vcmp.eq.f32.partialorder %v2767_v11, 0.0  ;;  %v156_v62 = vand.u32 2147483648, %v2767_v11 }
  0x99   :  { %2112 = vrsqrt.f32 %v2767_v11 }
  0x9a   :  { %v2769_v12 = vpop.xlane.xlu1 %112  ;;  %v2771_v13 = vpop.xlane.xlu0 %109 }
  0x9b   :  { %2114 = vrsqrt.f32 %v2769_v12  ;;  %vm181_vm15 = vcmp.eq.f32.partialorder %v2769_v12, inf  ;;  %vm183_vm1 = vcmp.eq.f32.partialorder %v2769_v12, 0.0  ;;  %vm174_vm2 = vcmp.eq.f32.partialorder %v2771_v13, inf }
  0x9c   :  { %2116 = vrsqrt.f32 %v2771_v13  ;;  %vm176_vm3 = vcmp.eq.f32.partialorder %v2771_v13, 0.0 }
  0x9d   :  { %v2107_v31 = vpop.eup %2106 }
  0x9e   :  { %v2773_v14 = vpop.xlane.xlu1 %118  ;;  %v2775_v15 = vpop.xlane.xlu0 %115  ;;  %v159_v39 = vmul.f32 %v2107_v31, %v2761_v5 }
  0x9f   :  { %2118 = vrsqrt.f32 %v2773_v14 }
  0xa0   :  { %2120 = vrsqrt.f32 %v2775_v15  ;;  %v161_v54 = vsel %vm160_vm6, %v2761_v5, %v159_v39  ;;  %v177_v5 = vand.u32 2147483648, %v2771_v13  ;;  %vm195_vm6 = vcmp.eq.f32.partialorder %v2773_v14, inf }
  0xa1   :  { %v2109_v32 = vpop.eup %2108  ;;  %v164_v31 = vsel %vm162_vm7, %v163_v50, %v161_v54  ;;  %vm188_vm7 = vcmp.eq.f32.partialorder %v2775_v15, inf }
  0xa2   :  { %v2785_v20 = vpop.xlane.xlu1 %124  ;;  %v2787_v21 = vpop.xlane.xlu0 %121  ;;  %v166_v40 = vmul.f32 %v2109_v32, %v2765_v8 }
  0xa3   :  { %v2111_v38 = vpop.eup %2110  ;;  %2122 = vrsqrt.f32 %v2785_v20 }
  0xa4   :  { %v2113_v43 = vpop.eup %2112  ;;  %v145_v51 = vmul.f32 %v2111_v38, %v2763_v6  ;;  %v168_v56 = vsel %vm167_vm11, %v2765_v8, %v166_v40  ;;  %v184_v38 = vand.u32 2147483648, %v2769_v12  ;;  %v258_v40 = vmax.f32 %v164_v31, 1e-12 }
  0xa5   :  { %v2115_v49 = vpop.eup %2114  ;;  %v152_v60 = vmul.f32 %v2113_v43, %v2767_v11  ;;  %v171_v37 = vsel %vm169_vm12, %v170_v57, %v168_v56  ;;  %vm190_vm11 = vcmp.eq.f32.partialorder %v2775_v15, 0.0  ;;  %vm209_vm12 = vcmp.eq.f32.partialorder %v2785_v20, inf }
  0xa6   :  { %v2796_v25 = vpop.xlane.xlu1 %130  ;;  %v2798_v26 = vpop.xlane.xlu0 %127  ;;  %v180_v63 = vmul.f32 %v2115_v49, %v2769_v12  ;;  %v147_v8 = vsel %vm146_vm9, %v2763_v6, %v145_v51  ;;  %vm197_vm9 = vcmp.eq.f32.partialorder %v2773_v14, 0.0 }
  0xa7   :  { %v2117_v52 = vpop.eup %2116  ;;  %v154_v39 = vsel %vm153_vm13, %v2767_v11, %v152_v60  ;;  %v150_v50 = vsel %vm148_vm10, %v149_v55, %v147_v8  ;;  %vm482_vm10 = vcmp.lt.s32.totalorder %v2790_v22, 1  ;;  %vm202_vm13 = vcmp.eq.f32.partialorder %v2787_v21, inf }
  0xa8   :  { %v173_v32 = vmul.f32 %v2117_v52, %v2771_v13  ;;  %v182_v43 = vsel %vm181_vm15, %v2769_v12, %v180_v63  ;;  %v259_v52 = vmax.f32 %v171_v37, 1e-12  ;;  %v157_v57 = vsel %vm155_vm14, %v156_v62, %v154_v39 }
  0xa9   :  { %v2119_v51 = vpop.eup %2118  ;;  %v185_v63 = vsel %vm183_vm1, %v184_v38, %v182_v43  ;;  %v256_v55 = vmax.f32 %v150_v50, 1e-12  ;;  %v257_v62 = vmax.f32 %v157_v57, 1e-12  ;;  %v2551_v12 = vmov 1e+09  }
  0xaa   :  { %v2804_v33 = vpop.xlane.xlu1 %136  ;;  %v2806_v34 = vpop.xlane.xlu0 %133  ;;  %v175_v54 = vsel %vm174_vm2, %v2771_v13, %v173_v32  ;;  %v194_v31 = vmul.f32 %v2119_v51, %v2773_v14  ;;  %v261_v8 = vmax.f32 %v185_v63, 1e-12  ;;  %v198_v38 = vand.u32 2147483648, %v2773_v14 }
  0xab   :  { %v2121_v56 = vpop.eup %2120  ;;  %v178_v6 = vsel %vm176_vm3, %v177_v5, %v175_v54  ;;  %v191_v39 = vand.u32 2147483648, %v2775_v15  ;;  %v212_v51 = vand.u32 2147483648, %v2785_v20  ;;  %vm211_vm14 = vcmp.eq.f32.partialorder %v2785_v20, 0.0 }
  0xac   :  { %v187_v11 = vmul.f32 %v2121_v56, %v2775_v15  ;;  %v260_v37 = vmax.f32 %v178_v6, 1e-12  ;;  %v196_v43 = vsel %vm195_vm6, %v2773_v14, %v194_v31  ;;  %vm204_vm15 = vcmp.eq.f32.partialorder %v2787_v21, 0.0 }
  0xad   :  { %v2123_v13 = vpop.eup %2122 }
  0xae   :  { %v2815_v44 = vpop.xlane.xlu1 %142  ;;  %v2817_v45 = vpop.xlane.xlu0 %139 }
  0xb2   :  { %v2839_v4 = vpop.xlane.xlu1 %29  ;;  %v2841_v28 = vpop.xlane.xlu0 %26 }
  0xb3   :  { %2124 = vrsqrt.f32 %v2839_v4  ;;  %vm36_vm1 = vcmp.eq.f32.partialorder %v2841_v28, inf  ;;  %v39_v6 = vand.u32 2147483648, %v2841_v28  ;;  %vm38_vm6 = vcmp.eq.f32.partialorder %v2841_v28, 0.0 }
  0xb4   :  { %2126 = vrsqrt.f32 %v2787_v21 }
  0xb5   :  { %2128 = vrsqrt.f32 %v2841_v28 }
  0xb6   :  { %v455_v49 = vpop.permute.xlu1 %454  ;;  %v2867_v60 = vpop.xlane.xlu0 %32  ;;  %2130 = vrcp.f32 %v258_v40 }
  0xb7   :  { %vm462_vm4 = vcmp.eq.s32.totalorder %v455_v49, 1  ;;  %2132 = vrcp.f32 %v259_v52  ;;  %v189_v49 = vsel %vm188_vm7, %v2775_v15, %v187_v11  ;;  %v199_v15 = vsel %vm197_vm9, %v198_v38, %v196_v43 }
  0xb8   :  { %vm471_vm5 = vmand %vm462_vm4, %vm2819_vm8  ;;  %2134 = vrsqrt.f32 %v2796_v25  ;;  %v192_v56 = vsel %vm190_vm11, %v191_v39, %v189_v49  ;;  %vm43_vm4 = vcmp.eq.f32.partialorder %v2839_v4, inf  ;;  %v208_v11 = vmul.f32 %v2123_v13, %v2785_v20 }
  0xb9   :  { %v2880_v32 = vsel %vm471_vm5, 0.0, %v2551_v12  ;;  %2136 = vrcp.f32 %v256_v55  ;;  %vm45_vm9 = vcmp.eq.f32.partialorder %v2839_v4, 0.0  ;;  %v262_v49 = vmax.f32 %v192_v56, 1e-12 }
  0xba   :  { %486 = vrot.lane.b32.xlu1 %v2880_v32, %s2552_s3  ;;  %2138 = vrcp.f32 %v257_v62  ;;  %v461_v52 = vpop.permute.xlu1 %460  ;;  %v477_v38 = vrot.slane %v2880_v32, 7  ;;  %vm399_vm11 = vcmp.ge.s32.totalorder %v2739_v58, 1 }
  0xbb   :  { %2140 = vrsqrt.f32 %v2798_v26  ;;  %vm464_vm5 = vcmp.eq.s32.totalorder %v461_v52, 1 }
  0xbc   :  { %2142 = vrcp.f32 %v261_v8  ;;  %vm473_vm7 = vmand %vm464_vm5, %vm2819_vm8  ;;  %vm251_vm5 = vcmp.eq.f32.partialorder %v2815_v44, inf }
  0xbd   :  { %v2125_v40 = vpop.eup %2124  ;;  %2144 = vrcp.f32 %v260_v37  ;;  %v46_v37 = vand.u32 2147483648, %v2839_v4  ;;  %v2923_v13 = vsel %vm473_vm7, 0.0, %v2551_v12  ;;  %vm253_vm7 = vcmp.eq.f32.partialorder %v2815_v44, 0.0 }
  0xbe   :  { %v458_v5 = vpop.permute.xlu0 %457  ;;  %v2127_v50 = vpop.eup %2126  ;;  %v42_v57 = vmul.f32 %v2125_v40, %v2839_v4  ;;  %2146 = vrsqrt.f32 %v2804_v33  ;;  %v479_v46 = vrot.slane %v2923_v13, 7 }
  0xbf   :  { %v2129_v54 = vpop.eup %2128  ;;  %vm463_vm2 = vcmp.eq.s32.totalorder %v458_v5, 1  ;;  %v201_v14 = vmul.f32 %v2127_v50, %v2787_v21  ;;  %v263_v5 = vmax.f32 %v199_v15, 1e-12  ;;  %v205_v50 = vand.u32 2147483648, %v2787_v21 }
  0xc0   :  { %v35_v63 = vmul.f32 %v2129_v54, %v2841_v28  ;;  %vm472_vm3 = vmand %vm463_vm2, %vm2819_vm8  ;;  %v2131_v31 = vpop.eup %2130  ;;  %v44_v40 = vsel %vm43_vm4, %v2839_v4, %v42_v57  ;;  %2148 = vrsqrt.f32 %v2806_v34  ;;  %v210_v54 = vsel %vm209_vm12, %v2785_v20, %v208_v11 }
  0xc1   :  { %v2910_v55 = vsel %vm472_vm3, 0.0, %v2551_v12  ;;  %v2133_v8 = vpop.eup %2132  ;;  %v203_v15 = vsel %vm202_vm13, %v2787_v21, %v201_v14  ;;  %v47_v11 = vsel %vm45_vm9, %v46_v37, %v44_v40  ;;  %2150 = vrcp.f32 %v263_v5 }
  0xc2   :  { %3865 = vst [vmem:[#allocation2_spill] sm:$0xff] %v2910_v55  ;;  %v37_v62 = vsel %vm36_vm1, %v2841_v28, %v35_v63  ;;  %488 = vrot.lane.b32.xlu1 %v2910_v55, %s2552_s3  ;;  %v2135_v39 = vpop.eup %2134  ;;  %v279_v57 = vmul.f32 %v2133_v8, %v2595_v2  ;;  %v478_v56 = vrot.slane %v2910_v55, 7  ;;  %v56_v8 = vmax.f32 %v47_v11, 1e-12 }
  0xc3   :  { %v2137_v43 = vpop.eup %2136  ;;  %v40_v12 = vsel %vm38_vm6, %v39_v6, %v37_v62  ;;  %v2948_v62 = vsel %vm482_vm10, %v479_v46, %v477_v38  ;;  %2152 = vrcp.f32 %v262_v49  ;;  %v277_v55 = vmul.f32 %v2131_v31, %v2585_v0 }
  0xc4   :  { %v2139_v52 = vpop.eup %2138  ;;  %v273_v28 = vmul.f32 %v2137_v43, %v2590_v1  ;;  %v55_v2 = vmax.f32 %v40_v12, 1e-12  ;;  %v213_v1 = vsel %vm211_vm14, %v212_v51, %v210_v54  ;;  %v206_v43 = vsel %vm204_vm15, %v205_v50, %v203_v15 }
  0xc5   :  { %v2141_v63 = vpop.eup %2140  ;;  %v275_v6 = vmul.f32 %v2139_v52, %v2608_v7  ;;  %v222_v7 = vmul.f32 %v2135_v39, %v2796_v25  ;;  %v307_v37 = vpack.c.bf16 %v279_v57, %v277_v55  ;;  %v2964_v0 = vsel %vm482_vm10, %v477_v38, %v478_v56 }
  0xc6   :  { %490 = vrot.lane.b32.xlu1 %v2923_v13, %s2552_s3  ;;  %v2143_v14 = vpop.eup %2142  ;;  %2154 = vrcp.f32 %v55_v2  ;;  %vm223_vm8 = vcmp.eq.f32.partialorder %v2796_v25, inf  ;;  %v215_v20 = vmul.f32 %v2141_v63, %v2798_v26  ;;  %v265_v51 = vmax.f32 %v213_v1, 1e-12 }
  0xc7   :  { %v2145_v16 = vpop.eup %2144  ;;  %v306_v3 = vpack.c.bf16 %v275_v6, %v273_v28  ;;  %2156 = vrcp.f32 %v56_v8  ;;  %vm225_vm12 = vcmp.eq.f32.partialorder %v2796_v25, 0.0  ;;  %vm216_vm13 = vcmp.eq.f32.partialorder %v2798_v26, inf }
  0xc8   :  { %v2147_v21 = vpop.eup %2146  ;;  %2158 = vrsqrt.f32 %v2815_v44  ;;  %v264_v55 = vmax.f32 %v206_v43, 1e-12  ;;  %v219_v31 = vand.u32 2147483648, %v2798_v26  ;;  %v224_v39 = vsel %vm223_vm8, %v2796_v25, %v222_v7 }
  0xc9   :  { %2083 = vmatprep.subr.msk.bf16.mxu0 %vm24_vm0, %v306_v3  ;;  %v321_v4 = vsel %vm24_vm0, %v306_v3, 0  ;;  %v226_v3 = vand.u32 2147483648, %v2796_v25  ;;  %2160 = vrsqrt.f32 %v2817_v45  ;;  %v281_v5 = vmul.f32 %v2145_v16, %v2620_v10 }
  0xca   :  { %492 = vrot.lane.b32.xlu1 %v2948_v62, %s2552_s3  ;;  %2047 = vmatpush3.bf16.xpose.msra.mxu0 %v321_v4  ;;  %v2149_v38 = vpop.eup %2148  ;;  %v283_v40 = vmul.f32 %v2143_v14, %v2615_v9  ;;  %v2985_v49 = vsel %vm482_vm10, %v478_v56, %v479_v46  ;;  %v217_v50 = vsel %vm216_vm13, %v2798_v26, %v215_v20  ;;  %vm218_vm14 = vcmp.eq.f32.partialorder %v2798_v26, 0.0 }
  0xcb   :  { %2084 = vmatprep.subr.msk.bf16.mxu0 %vm24_vm0, %v307_v37  ;;  %2162 = vrcp.f32 %v265_v51  ;;  %v2151_v12 = vpop.eup %2150  ;;  %v227_v52 = vsel %vm225_vm12, %v226_v3, %v224_v39  ;;  %v3866_v10 = vmov 0   ;;  %vm401_vm15 = vcmp.ge.s32.totalorder %v2745_v59, 1 }
  0xcc   :  { %2164 = vrcp.f32 %v264_v55  ;;  %v403_v9 = vsel %vm399_vm11, 1, %v3866_v10  ;;  %v236_v46 = vmul.f32 %v2147_v21, %v2804_v33  ;;  %v220_v54 = vsel %vm218_vm14, %v219_v31, %v217_v50 }
  0xcd   :  { %v2153_v16 = vpop.eup %2152  ;;  %v324_v26 = vsel %vm24_vm0, %v307_v37, 0  ;;  %v308_v15 = vpack.c.bf16 %v283_v40, %v281_v5  ;;  %vm237_vm1 = vcmp.eq.f32.partialorder %v2804_v33, inf  ;;  %v229_v25 = vmul.f32 %v2149_v38, %v2806_v34 }
  0xce   :  { %494 = vrot.lane.b32.xlu1 %v2964_v0, %s2552_s3  ;;  %v267_v63 = vmax.f32 %v227_v52, 1e-12  ;;  %vm230_vm2 = vcmp.eq.f32.partialorder %v2806_v34, inf  ;;  %v405_v58 = vsel %vm401_vm15, 1, %v3866_v10  ;;  %vm239_vm3 = vcmp.eq.f32.partialorder %v2804_v33, 0.0 }
  0xcf   :  { %v240_v28 = vand.u32 2147483648, %v2804_v33  ;;  %v266_v6 = vmax.f32 %v220_v54, 1e-12  ;;  %v238_v2 = vsel %vm237_vm1, %v2804_v33, %v236_v46  ;;  %v233_v8 = vand.u32 2147483648, %v2806_v34 }
  0xd0   :  { %v2155_v57 = vpop.eup %2154  ;;  %v285_v1 = vmul.f32 %v2153_v16, %v2638_v18  ;;  %v287_v7 = vmul.f32 %v2151_v12, %v2633_v17  ;;  %vm232_vm4 = vcmp.eq.f32.partialorder %v2806_v34, 0.0  ;;  %2166 = vrcp.f32 %v267_v63 }
  0xd1   :  { %v2157_v56 = vpop.eup %2156  ;;  %v59_v59 = vmul.f32 %v2155_v57, %v2718_v48  ;;  %v231_v48 = vsel %vm230_vm2, %v2806_v34, %v229_v25  ;;  %v241_v37 = vsel %vm239_vm3, %v240_v28, %v238_v2  ;;  %2168 = vrcp.f32 %v266_v6 }
  0xd2   :  { %496 = vrot.lane.b32.xlu1 %v2985_v49, %s2552_s3  ;;  %2049 = vmatpush3.bf16.xpose.msra.mxu0 %v324_v26  ;;  %v61_v11 = vmul.f32 %v2157_v56, %v2713_v47  ;;  %v2159_v14 = vpop.eup %2158  ;;  %v234_v20 = vsel %vm232_vm4, %v233_v8, %v231_v48  ;;  %v327_v18 = vsel %vm24_vm0, %v308_v15, 0  ;;  %v309_v21 = vpack.c.bf16 %v287_v7, %v285_v1 }
  0xd3   :  { %2085 = vmatprep.subr.msk.bf16.mxu0 %vm24_vm0, %v308_v15  ;;  %v2161_v43 = vpop.eup %2160  ;;  %v250_v33 = vmul.f32 %v2159_v14, %v2815_v44  ;;  %v269_v34 = vmax.f32 %v241_v37, 1e-12  ;;  %vm244_vm6 = vcmp.eq.f32.partialorder %v2817_v45, inf  ;;  %2170 = vrsqrt.f32 %v2867_v60 }
  0xd4   :  { %v304_v4 = vpack.c.bf16 %v61_v11, %v59_v59  ;;  %v243_v51 = vmul.f32 %v2161_v43, %v2817_v45  ;;  %v254_v3 = vand.u32 2147483648, %v2815_v44  ;;  %v268_v55 = vmax.f32 %v234_v20, 1e-12 }
  0xd5   :  { %v2163_v47 = vpop.eup %2162  ;;  %v252_v31 = vsel %vm251_vm5, %v2815_v44, %v250_v33  ;;  %v247_v38 = vand.u32 2147483648, %v2817_v45  ;;  %vm246_vm9 = vcmp.eq.f32.partialorder %v2817_v45, 0.0  ;;  %2172 = vrcp.f32 %v269_v34 }
  0xd6   :  { %407 = vperm.xlu1 %2104, %v403_v9   ;;  %2062 = vmatprep.mubr.msk.bf16.mxu0 %vm24_vm0, %v304_v4  ;;  %v2165_v17 = vpop.eup %2164  ;;  %v291_v5 = vmul.f32 %v2163_v47, %v2649_v23  ;;  %v245_v40 = vsel %vm244_vm6, %v2817_v45, %v243_v51  ;;  %v255_v50 = vsel %vm253_vm7, %v254_v3, %v252_v31  ;;  %2174 = vrcp.f32 %v268_v55 }
  0xd7   :  { %v289_v39 = vmul.f32 %v2165_v17, %v2654_v24  ;;  %v248_v52 = vsel %vm246_vm9, %v247_v38, %v245_v40  ;;  %v330_v9 = vsel %vm24_vm0, %v309_v21, 0  ;;  %v271_v44 = vmax.f32 %v255_v50, 1e-12 }
  0xd8   :  { %v270_v24 = vmax.f32 %v248_v52, 1e-12  ;;  %vm50_vm8 = vcmp.eq.f32.partialorder %v2867_v60, inf  ;;  %v53_v56 = vand.u32 2147483648, %v2867_v60  ;;  %vm52_vm11 = vcmp.eq.f32.partialorder %v2867_v60, 0.0 }
  0xd9   :  { %2176 = vrcp.f32 %v271_v44 }
  0xda   :  { %413 = vperm.xlu1 %2104, %v405_v58   ;;  %2051 = vmatpush3.bf16.xpose.msra.mxu0 %v327_v18  ;;  %v2167_v12 = vpop.eup %2166  ;;  %2178 = vrcp.f32 %v270_v24 }
  0xdb   :  { %2086 = vmatprep.subr.msk.bf16.mxu0 %vm24_vm0, %v309_v21  ;;  %v2169_v16 = vpop.eup %2168  ;;  %v295_v54 = vmul.f32 %v2167_v12, %v2665_v29 }
  0xdc   :  { %v293_v23 = vmul.f32 %v2169_v16, %v2670_v30 }
  0xdd   :  { %v2171_v46 = vpop.eup %2170 }
  0xde   :  { %431 = vperm.xlu1 %2104, %v2752_v61   ;;  %v310_v61 = vpack.c.bf16 %v291_v5, %v289_v39  ;;  %v49_v45 = vmul.f32 %v2171_v46, %v2867_v60  ;;  %v311_v57 = vpack.c.bf16 %v295_v54, %v293_v23 }
  0xdf   :  { %v2173_v26 = vpop.eup %2172 }
  0xe0   :  { %v333_v15 = vsel %vm24_vm0, %v310_v61, 0  ;;  %v2175_v25 = vpop.eup %2174  ;;  %v51_v30 = vsel %vm50_vm8, %v2867_v60, %v49_v45  ;;  %v299_v63 = vmul.f32 %v2173_v26, %v2681_v35  ;;  %v336_v28 = vsel %vm24_vm0, %v311_v57, 0 }
  0xe1   :  { %v297_v29 = vmul.f32 %v2175_v25, %v2686_v36  ;;  %v54_v58 = vsel %vm52_vm11, %v53_v56, %v51_v30 }
  0xe2   :  { %2053 = vmatpush3.bf16.xpose.msra.mxu0 %v330_v9  ;;  %v57_v14 = vmax.f32 %v54_v58, 1e-12 }
  0xe3   :  { %2087 = vmatprep.subr.msk.bf16.mxu0 %vm24_vm0, %v310_v61  ;;  %v2177_v59 = vpop.eup %2176  ;;  %v312_v6 = vpack.c.bf16 %v299_v63, %v297_v29 }
  0xe4   :  { %v2179_v11 = vpop.eup %2178  ;;  %v303_v8 = vmul.f32 %v2177_v59, %v2697_v41  ;;  %2180 = vrcp.f32 %v57_v14 }
  0xe5   :  { %v301_v2 = vmul.f32 %v2179_v11, %v2702_v42  ;;  %v339_v60 = vsel %vm24_vm0, %v312_v6, 0 }
  0xe7   :  { %v313_v36 = vpack.c.bf16 %v303_v8, %v301_v2 }
  0xe9   :  { %v342_v1 = vsel %vm24_vm0, %v313_v36, 0 }
  0xea   :  { %2055 = vmatpush3.bf16.xpose.msra.mxu0 %v333_v15 }
  0xeb   :  { %2088 = vmatprep.subr.msk.bf16.mxu0 %vm24_vm0, %v311_v57 }
  0xee   :  { %v2181_v35 = vpop.eup %2180 }
  0xef   :  { %v63_v7 = vmul.f32 %v2181_v35, %v2729_v53  ;;  %v411_v35 = vpop.permute.xlu0 %410 }
  0xf0   :  { %vm416_vm1 = vcmp.eq.s32.totalorder %v411_v35, 1 }
  0xf1   :  { %v305_v43 = vpack.c.bf16 %v63_v7, %v63_v7 }
  0xf2   :  { %2057 = vmatpush3.bf16.xpose.msra.mxu0 %v336_v28 }
  0xf3   :  { %2089 = vmatprep.subr.msk.bf16.mxu0 %vm24_vm0, %v312_v6 }
  0xfa   :  { %2059 = vmatpush3.bf16.xpose.msra.mxu0 %v339_v60 }
  0xfb   :  { %2090 = vmatprep.subr.msk.bf16.mxu0 %vm24_vm0, %v313_v36 }
 0x102   :  { %2061 = vmatpush3.bf16.xpose.msra.mxu0 %v342_v1 }
 0x109   :  { %2063 = vmatmul.mubr.msk.bf16.vlgmr.msra.gmra.mrb[0].mxu0 %vm24_vm0, %v305_v43  ;;  %vm402_vm0 = vcmp.ge.s32.totalorder %v2782_v19, 1  ;;  %v429_v43 = vpop.permute.xlu0 %428 }
 0x10a   :  { %v418_v7 = vsel %vm402_vm0, 1, %v3866_v10 }
 0x12c   :  { %v487_v48 = vpop.permute.xlu1 %486 }
 0x12d   :  { %v498_v47 = vmin.f32 %v2948_v62, %v487_v48 }
 0x134   :  { %v489_v42 = vpop.permute.xlu1 %488 }
 0x135   :  { %v499_v17 = vmin.f32 %v2964_v0, %v489_v42 }
 0x138   :  { %v491_v4 = vpop.permute.xlu1 %490 }
 0x139   :  { %v500_v20 = vmin.f32 %v2985_v49, %v491_v4 }
 0x13c   :  { %v493_v41 = vpop.permute.xlu1 %492 }
 0x13d   :  { %v3055_v18 = vmin.f32 %v498_v47, %v493_v41 }
 0x13f   :  { %v504_v53 = vsub.f32 %v3055_v18, %v2948_v62  ;;  %v516_v55 = vsub.f32 %v3055_v18, %v487_v48  ;;  %v531_v9 = vsub.f32 %v3055_v18, %v493_v41  ;;  %v422_v41 = vrot.slane %v418_v7, %v2801_v27 }
 0x140   :  { %v495_v37 = vpop.permute.xlu1 %494 }
 0x141   :  { %v3062_v51 = vmin.f32 %v499_v17, %v495_v37  ;;  %v507_v31 = vmul.f32 10.0, %v504_v53  ;;  %v519_v50 = vmul.f32 10.0, %v516_v55  ;;  %v534_v23 = vmul.f32 10.0, %v531_v9  ;;  %v435_v17 = vpop.permute.xlu0 %434 }
 0x142   :  { %vm3079_vm13 = vcmp.eq.s32.totalorder %v422_v41, 1 }
 0x143   :  { %v505_v38 = vsub.f32 %v3062_v51, %v2964_v0  ;;  %v517_v39 = vsub.f32 %v3062_v51, %v489_v42  ;;  %v510_v12 = vmul.f32 1.442695, %v507_v31  ;;  %v522_v44 = vmul.f32 1.442695, %v519_v50  ;;  %vm425_vm3 = vmand %vm416_vm1, %vm3079_vm13 }
 0x144   :  { %v497_v33 = vpop.permute.xlu1 %496  ;;  %v532_v24 = vsub.f32 %v3062_v51, %v495_v37  ;;  %v537_v15 = vmul.f32 1.442695, %v534_v23 }
 0x145   :  { %v3057_v21 = vmin.f32 %v500_v20, %v497_v33  ;;  %v508_v62 = vmul.f32 10.0, %v505_v38  ;;  %2182 = vpow2.f32 %v510_v12 }
 0x146   :  { %v535_v45 = vmul.f32 10.0, %v532_v24 }
 0x147   :  { %v506_v34 = vsub.f32 %v3057_v21, %v2985_v49  ;;  %v518_v3 = vsub.f32 %v3057_v21, %v491_v4  ;;  %v533_v52 = vsub.f32 %v3057_v21, %v497_v33  ;;  %v520_v49 = vmul.f32 10.0, %v517_v39 }
 0x148   :  { %v512_v46 = vmul.f32 1.442695, %v508_v62  ;;  %v539_v57 = vmul.f32 1.442695, %v535_v45  ;;  %v439_v33 = vrot.slane %v2782_v19, %v2801_v27 }
 0x149   :  { %v509_v5 = vmul.f32 10.0, %v506_v34  ;;  %v521_v40 = vmul.f32 10.0, %v518_v3  ;;  %v536_v0 = vmul.f32 10.0, %v533_v52  ;;  %v524_v54 = vmul.f32 1.442695, %v520_v49 }
 0x14a   :  { %v442_v55 = vadd.s32 %v439_v33, %v435_v17  ;;  %v440_v19 = vadd.s32 %v439_v33, %v429_v43 }
 0x14b   :  { %v514_v61 = vmul.f32 1.442695, %v509_v5  ;;  %v526_v16 = vmul.f32 1.442695, %v521_v40  ;;  %v541_v26 = vmul.f32 1.442695, %v536_v0 }
 0x14d   :  { %2184 = vpow2.f32 %v514_v61 }
 0x14e   :  { %2186 = vpow2.f32 %v526_v16 }
 0x14f   :  { %2188 = vpow2.f32 %v522_v44  ;;  %v2183_v25 = vpop.eup %2182 }
 0x150   :  { %2190 = vpow2.f32 %v512_v46 }
 0x151   :  { %2192 = vpow2.f32 %v524_v54 }
 0x152   :  { %2194 = vpow2.f32 %v541_v26 }
 0x153   :  { %2196 = vpow2.f32 %v537_v15 }
 0x154   :  { %2198 = vpow2.f32 %v539_v57 }
 0x155   :  { %v408_v1 = vpop.permute.xlu1 %407 }
 0x156   :  { %vm415_vm14 = vcmp.eq.s32.totalorder %v408_v1, 1 }
 0x157   :  { %v2185_v56 = vpop.eup %2184  ;;  %vm424_vm2 = vmand %vm415_vm14, %vm3079_vm13 }
 0x158   :  { %v2187_v30 = vpop.eup %2186  ;;  %v3092_v62 = vsel %vm424_vm2, %v440_v19, 4294967295 }
 0x159   :  { %v2189_v29 = vpop.eup %2188  ;;  %v530_v59 = vadd.f32 %v2187_v30, %v2185_v56  ;;  %v414_v4 = vpop.permute.xlu1 %413  ;;  %vm561_vm5 = vcmp.eq.s32.totalorder %v3092_v62, 2  ;;  %vm648_vm7 = vcmp.eq.s32.totalorder %v3092_v62, 3  ;;  %vm735_vm11 = vcmp.eq.s32.totalorder %v3092_v62, 4 }
 0x15a   :  { %v2191_v63 = vpop.eup %2190  ;;  %v528_v28 = vadd.f32 %v2189_v29, %v2183_v25  ;;  %vm417_vm12 = vcmp.eq.s32.totalorder %v414_v4, 1  ;;  %vm909_vm1 = vcmp.eq.s32.totalorder %v3092_v62, 6 }
 0x15b   :  { %v2193_v58 = vpop.eup %2192  ;;  %vm426_vm15 = vmand %vm417_vm12, %vm3079_vm13  ;;  %vm822_vm13 = vcmp.eq.s32.totalorder %v3092_v62, 5 }
 0x15c   :  { %v2195_v6 = vpop.eup %2194  ;;  %v529_v11 = vadd.f32 %v2193_v58, %v2191_v63  ;;  %v3087_v27 = vsel %vm426_vm15, %v442_v55, 4294967295 }
 0x15d   :  { %v2197_v14 = vpop.eup %2196  ;;  %v545_v2 = vadd.f32 %v2195_v6, %v530_v59  ;;  %v432_v34 = vpop.permute.xlu1 %431  ;;  %vm563_vm4 = vcmp.eq.s32.totalorder %v3087_v27, 2  ;;  %vm650_vm8 = vcmp.eq.s32.totalorder %v3087_v27, 3  ;;  %vm737_vm12 = vcmp.eq.s32.totalorder %v3087_v27, 4 }
 0x15e   :  { %v543_v8 = vadd.f32 %v2197_v14, %v528_v28  ;;  %v2199_v60 = vpop.eup %2198  ;;  %v441_v38 = vadd.s32 %v439_v33, %v432_v34  ;;  %vm824_vm15 = vcmp.eq.s32.totalorder %v3087_v27, 5 }
 0x15f   :  { %v544_v36 = vadd.f32 %v2199_v60, %v529_v11  ;;  %2200 = vlog2.f32 %v545_v2 }
 0x160   :  { %2202 = vlog2.f32 %v543_v8  ;;  %v3101_v44 = vsel %vm425_vm3, %v441_v38, 4294967295  ;;  %vm911_vm3 = vcmp.eq.s32.totalorder %v3087_v27, 6 }
 0x161   :  { %2204 = vlog2.f32 %v544_v36  ;;  %vm562_vm6 = vcmp.eq.s32.totalorder %v3101_v44, 2  ;;  %vm649_vm9 = vcmp.eq.s32.totalorder %v3101_v44, 3  ;;  %vm736_vm0 = vcmp.eq.s32.totalorder %v3101_v44, 4 }
 0x162   :  { %vm823_vm14 = vcmp.eq.s32.totalorder %v3101_v44, 5  ;;  %vm910_vm2 = vcmp.eq.s32.totalorder %v3101_v44, 6 }
 0x169   :  { %v2201_v48 = vpop.eup %2200 }
 0x16a   :  { %v2203_v42 = vpop.eup %2202  ;;  %v551_v47 = vmul.f32 0.6931472, %v2201_v48 }
 0x16b   :  { %v2205_v37 = vpop.eup %2204  ;;  %v547_v20 = vmul.f32 0.6931472, %v2203_v42 }
 0x16c   :  { %v549_v10 = vmul.f32 0.6931472, %v2205_v37  ;;  %v554_v3 = vmul.f32 0.1, %v551_v47 }
 0x16d   :  { %v552_v31 = vmul.f32 0.1, %v547_v20 }
 0x16e   :  { %v553_v5 = vmul.f32 0.1, %v549_v10  ;;  %v557_v12 = vsub.f32 %v3057_v21, %v554_v3 }
 0x16f   :  { %v555_v49 = vsub.f32 %v3055_v18, %v552_v31 }
 0x170   :  { %v556_v21 = vsub.f32 %v3062_v51, %v553_v5  ;;  %v3869_v51 = vld [vmem:[#allocation2_spill] sm:$0xff] }
 0x1dc   :  { %v2064_v39 = vpop.f32.mrb[0].mxu0 }
 0x1dd   :  { %v3089_v40 = vsub.f32 1.0, %v2064_v39  ;;  %v378_v50 = vpop.f32.mrb[1].mxu0 }
 0x1de   :  { %v3094_v52 = vsub.f32 1.0, %v378_v50  ;;  %v2065_v9 = vpop.f32.mrb[2].mxu0 }
 0x1df   :  { %v381_v61 = vpop.f32.mrb[3].mxu0  ;;  %v560_v16 = vadd.f32 %v557_v12, %v3089_v40 }
 0x1e0   :  { %v3103_v24 = vsub.f32 1.0, %v381_v61  ;;  %v558_v46 = vadd.f32 %v555_v49, %v3094_v52 }
 0x1e1   :  { %v3108_v0 = vsel %vm563_vm4, %v560_v16, %v2923_v13  ;;  %vm996_vm4 = vcmp.eq.s32.totalorder %v3092_v62, 7 }
 0x1e2   :  { %577 = vrot.lane.b32.xlu1 %v3108_v0, %s2552_s3  ;;  %v559_v18 = vadd.f32 %v556_v21, %v3103_v24  ;;  %v3115_v23 = vsel %vm561_vm5, %v558_v46, %v2880_v32  ;;  %v569_v54 = vrot.slane %v3108_v0, 7  ;;  %vm997_vm5 = vcmp.eq.s32.totalorder %v3101_v44, 7 }
 0x1e3   :  { %v567_v13 = vrot.slane %v3115_v23, 7 }
 0x1e4   :  { %v3120_v45 = vsel %vm562_vm6, %v559_v18, %v3869_v51  ;;  %vm998_vm6 = vcmp.eq.s32.totalorder %v3087_v27, 7 }
 0x1e5   :  { %575 = vrot.lane.b32.xlu0 %v3120_v45, %s2552_s3  ;;  %v568_v26 = vrot.slane %v3120_v45, 7  ;;  %v572_v32 = vsel %vm482_vm10, %v569_v54, %v567_v13 }
 0x1e6   :  { %573 = vrot.lane.b32.xlu1 %v3115_v23, %s2552_s3 }
 0x1e7   :  { %v571_v15 = vsel %vm482_vm10, %v567_v13, %v568_v26  ;;  %v570_v57 = vsel %vm482_vm10, %v568_v26, %v569_v54 }
 0x1e9   :  { %579 = vrot.lane.b32.xlu0 %v572_v32, %s2552_s3 }
 0x1ea   :  { %581 = vrot.lane.b32.xlu1 %v571_v15, %s2552_s3 }
 0x1ed   :  { %583 = vrot.lane.b32.xlu0 %v570_v57, %s2552_s3 }
 0x254   :  { %v578_v25 = vpop.permute.xlu1 %577 }
 0x255   :  { %v587_v11 = vmin.f32 %v570_v57, %v578_v25 }
 0x257   :  { %v576_v56 = vpop.permute.xlu0 %575 }
 0x258   :  { %v574_v30 = vpop.permute.xlu1 %573  ;;  %v586_v63 = vmin.f32 %v571_v15, %v576_v56 }
 0x259   :  { %v585_v29 = vmin.f32 %v572_v32, %v574_v30 }
 0x25b   :  { %v580_v58 = vpop.permute.xlu0 %579 }
 0x25c   :  { %v3137_v59 = vmin.f32 %v585_v29, %v580_v58  ;;  %v582_v28 = vpop.permute.xlu1 %581 }
 0x25d   :  { %v3139_v6 = vmin.f32 %v586_v63, %v582_v28 }
 0x25e   :  { %v591_v14 = vsub.f32 %v3137_v59, %v572_v32  ;;  %v603_v2 = vsub.f32 %v3137_v59, %v574_v30  ;;  %v618_v8 = vsub.f32 %v3137_v59, %v580_v58 }
 0x25f   :  { %v592_v60 = vsub.f32 %v3139_v6, %v571_v15  ;;  %v604_v36 = vsub.f32 %v3139_v6, %v576_v56  ;;  %v619_v35 = vsub.f32 %v3139_v6, %v582_v28  ;;  %v584_v1 = vpop.permute.xlu0 %583 }
 0x260   :  { %v594_v7 = vmul.f32 10.0, %v591_v14  ;;  %v606_v43 = vmul.f32 10.0, %v603_v2  ;;  %v621_v48 = vmul.f32 10.0, %v618_v8  ;;  %v3147_v42 = vmin.f32 %v587_v11, %v584_v1 }
 0x261   :  { %v595_v4 = vmul.f32 10.0, %v592_v60  ;;  %v607_v41 = vmul.f32 10.0, %v604_v36  ;;  %v622_v37 = vmul.f32 10.0, %v619_v35 }
 0x262   :  { %v597_v47 = vmul.f32 1.442695, %v594_v7  ;;  %v609_v33 = vmul.f32 1.442695, %v606_v43  ;;  %v624_v20 = vmul.f32 1.442695, %v621_v48  ;;  %v593_v17 = vsub.f32 %v3147_v42, %v570_v57 }
 0x263   :  { %v599_v53 = vmul.f32 1.442695, %v595_v4  ;;  %v605_v10 = vsub.f32 %v3147_v42, %v578_v25  ;;  %v611_v34 = vmul.f32 1.442695, %v607_v41  ;;  %v620_v55 = vsub.f32 %v3147_v42, %v584_v1 }
 0x264   :  { %2206 = vpow2.f32 %v597_v47  ;;  %v596_v3 = vmul.f32 10.0, %v593_v17  ;;  %v626_v31 = vmul.f32 1.442695, %v622_v37 }
 0x265   :  { %2208 = vpow2.f32 %v609_v33  ;;  %v608_v19 = vmul.f32 10.0, %v605_v10  ;;  %v623_v39 = vmul.f32 10.0, %v620_v55 }
 0x266   :  { %2210 = vpow2.f32 %v624_v20  ;;  %v601_v38 = vmul.f32 1.442695, %v596_v3 }
 0x267   :  { %2212 = vpow2.f32 %v599_v53  ;;  %v613_v5 = vmul.f32 1.442695, %v608_v19  ;;  %v628_v50 = vmul.f32 1.442695, %v623_v39 }
 0x268   :  { %2214 = vpow2.f32 %v611_v34 }
 0x269   :  { %2216 = vpow2.f32 %v626_v31 }
 0x26a   :  { %2218 = vpow2.f32 %v601_v38 }
 0x26b   :  { %2220 = vpow2.f32 %v613_v5 }
 0x26c   :  { %2222 = vpow2.f32 %v628_v50 }
 0x26e   :  { %v2207_v12 = vpop.eup %2206 }
 0x26f   :  { %v2209_v9 = vpop.eup %2208 }
 0x270   :  { %v2211_v49 = vpop.eup %2210  ;;  %v615_v61 = vadd.f32 %v2209_v9, %v2207_v12 }
 0x271   :  { %v2213_v16 = vpop.eup %2212 }
 0x272   :  { %v2215_v21 = vpop.eup %2214  ;;  %v630_v46 = vadd.f32 %v2211_v49, %v615_v61 }
 0x273   :  { %v2217_v18 = vpop.eup %2216  ;;  %v616_v54 = vadd.f32 %v2215_v21, %v2213_v16 }
 0x274   :  { %v2219_v51 = vpop.eup %2218  ;;  %2224 = vlog2.f32 %v630_v46 }
 0x275   :  { %v2221_v13 = vpop.eup %2220  ;;  %v631_v26 = vadd.f32 %v2217_v18, %v616_v54 }
 0x276   :  { %v617_v32 = vadd.f32 %v2221_v13, %v2219_v51  ;;  %v2223_v15 = vpop.eup %2222 }
 0x277   :  { %2226 = vlog2.f32 %v631_v26 }
 0x278   :  { %v632_v57 = vadd.f32 %v2223_v15, %v617_v32 }
 0x27a   :  { %2228 = vlog2.f32 %v632_v57 }
 0x27e   :  { %v2225_v25 = vpop.eup %2224 }
 0x27f   :  { %v634_v56 = vmul.f32 0.6931472, %v2225_v25 }
 0x281   :  { %v2227_v30 = vpop.eup %2226  ;;  %v639_v29 = vmul.f32 0.1, %v634_v56 }
 0x282   :  { %v636_v63 = vmul.f32 0.6931472, %v2227_v30 }
 0x283   :  { %v642_v58 = vsub.f32 %v3137_v59, %v639_v29 }
 0x284   :  { %v2229_v28 = vpop.eup %2228  ;;  %v640_v11 = vmul.f32 0.1, %v636_v63 }
 0x285   :  { %v645_v14 = vadd.f32 %v642_v58, %v3094_v52  ;;  %v638_v2 = vmul.f32 0.6931472, %v2229_v28 }
 0x286   :  { %v643_v8 = vsub.f32 %v3139_v6, %v640_v11 }
 0x287   :  { %v3157_v60 = vsel %vm648_vm7, %v645_v14, %v3115_v23  ;;  %v641_v36 = vmul.f32 0.1, %v638_v2  ;;  %vm1083_vm7 = vcmp.eq.s32.totalorder %v3092_v62, 8 }
 0x288   :  { %660 = vrot.lane.b32.xlu1 %v3157_v60, %s2552_s3  ;;  %v646_v35 = vadd.f32 %v643_v8, %v3103_v24  ;;  %v654_v23 = vrot.slane %v3157_v60, 7 }
 0x289   :  { %v644_v59 = vsub.f32 %v3147_v42, %v641_v36 }
 0x28a   :  { %v3165_v1 = vsel %vm649_vm9, %v646_v35, %v3120_v45  ;;  %vm1084_vm9 = vcmp.eq.s32.totalorder %v3101_v44, 8 }
 0x28b   :  { %662 = vrot.lane.b32.xlu0 %v3165_v1, %s2552_s3  ;;  %v647_v6 = vadd.f32 %v644_v59, %v3089_v40  ;;  %v655_v7 = vrot.slane %v3165_v1, 7 }
 0x28d   :  { %v3174_v43 = vsel %vm650_vm8, %v647_v6, %v3108_v0  ;;  %v658_v42 = vsel %vm482_vm10, %v654_v23, %v655_v7  ;;  %vm1085_vm8 = vcmp.eq.s32.totalorder %v3087_v27, 8 }
 0x28e   :  { %664 = vrot.lane.b32.xlu1 %v3174_v43, %s2552_s3  ;;  %v656_v45 = vrot.slane %v3174_v43, 7 }
 0x290   :  { %v659_v48 = vsel %vm482_vm10, %v656_v45, %v654_v23  ;;  %v657_v4 = vsel %vm482_vm10, %v655_v7, %v656_v45 }
 0x291   :  { %666 = vrot.lane.b32.xlu0 %v659_v48, %s2552_s3 }
 0x292   :  { %668 = vrot.lane.b32.xlu1 %v658_v42, %s2552_s3 }
 0x295   :  { %670 = vrot.lane.b32.xlu0 %v657_v4, %s2552_s3 }
 0x2fa   :  { %v661_v0 = vpop.permute.xlu1 %660 }
 0x2fb   :  { %v672_v47 = vmin.f32 %v659_v48, %v661_v0 }
 0x2fd   :  { %v663_v41 = vpop.permute.xlu0 %662 }
 0x2fe   :  { %v673_v33 = vmin.f32 %v658_v42, %v663_v41 }
 0x300   :  { %v665_v37 = vpop.permute.xlu1 %664 }
 0x301   :  { %v674_v34 = vmin.f32 %v657_v4, %v665_v37 }
 0x303   :  { %v667_v20 = vpop.permute.xlu0 %666 }
 0x304   :  { %v3188_v17 = vmin.f32 %v672_v47, %v667_v20  ;;  %v669_v53 = vpop.permute.xlu1 %668 }
 0x305   :  { %v3190_v10 = vmin.f32 %v673_v33, %v669_v53 }
 0x306   :  { %v678_v3 = vsub.f32 %v3188_v17, %v659_v48  ;;  %v690_v55 = vsub.f32 %v3188_v17, %v661_v0  ;;  %v705_v31 = vsub.f32 %v3188_v17, %v667_v20 }
 0x307   :  { %v679_v19 = vsub.f32 %v3190_v10, %v658_v42  ;;  %v691_v38 = vsub.f32 %v3190_v10, %v663_v41  ;;  %v706_v39 = vsub.f32 %v3190_v10, %v669_v53  ;;  %v671_v5 = vpop.permute.xlu0 %670 }
 0x308   :  { %v681_v50 = vmul.f32 10.0, %v678_v3  ;;  %v693_v12 = vmul.f32 10.0, %v690_v55  ;;  %v708_v9 = vmul.f32 10.0, %v705_v31  ;;  %v3198_v49 = vmin.f32 %v674_v34, %v671_v5 }
 0x309   :  { %v682_v61 = vmul.f32 10.0, %v679_v19  ;;  %v694_v16 = vmul.f32 10.0, %v691_v38  ;;  %v709_v21 = vmul.f32 10.0, %v706_v39 }
 0x30a   :  { %v684_v46 = vmul.f32 1.442695, %v681_v50  ;;  %v696_v18 = vmul.f32 1.442695, %v693_v12  ;;  %v711_v54 = vmul.f32 1.442695, %v708_v9  ;;  %v680_v51 = vsub.f32 %v3198_v49, %v657_v4 }
 0x30b   :  { %v686_v13 = vmul.f32 1.442695, %v682_v61  ;;  %v692_v26 = vsub.f32 %v3198_v49, %v665_v37  ;;  %v698_v32 = vmul.f32 1.442695, %v694_v16  ;;  %v707_v57 = vsub.f32 %v3198_v49, %v671_v5 }
 0x30c   :  { %2230 = vpow2.f32 %v684_v46  ;;  %v683_v15 = vmul.f32 10.0, %v680_v51  ;;  %v713_v25 = vmul.f32 1.442695, %v709_v21 }
 0x30d   :  { %2232 = vpow2.f32 %v696_v18  ;;  %v695_v56 = vmul.f32 10.0, %v692_v26  ;;  %v710_v29 = vmul.f32 10.0, %v707_v57 }
 0x30e   :  { %2234 = vpow2.f32 %v711_v54  ;;  %v688_v30 = vmul.f32 1.442695, %v683_v15 }
 0x30f   :  { %2236 = vpow2.f32 %v686_v13  ;;  %v700_v63 = vmul.f32 1.442695, %v695_v56  ;;  %v715_v58 = vmul.f32 1.442695, %v710_v29 }
 0x310   :  { %2238 = vpow2.f32 %v698_v32 }
 0x311   :  { %2240 = vpow2.f32 %v713_v25 }
 0x312   :  { %2242 = vpow2.f32 %v688_v30 }
 0x313   :  { %2244 = vpow2.f32 %v700_v63 }
 0x314   :  { %2246 = vpow2.f32 %v715_v58 }
 0x316   :  { %v2231_v28 = vpop.eup %2230 }
 0x317   :  { %v2233_v11 = vpop.eup %2232 }
 0x318   :  { %v2235_v14 = vpop.eup %2234  ;;  %v702_v2 = vadd.f32 %v2233_v11, %v2231_v28 }
 0x319   :  { %v2237_v8 = vpop.eup %2236 }
 0x31a   :  { %v2239_v36 = vpop.eup %2238  ;;  %v717_v35 = vadd.f32 %v2235_v14, %v702_v2 }
 0x31b   :  { %v2241_v59 = vpop.eup %2240  ;;  %v703_v6 = vadd.f32 %v2239_v36, %v2237_v8 }
 0x31c   :  { %v2243_v23 = vpop.eup %2242  ;;  %2248 = vlog2.f32 %v717_v35 }
 0x31d   :  { %v2245_v7 = vpop.eup %2244  ;;  %v718_v45 = vadd.f32 %v2241_v59, %v703_v6 }
 0x31e   :  { %v704_v48 = vadd.f32 %v2245_v7, %v2243_v23  ;;  %v2247_v42 = vpop.eup %2246 }
 0x31f   :  { %2250 = vlog2.f32 %v718_v45 }
 0x320   :  { %v719_v4 = vadd.f32 %v2247_v42, %v704_v48 }
 0x322   :  { %2252 = vlog2.f32 %v719_v4 }
 0x326   :  { %v2249_v0 = vpop.eup %2248 }
 0x327   :  { %v721_v41 = vmul.f32 0.6931472, %v2249_v0 }
 0x329   :  { %v2251_v37 = vpop.eup %2250  ;;  %v726_v47 = vmul.f32 0.1, %v721_v41 }
 0x32a   :  { %v723_v33 = vmul.f32 0.6931472, %v2251_v37 }
 0x32b   :  { %v729_v20 = vsub.f32 %v3188_v17, %v726_v47 }
 0x32c   :  { %v2253_v53 = vpop.eup %2252  ;;  %v727_v34 = vmul.f32 0.1, %v723_v33 }
 0x32d   :  { %v732_v3 = vadd.f32 %v729_v20, %v3094_v52  ;;  %v725_v55 = vmul.f32 0.6931472, %v2253_v53 }
 0x32e   :  { %v730_v31 = vsub.f32 %v3190_v10, %v727_v34 }
 0x32f   :  { %v3208_v19 = vsel %vm735_vm11, %v732_v3, %v3157_v60  ;;  %v728_v38 = vmul.f32 0.1, %v725_v55  ;;  %vm1170_vm11 = vcmp.eq.s32.totalorder %v3092_v62, 9 }
 0x330   :  { %747 = vrot.lane.b32.xlu1 %v3208_v19, %s2552_s3  ;;  %v733_v39 = vadd.f32 %v730_v31, %v3103_v24  ;;  %v741_v60 = vrot.slane %v3208_v19, 7 }
 0x331   :  { %v731_v17 = vsub.f32 %v3198_v49, %v728_v38 }
 0x332   :  { %v3216_v5 = vsel %vm736_vm0, %v733_v39, %v3165_v1  ;;  %vm1171_vm0 = vcmp.eq.s32.totalorder %v3101_v44, 9 }
 0x333   :  { %749 = vrot.lane.b32.xlu0 %v3216_v5, %s2552_s3  ;;  %v734_v10 = vadd.f32 %v731_v17, %v3089_v40  ;;  %v742_v50 = vrot.slane %v3216_v5, 7 }
 0x335   :  { %v3225_v12 = vsel %vm737_vm12, %v734_v10, %v3174_v43  ;;  %v745_v49 = vsel %vm482_vm10, %v741_v60, %v742_v50  ;;  %vm1172_vm12 = vcmp.eq.s32.totalorder %v3087_v27, 9 }
 0x336   :  { %751 = vrot.lane.b32.xlu1 %v3225_v12, %s2552_s3  ;;  %v743_v1 = vrot.slane %v3225_v12, 7 }
 0x338   :  { %v746_v9 = vsel %vm482_vm10, %v743_v1, %v741_v60  ;;  %v744_v61 = vsel %vm482_vm10, %v742_v50, %v743_v1 }
 0x339   :  { %753 = vrot.lane.b32.xlu0 %v746_v9, %s2552_s3 }
 0x33a   :  { %755 = vrot.lane.b32.xlu1 %v745_v49, %s2552_s3 }
 0x33d   :  { %757 = vrot.lane.b32.xlu0 %v744_v61, %s2552_s3 }
 0x3a2   :  { %v748_v43 = vpop.permute.xlu1 %747 }
 0x3a3   :  { %v759_v46 = vmin.f32 %v746_v9, %v748_v43 }
 0x3a5   :  { %v750_v16 = vpop.permute.xlu0 %749 }
 0x3a6   :  { %v760_v18 = vmin.f32 %v745_v49, %v750_v16 }
 0x3a8   :  { %v752_v21 = vpop.permute.xlu1 %751 }
 0x3a9   :  { %v761_v32 = vmin.f32 %v744_v61, %v752_v21 }
 0x3ab   :  { %v754_v54 = vpop.permute.xlu0 %753 }
 0x3ac   :  { %v3239_v51 = vmin.f32 %v759_v46, %v754_v54  ;;  %v756_v13 = vpop.permute.xlu1 %755 }
 0x3ad   :  { %v3241_v26 = vmin.f32 %v760_v18, %v756_v13 }
 0x3ae   :  { %v765_v15 = vsub.f32 %v3239_v51, %v746_v9  ;;  %v777_v57 = vsub.f32 %v3239_v51, %v748_v43  ;;  %v792_v25 = vsub.f32 %v3239_v51, %v754_v54 }
 0x3af   :  { %v766_v56 = vsub.f32 %v3241_v26, %v745_v49  ;;  %v778_v30 = vsub.f32 %v3241_v26, %v750_v16  ;;  %v793_v29 = vsub.f32 %v3241_v26, %v756_v13  ;;  %v758_v63 = vpop.permute.xlu0 %757 }
 0x3b0   :  { %v768_v58 = vmul.f32 10.0, %v765_v15  ;;  %v780_v28 = vmul.f32 10.0, %v777_v57  ;;  %v795_v11 = vmul.f32 10.0, %v792_v25  ;;  %v3249_v14 = vmin.f32 %v761_v32, %v758_v63 }
 0x3b1   :  { %v769_v2 = vmul.f32 10.0, %v766_v56  ;;  %v781_v8 = vmul.f32 10.0, %v778_v30  ;;  %v796_v36 = vmul.f32 10.0, %v793_v29 }
 0x3b2   :  { %v771_v35 = vmul.f32 1.442695, %v768_v58  ;;  %v783_v59 = vmul.f32 1.442695, %v780_v28  ;;  %v798_v6 = vmul.f32 1.442695, %v795_v11  ;;  %v767_v23 = vsub.f32 %v3249_v14, %v744_v61 }
 0x3b3   :  { %v773_v7 = vmul.f32 1.442695, %v769_v2  ;;  %v779_v45 = vsub.f32 %v3249_v14, %v752_v21  ;;  %v785_v48 = vmul.f32 1.442695, %v781_v8  ;;  %v794_v4 = vsub.f32 %v3249_v14, %v758_v63 }
 0x3b4   :  { %2254 = vpow2.f32 %v771_v35  ;;  %v770_v42 = vmul.f32 10.0, %v767_v23  ;;  %v800_v0 = vmul.f32 1.442695, %v796_v36 }
 0x3b5   :  { %2256 = vpow2.f32 %v783_v59  ;;  %v782_v41 = vmul.f32 10.0, %v779_v45  ;;  %v797_v47 = vmul.f32 10.0, %v794_v4 }
 0x3b6   :  { %2258 = vpow2.f32 %v798_v6  ;;  %v775_v37 = vmul.f32 1.442695, %v770_v42 }
 0x3b7   :  { %2260 = vpow2.f32 %v773_v7  ;;  %v787_v33 = vmul.f32 1.442695, %v782_v41  ;;  %v802_v20 = vmul.f32 1.442695, %v797_v47 }
 0x3b8   :  { %2262 = vpow2.f32 %v785_v48 }
 0x3b9   :  { %2264 = vpow2.f32 %v800_v0 }
 0x3ba   :  { %2266 = vpow2.f32 %v775_v37 }
 0x3bb   :  { %2268 = vpow2.f32 %v787_v33 }
 0x3bc   :  { %2270 = vpow2.f32 %v802_v20 }
 0x3be   :  { %v2255_v53 = vpop.eup %2254 }
 0x3bf   :  { %v2257_v34 = vpop.eup %2256 }
 0x3c0   :  { %v2259_v3 = vpop.eup %2258  ;;  %v789_v55 = vadd.f32 %v2257_v34, %v2255_v53 }
 0x3c1   :  { %v2261_v31 = vpop.eup %2260 }
 0x3c2   :  { %v2263_v38 = vpop.eup %2262  ;;  %v804_v39 = vadd.f32 %v2259_v3, %v789_v55 }
 0x3c3   :  { %v2265_v17 = vpop.eup %2264  ;;  %v790_v10 = vadd.f32 %v2263_v38, %v2261_v31 }
 0x3c4   :  { %v2267_v60 = vpop.eup %2266  ;;  %2272 = vlog2.f32 %v804_v39 }
 0x3c5   :  { %v2269_v50 = vpop.eup %2268  ;;  %v805_v1 = vadd.f32 %v2265_v17, %v790_v10 }
 0x3c6   :  { %v791_v9 = vadd.f32 %v2269_v50, %v2267_v60  ;;  %v2271_v49 = vpop.eup %2270 }
 0x3c7   :  { %2274 = vlog2.f32 %v805_v1 }
 0x3c8   :  { %v806_v61 = vadd.f32 %v2271_v49, %v791_v9 }
 0x3ca   :  { %2276 = vlog2.f32 %v806_v61 }
 0x3ce   :  { %v2273_v43 = vpop.eup %2272 }
 0x3cf   :  { %v808_v16 = vmul.f32 0.6931472, %v2273_v43 }
 0x3d1   :  { %v2275_v21 = vpop.eup %2274  ;;  %v813_v46 = vmul.f32 0.1, %v808_v16 }
 0x3d2   :  { %v810_v18 = vmul.f32 0.6931472, %v2275_v21 }
 0x3d3   :  { %v816_v54 = vsub.f32 %v3239_v51, %v813_v46 }
 0x3d4   :  { %v2277_v13 = vpop.eup %2276  ;;  %v814_v32 = vmul.f32 0.1, %v810_v18 }
 0x3d5   :  { %v819_v15 = vadd.f32 %v816_v54, %v3094_v52  ;;  %v812_v57 = vmul.f32 0.6931472, %v2277_v13 }
 0x3d6   :  { %v817_v25 = vsub.f32 %v3241_v26, %v814_v32 }
 0x3d7   :  { %v3259_v56 = vsel %vm822_vm13, %v819_v15, %v3208_v19  ;;  %v815_v30 = vmul.f32 0.1, %v812_v57  ;;  %vm1257_vm13 = vcmp.eq.s32.totalorder %v3092_v62, 10 }
 0x3d8   :  { %834 = vrot.lane.b32.xlu1 %v3259_v56, %s2552_s3  ;;  %v820_v29 = vadd.f32 %v817_v25, %v3103_v24  ;;  %v828_v19 = vrot.slane %v3259_v56, 7 }
 0x3d9   :  { %v818_v51 = vsub.f32 %v3249_v14, %v815_v30 }
 0x3da   :  { %v3267_v63 = vsel %vm823_vm14, %v820_v29, %v3216_v5  ;;  %vm1258_vm14 = vcmp.eq.s32.totalorder %v3101_v44, 10 }
 0x3db   :  { %836 = vrot.lane.b32.xlu0 %v3267_v63, %s2552_s3  ;;  %v821_v26 = vadd.f32 %v818_v51, %v3089_v40  ;;  %v829_v58 = vrot.slane %v3267_v63, 7 }
 0x3dd   :  { %v3276_v28 = vsel %vm824_vm15, %v821_v26, %v3225_v12  ;;  %v832_v14 = vsel %vm482_vm10, %v828_v19, %v829_v58  ;;  %vm1259_vm15 = vcmp.eq.s32.totalorder %v3087_v27, 10 }
 0x3de   :  { %838 = vrot.lane.b32.xlu1 %v3276_v28, %s2552_s3  ;;  %v830_v5 = vrot.slane %v3276_v28, 7 }
 0x3e0   :  { %v833_v11 = vsel %vm482_vm10, %v830_v5, %v828_v19  ;;  %v831_v2 = vsel %vm482_vm10, %v829_v58, %v830_v5 }
 0x3e1   :  { %840 = vrot.lane.b32.xlu0 %v833_v11, %s2552_s3 }
 0x3e2   :  { %842 = vrot.lane.b32.xlu1 %v832_v14, %s2552_s3 }
 0x3e5   :  { %844 = vrot.lane.b32.xlu0 %v831_v2, %s2552_s3 }
 0x44a   :  { %v835_v12 = vpop.permute.xlu1 %834 }
 0x44b   :  { %v846_v35 = vmin.f32 %v833_v11, %v835_v12 }
 0x44d   :  { %v837_v8 = vpop.permute.xlu0 %836 }
 0x44e   :  { %v847_v59 = vmin.f32 %v832_v14, %v837_v8 }
 0x450   :  { %v839_v36 = vpop.permute.xlu1 %838 }
 0x451   :  { %v848_v48 = vmin.f32 %v831_v2, %v839_v36 }
 0x453   :  { %v841_v6 = vpop.permute.xlu0 %840 }
 0x454   :  { %v3290_v23 = vmin.f32 %v846_v35, %v841_v6  ;;  %v843_v7 = vpop.permute.xlu1 %842 }
 0x455   :  { %v3292_v45 = vmin.f32 %v847_v59, %v843_v7 }
 0x456   :  { %v852_v42 = vsub.f32 %v3290_v23, %v833_v11  ;;  %v864_v4 = vsub.f32 %v3290_v23, %v835_v12  ;;  %v879_v0 = vsub.f32 %v3290_v23, %v841_v6 }
 0x457   :  { %v853_v41 = vsub.f32 %v3292_v45, %v832_v14  ;;  %v865_v37 = vsub.f32 %v3292_v45, %v837_v8  ;;  %v880_v47 = vsub.f32 %v3292_v45, %v843_v7  ;;  %v845_v33 = vpop.permute.xlu0 %844 }
 0x458   :  { %v855_v20 = vmul.f32 10.0, %v852_v42  ;;  %v867_v53 = vmul.f32 10.0, %v864_v4  ;;  %v882_v34 = vmul.f32 10.0, %v879_v0  ;;  %v3300_v3 = vmin.f32 %v848_v48, %v845_v33 }
 0x459   :  { %v856_v55 = vmul.f32 10.0, %v853_v41  ;;  %v868_v31 = vmul.f32 10.0, %v865_v37  ;;  %v883_v38 = vmul.f32 10.0, %v880_v47 }
 0x45a   :  { %v858_v39 = vmul.f32 1.442695, %v855_v20  ;;  %v870_v17 = vmul.f32 1.442695, %v867_v53  ;;  %v885_v10 = vmul.f32 1.442695, %v882_v34  ;;  %v854_v60 = vsub.f32 %v3300_v3, %v831_v2 }
 0x45b   :  { %v860_v50 = vmul.f32 1.442695, %v856_v55  ;;  %v866_v1 = vsub.f32 %v3300_v3, %v839_v36  ;;  %v872_v9 = vmul.f32 1.442695, %v868_v31  ;;  %v881_v61 = vsub.f32 %v3300_v3, %v845_v33 }
 0x45c   :  { %2278 = vpow2.f32 %v858_v39  ;;  %v857_v49 = vmul.f32 10.0, %v854_v60  ;;  %v887_v43 = vmul.f32 1.442695, %v883_v38 }
 0x45d   :  { %2280 = vpow2.f32 %v870_v17  ;;  %v869_v16 = vmul.f32 10.0, %v866_v1  ;;  %v884_v46 = vmul.f32 10.0, %v881_v61 }
 0x45e   :  { %2282 = vpow2.f32 %v885_v10  ;;  %v862_v21 = vmul.f32 1.442695, %v857_v49 }
 0x45f   :  { %2284 = vpow2.f32 %v860_v50  ;;  %v874_v18 = vmul.f32 1.442695, %v869_v16  ;;  %v889_v54 = vmul.f32 1.442695, %v884_v46 }
 0x460   :  { %2286 = vpow2.f32 %v872_v9 }
 0x461   :  { %2288 = vpow2.f32 %v887_v43 }
 0x462   :  { %2290 = vpow2.f32 %v862_v21 }
 0x463   :  { %2292 = vpow2.f32 %v874_v18 }
 0x464   :  { %2294 = vpow2.f32 %v889_v54 }
 0x466   :  { %v2279_v13 = vpop.eup %2278 }
 0x467   :  { %v2281_v32 = vpop.eup %2280 }
 0x468   :  { %v2283_v15 = vpop.eup %2282  ;;  %v876_v57 = vadd.f32 %v2281_v32, %v2279_v13 }
 0x469   :  { %v2285_v25 = vpop.eup %2284 }
 0x46a   :  { %v2287_v30 = vpop.eup %2286  ;;  %v891_v29 = vadd.f32 %v2283_v15, %v876_v57 }
 0x46b   :  { %v2289_v51 = vpop.eup %2288  ;;  %v877_v26 = vadd.f32 %v2287_v30, %v2285_v25 }
 0x46c   :  { %v2291_v19 = vpop.eup %2290  ;;  %2296 = vlog2.f32 %v891_v29 }
 0x46d   :  { %v2293_v58 = vpop.eup %2292  ;;  %v892_v5 = vadd.f32 %v2289_v51, %v877_v26 }
 0x46e   :  { %v878_v11 = vadd.f32 %v2293_v58, %v2291_v19  ;;  %v2295_v14 = vpop.eup %2294 }
 0x46f   :  { %2298 = vlog2.f32 %v892_v5 }
 0x470   :  { %v893_v2 = vadd.f32 %v2295_v14, %v878_v11 }
 0x472   :  { %2300 = vlog2.f32 %v893_v2 }
 0x476   :  { %v2297_v12 = vpop.eup %2296 }
 0x477   :  { %v895_v8 = vmul.f32 0.6931472, %v2297_v12 }
 0x479   :  { %v2299_v36 = vpop.eup %2298  ;;  %v900_v35 = vmul.f32 0.1, %v895_v8 }
 0x47a   :  { %v897_v59 = vmul.f32 0.6931472, %v2299_v36 }
 0x47b   :  { %v903_v6 = vsub.f32 %v3290_v23, %v900_v35 }
 0x47c   :  { %v2301_v7 = vpop.eup %2300  ;;  %v901_v48 = vmul.f32 0.1, %v897_v59 }
 0x47d   :  { %v906_v42 = vadd.f32 %v903_v6, %v3094_v52  ;;  %v899_v4 = vmul.f32 0.6931472, %v2301_v7 }
 0x47e   :  { %v904_v0 = vsub.f32 %v3292_v45, %v901_v48 }
 0x47f   :  { %v3310_v41 = vsel %vm909_vm1, %v906_v42, %v3259_v56  ;;  %v902_v37 = vmul.f32 0.1, %v899_v4  ;;  %vm1344_vm1 = vcmp.eq.s32.totalorder %v3092_v62, 11 }
 0x480   :  { %921 = vrot.lane.b32.xlu1 %v3310_v41, %s2552_s3  ;;  %v907_v47 = vadd.f32 %v904_v0, %v3103_v24  ;;  %v915_v56 = vrot.slane %v3310_v41, 7 }
 0x481   :  { %v905_v23 = vsub.f32 %v3300_v3, %v902_v37 }
 0x482   :  { %v3318_v33 = vsel %vm910_vm2, %v907_v47, %v3267_v63  ;;  %vm1345_vm2 = vcmp.eq.s32.totalorder %v3101_v44, 11 }
 0x483   :  { %923 = vrot.lane.b32.xlu0 %v3318_v33, %s2552_s3  ;;  %v908_v45 = vadd.f32 %v905_v23, %v3089_v40  ;;  %v916_v20 = vrot.slane %v3318_v33, 7 }
 0x485   :  { %v3327_v53 = vsel %vm911_vm3, %v908_v45, %v3276_v28  ;;  %v919_v3 = vsel %vm482_vm10, %v915_v56, %v916_v20  ;;  %vm1346_vm3 = vcmp.eq.s32.totalorder %v3087_v27, 11 }
 0x486   :  { %925 = vrot.lane.b32.xlu1 %v3327_v53, %s2552_s3  ;;  %v917_v63 = vrot.slane %v3327_v53, 7 }
 0x488   :  { %v920_v34 = vsel %vm482_vm10, %v917_v63, %v915_v56  ;;  %v918_v55 = vsel %vm482_vm10, %v916_v20, %v917_v63 }
 0x489   :  { %927 = vrot.lane.b32.xlu0 %v920_v34, %s2552_s3 }
 0x48a   :  { %929 = vrot.lane.b32.xlu1 %v919_v3, %s2552_s3 }
 0x48d   :  { %931 = vrot.lane.b32.xlu0 %v918_v55, %s2552_s3 }
 0x4f2   :  { %v922_v28 = vpop.permute.xlu1 %921 }
 0x4f3   :  { %v933_v39 = vmin.f32 %v920_v34, %v922_v28 }
 0x4f5   :  { %v924_v31 = vpop.permute.xlu0 %923 }
 0x4f6   :  { %v934_v17 = vmin.f32 %v919_v3, %v924_v31 }
 0x4f8   :  { %v926_v38 = vpop.permute.xlu1 %925 }
 0x4f9   :  { %v935_v9 = vmin.f32 %v918_v55, %v926_v38 }
 0x4fb   :  { %v928_v10 = vpop.permute.xlu0 %927 }
 0x4fc   :  { %v3341_v60 = vmin.f32 %v933_v39, %v928_v10  ;;  %v930_v50 = vpop.permute.xlu1 %929 }
 0x4fd   :  { %v3343_v1 = vmin.f32 %v934_v17, %v930_v50 }
 0x4fe   :  { %v939_v49 = vsub.f32 %v3341_v60, %v920_v34  ;;  %v951_v61 = vsub.f32 %v3341_v60, %v922_v28  ;;  %v966_v43 = vsub.f32 %v3341_v60, %v928_v10 }
 0x4ff   :  { %v940_v16 = vsub.f32 %v3343_v1, %v919_v3  ;;  %v952_v21 = vsub.f32 %v3343_v1, %v924_v31  ;;  %v967_v46 = vsub.f32 %v3343_v1, %v930_v50  ;;  %v932_v18 = vpop.permute.xlu0 %931 }
 0x500   :  { %v942_v54 = vmul.f32 10.0, %v939_v49  ;;  %v954_v13 = vmul.f32 10.0, %v951_v61  ;;  %v969_v32 = vmul.f32 10.0, %v966_v43  ;;  %v3351_v15 = vmin.f32 %v935_v9, %v932_v18 }
 0x501   :  { %v943_v57 = vmul.f32 10.0, %v940_v16  ;;  %v955_v25 = vmul.f32 10.0, %v952_v21  ;;  %v970_v30 = vmul.f32 10.0, %v967_v46 }
 0x502   :  { %v945_v29 = vmul.f32 1.442695, %v942_v54  ;;  %v957_v51 = vmul.f32 1.442695, %v954_v13  ;;  %v972_v26 = vmul.f32 1.442695, %v969_v32  ;;  %v941_v19 = vsub.f32 %v3351_v15, %v918_v55 }
 0x503   :  { %v947_v58 = vmul.f32 1.442695, %v943_v57  ;;  %v953_v5 = vsub.f32 %v3351_v15, %v926_v38  ;;  %v959_v11 = vmul.f32 1.442695, %v955_v25  ;;  %v968_v2 = vsub.f32 %v3351_v15, %v932_v18 }
 0x504   :  { %2302 = vpow2.f32 %v945_v29  ;;  %v944_v14 = vmul.f32 10.0, %v941_v19  ;;  %v974_v12 = vmul.f32 1.442695, %v970_v30 }
 0x505   :  { %2304 = vpow2.f32 %v957_v51  ;;  %v956_v8 = vmul.f32 10.0, %v953_v5  ;;  %v971_v35 = vmul.f32 10.0, %v968_v2 }
 0x506   :  { %2306 = vpow2.f32 %v972_v26  ;;  %v949_v36 = vmul.f32 1.442695, %v944_v14 }
 0x507   :  { %2308 = vpow2.f32 %v947_v58  ;;  %v961_v59 = vmul.f32 1.442695, %v956_v8  ;;  %v976_v6 = vmul.f32 1.442695, %v971_v35 }
 0x508   :  { %2310 = vpow2.f32 %v959_v11 }
 0x509   :  { %2312 = vpow2.f32 %v974_v12 }
 0x50a   :  { %2314 = vpow2.f32 %v949_v36 }
 0x50b   :  { %2316 = vpow2.f32 %v961_v59 }
 0x50c   :  { %2318 = vpow2.f32 %v976_v6 }
 0x50e   :  { %v2303_v7 = vpop.eup %2302 }
 0x50f   :  { %v2305_v48 = vpop.eup %2304 }
 0x510   :  { %v2307_v42 = vpop.eup %2306  ;;  %v963_v4 = vadd.f32 %v2305_v48, %v2303_v7 }
 0x511   :  { %v2309_v0 = vpop.eup %2308 }
 0x512   :  { %v2311_v37 = vpop.eup %2310  ;;  %v978_v47 = vadd.f32 %v2307_v42, %v963_v4 }
 0x513   :  { %v2313_v23 = vpop.eup %2312  ;;  %v964_v45 = vadd.f32 %v2311_v37, %v2309_v0 }
 0x514   :  { %v2315_v56 = vpop.eup %2314  ;;  %2320 = vlog2.f32 %v978_v47 }
 0x515   :  { %v2317_v20 = vpop.eup %2316  ;;  %v979_v63 = vadd.f32 %v2313_v23, %v964_v45 }
 0x516   :  { %v965_v34 = vadd.f32 %v2317_v20, %v2315_v56  ;;  %v2319_v3 = vpop.eup %2318 }
 0x517   :  { %2322 = vlog2.f32 %v979_v63 }
 0x518   :  { %v980_v55 = vadd.f32 %v2319_v3, %v965_v34 }
 0x51a   :  { %2324 = vlog2.f32 %v980_v55 }
 0x51e   :  { %v2321_v28 = vpop.eup %2320 }
 0x51f   :  { %v982_v31 = vmul.f32 0.6931472, %v2321_v28 }
 0x521   :  { %v2323_v38 = vpop.eup %2322  ;;  %v987_v39 = vmul.f32 0.1, %v982_v31 }
 0x522   :  { %v984_v17 = vmul.f32 0.6931472, %v2323_v38 }
 0x523   :  { %v990_v10 = vsub.f32 %v3341_v60, %v987_v39 }
 0x524   :  { %v2325_v50 = vpop.eup %2324  ;;  %v988_v9 = vmul.f32 0.1, %v984_v17 }
 0x525   :  { %v993_v49 = vadd.f32 %v990_v10, %v3094_v52  ;;  %v986_v61 = vmul.f32 0.6931472, %v2325_v50 }
 0x526   :  { %v991_v43 = vsub.f32 %v3343_v1, %v988_v9 }
 0x527   :  { %v3361_v16 = vsel %vm996_vm4, %v993_v49, %v3310_v41  ;;  %v989_v21 = vmul.f32 0.1, %v986_v61  ;;  %vm1431_vm4 = vcmp.eq.s32.totalorder %v3092_v62, 12 }
 0x528   :  { %1008 = vrot.lane.b32.xlu1 %v3361_v16, %s2552_s3  ;;  %v994_v46 = vadd.f32 %v991_v43, %v3103_v24  ;;  %v1002_v41 = vrot.slane %v3361_v16, 7 }
 0x529   :  { %v992_v60 = vsub.f32 %v3351_v15, %v989_v21 }
 0x52a   :  { %v3369_v18 = vsel %vm997_vm5, %v994_v46, %v3318_v33  ;;  %vm1432_vm5 = vcmp.eq.s32.totalorder %v3101_v44, 12 }
 0x52b   :  { %1010 = vrot.lane.b32.xlu0 %v3369_v18, %s2552_s3  ;;  %v995_v1 = vadd.f32 %v992_v60, %v3089_v40  ;;  %v1003_v54 = vrot.slane %v3369_v18, 7 }
 0x52d   :  { %v3378_v13 = vsel %vm998_vm6, %v995_v1, %v3327_v53  ;;  %v1006_v15 = vsel %vm482_vm10, %v1002_v41, %v1003_v54  ;;  %vm1433_vm6 = vcmp.eq.s32.totalorder %v3087_v27, 12 }
 0x52e   :  { %1012 = vrot.lane.b32.xlu1 %v3378_v13, %s2552_s3  ;;  %v1004_v33 = vrot.slane %v3378_v13, 7 }
 0x530   :  { %v1007_v32 = vsel %vm482_vm10, %v1004_v33, %v1002_v41  ;;  %v1005_v57 = vsel %vm482_vm10, %v1003_v54, %v1004_v33 }
 0x531   :  { %1014 = vrot.lane.b32.xlu0 %v1007_v32, %s2552_s3 }
 0x532   :  { %1016 = vrot.lane.b32.xlu1 %v1006_v15, %s2552_s3 }
 0x535   :  { %1018 = vrot.lane.b32.xlu0 %v1005_v57, %s2552_s3 }
 0x59a   :  { %v1009_v53 = vpop.permute.xlu1 %1008 }
 0x59b   :  { %v1020_v29 = vmin.f32 %v1007_v32, %v1009_v53 }
 0x59d   :  { %v1011_v25 = vpop.permute.xlu0 %1010 }
 0x59e   :  { %v1021_v51 = vmin.f32 %v1006_v15, %v1011_v25 }
 0x5a0   :  { %v1013_v30 = vpop.permute.xlu1 %1012 }
 0x5a1   :  { %v1022_v11 = vmin.f32 %v1005_v57, %v1013_v30 }
 0x5a3   :  { %v1015_v26 = vpop.permute.xlu0 %1014 }
 0x5a4   :  { %v3392_v19 = vmin.f32 %v1020_v29, %v1015_v26  ;;  %v1017_v58 = vpop.permute.xlu1 %1016 }
 0x5a5   :  { %v3394_v5 = vmin.f32 %v1021_v51, %v1017_v58 }
 0x5a6   :  { %v1026_v14 = vsub.f32 %v3392_v19, %v1007_v32  ;;  %v1038_v2 = vsub.f32 %v3392_v19, %v1009_v53  ;;  %v1053_v12 = vsub.f32 %v3392_v19, %v1015_v26 }
 0x5a7   :  { %v1027_v8 = vsub.f32 %v3394_v5, %v1006_v15  ;;  %v1039_v36 = vsub.f32 %v3394_v5, %v1011_v25  ;;  %v1054_v35 = vsub.f32 %v3394_v5, %v1017_v58  ;;  %v1019_v59 = vpop.permute.xlu0 %1018 }
 0x5a8   :  { %v1029_v6 = vmul.f32 10.0, %v1026_v14  ;;  %v1041_v7 = vmul.f32 10.0, %v1038_v2  ;;  %v1056_v48 = vmul.f32 10.0, %v1053_v12  ;;  %v3402_v42 = vmin.f32 %v1022_v11, %v1019_v59 }
 0x5a9   :  { %v1030_v4 = vmul.f32 10.0, %v1027_v8  ;;  %v1042_v0 = vmul.f32 10.0, %v1039_v36  ;;  %v1057_v37 = vmul.f32 10.0, %v1054_v35 }
 0x5aa   :  { %v1032_v47 = vmul.f32 1.442695, %v1029_v6  ;;  %v1044_v23 = vmul.f32 1.442695, %v1041_v7  ;;  %v1059_v45 = vmul.f32 1.442695, %v1056_v48  ;;  %v1028_v56 = vsub.f32 %v3402_v42, %v1005_v57 }
 0x5ab   :  { %v1034_v20 = vmul.f32 1.442695, %v1030_v4  ;;  %v1040_v63 = vsub.f32 %v3402_v42, %v1013_v30  ;;  %v1046_v34 = vmul.f32 1.442695, %v1042_v0  ;;  %v1055_v55 = vsub.f32 %v3402_v42, %v1019_v59 }
 0x5ac   :  { %2326 = vpow2.f32 %v1032_v47  ;;  %v1031_v3 = vmul.f32 10.0, %v1028_v56  ;;  %v1061_v28 = vmul.f32 1.442695, %v1057_v37 }
 0x5ad   :  { %2328 = vpow2.f32 %v1044_v23  ;;  %v1043_v31 = vmul.f32 10.0, %v1040_v63  ;;  %v1058_v39 = vmul.f32 10.0, %v1055_v55 }
 0x5ae   :  { %2330 = vpow2.f32 %v1059_v45  ;;  %v1036_v38 = vmul.f32 1.442695, %v1031_v3 }
 0x5af   :  { %2332 = vpow2.f32 %v1034_v20  ;;  %v1048_v17 = vmul.f32 1.442695, %v1043_v31  ;;  %v1063_v10 = vmul.f32 1.442695, %v1058_v39 }
 0x5b0   :  { %2334 = vpow2.f32 %v1046_v34 }
 0x5b1   :  { %2336 = vpow2.f32 %v1061_v28 }
 0x5b2   :  { %2338 = vpow2.f32 %v1036_v38 }
 0x5b3   :  { %2340 = vpow2.f32 %v1048_v17 }
 0x5b4   :  { %2342 = vpow2.f32 %v1063_v10 }
 0x5b6   :  { %v2327_v50 = vpop.eup %2326 }
 0x5b7   :  { %v2329_v9 = vpop.eup %2328 }
 0x5b8   :  { %v2331_v49 = vpop.eup %2330  ;;  %v1050_v61 = vadd.f32 %v2329_v9, %v2327_v50 }
 0x5b9   :  { %v2333_v43 = vpop.eup %2332 }
 0x5ba   :  { %v2335_v21 = vpop.eup %2334  ;;  %v1065_v46 = vadd.f32 %v2331_v49, %v1050_v61 }
 0x5bb   :  { %v2337_v60 = vpop.eup %2336  ;;  %v1051_v1 = vadd.f32 %v2335_v21, %v2333_v43 }
 0x5bc   :  { %v2339_v41 = vpop.eup %2338  ;;  %2344 = vlog2.f32 %v1065_v46 }
 0x5bd   :  { %v2341_v54 = vpop.eup %2340  ;;  %v1066_v33 = vadd.f32 %v2337_v60, %v1051_v1 }
 0x5be   :  { %v1052_v32 = vadd.f32 %v2341_v54, %v2339_v41  ;;  %v2343_v15 = vpop.eup %2342 }
 0x5bf   :  { %2346 = vlog2.f32 %v1066_v33 }
 0x5c0   :  { %v1067_v57 = vadd.f32 %v2343_v15, %v1052_v32 }
 0x5c2   :  { %2348 = vlog2.f32 %v1067_v57 }
 0x5c6   :  { %v2345_v53 = vpop.eup %2344 }
 0x5c7   :  { %v1069_v25 = vmul.f32 0.6931472, %v2345_v53 }
 0x5c9   :  { %v2347_v30 = vpop.eup %2346  ;;  %v1074_v29 = vmul.f32 0.1, %v1069_v25 }
 0x5ca   :  { %v1071_v51 = vmul.f32 0.6931472, %v2347_v30 }
 0x5cb   :  { %v1077_v26 = vsub.f32 %v3392_v19, %v1074_v29 }
 0x5cc   :  { %v2349_v58 = vpop.eup %2348  ;;  %v1075_v11 = vmul.f32 0.1, %v1071_v51 }
 0x5cd   :  { %v1080_v14 = vadd.f32 %v1077_v26, %v3094_v52  ;;  %v1073_v2 = vmul.f32 0.6931472, %v2349_v58 }
 0x5ce   :  { %v1078_v12 = vsub.f32 %v3394_v5, %v1075_v11 }
 0x5cf   :  { %v3412_v8 = vsel %vm1083_vm7, %v1080_v14, %v3361_v16  ;;  %v1076_v36 = vmul.f32 0.1, %v1073_v2  ;;  %vm1518_vm7 = vcmp.eq.s32.totalorder %v3092_v62, 13 }
 0x5d0   :  { %1095 = vrot.lane.b32.xlu1 %v3412_v8, %s2552_s3  ;;  %v1081_v35 = vadd.f32 %v1078_v12, %v3103_v24  ;;  %v1089_v16 = vrot.slane %v3412_v8, 7 }
 0x5d1   :  { %v1079_v19 = vsub.f32 %v3402_v42, %v1076_v36 }
 0x5d2   :  { %v3420_v59 = vsel %vm1084_vm9, %v1081_v35, %v3369_v18  ;;  %vm1519_vm9 = vcmp.eq.s32.totalorder %v3101_v44, 13 }
 0x5d3   :  { %1097 = vrot.lane.b32.xlu0 %v3420_v59, %s2552_s3  ;;  %v1082_v5 = vadd.f32 %v1079_v19, %v3089_v40  ;;  %v1090_v6 = vrot.slane %v3420_v59, 7 }
 0x5d5   :  { %v3429_v7 = vsel %vm1085_vm8, %v1082_v5, %v3378_v13  ;;  %v1093_v42 = vsel %vm482_vm10, %v1089_v16, %v1090_v6  ;;  %vm1520_vm8 = vcmp.eq.s32.totalorder %v3087_v27, 13 }
 0x5d6   :  { %1099 = vrot.lane.b32.xlu1 %v3429_v7, %s2552_s3  ;;  %v1091_v18 = vrot.slane %v3429_v7, 7 }
 0x5d8   :  { %v1094_v48 = vsel %vm482_vm10, %v1091_v18, %v1089_v16  ;;  %v1092_v4 = vsel %vm482_vm10, %v1090_v6, %v1091_v18 }
 0x5d9   :  { %1101 = vrot.lane.b32.xlu0 %v1094_v48, %s2552_s3 }
 0x5da   :  { %1103 = vrot.lane.b32.xlu1 %v1093_v42, %s2552_s3 }
 0x5dd   :  { %1105 = vrot.lane.b32.xlu0 %v1092_v4, %s2552_s3 }
 0x642   :  { %v1096_v13 = vpop.permute.xlu1 %1095 }
 0x643   :  { %v1107_v47 = vmin.f32 %v1094_v48, %v1096_v13 }
 0x645   :  { %v1098_v0 = vpop.permute.xlu0 %1097 }
 0x646   :  { %v1108_v23 = vmin.f32 %v1093_v42, %v1098_v0 }
 0x648   :  { %v1100_v37 = vpop.permute.xlu1 %1099 }
 0x649   :  { %v1109_v34 = vmin.f32 %v1092_v4, %v1100_v37 }
 0x64b   :  { %v1102_v45 = vpop.permute.xlu0 %1101 }
 0x64c   :  { %v3443_v56 = vmin.f32 %v1107_v47, %v1102_v45  ;;  %v1104_v20 = vpop.permute.xlu1 %1103 }
 0x64d   :  { %v3445_v63 = vmin.f32 %v1108_v23, %v1104_v20 }
 0x64e   :  { %v1113_v3 = vsub.f32 %v3443_v56, %v1094_v48  ;;  %v1125_v55 = vsub.f32 %v3443_v56, %v1096_v13  ;;  %v1140_v28 = vsub.f32 %v3443_v56, %v1102_v45 }
 0x64f   :  { %v1114_v31 = vsub.f32 %v3445_v63, %v1093_v42  ;;  %v1126_v38 = vsub.f32 %v3445_v63, %v1098_v0  ;;  %v1141_v39 = vsub.f32 %v3445_v63, %v1104_v20  ;;  %v1106_v17 = vpop.permute.xlu0 %1105 }
 0x650   :  { %v1116_v10 = vmul.f32 10.0, %v1113_v3  ;;  %v1128_v50 = vmul.f32 10.0, %v1125_v55  ;;  %v1143_v9 = vmul.f32 10.0, %v1140_v28  ;;  %v3453_v49 = vmin.f32 %v1109_v34, %v1106_v17 }
 0x651   :  { %v1117_v61 = vmul.f32 10.0, %v1114_v31  ;;  %v1129_v43 = vmul.f32 10.0, %v1126_v38  ;;  %v1144_v21 = vmul.f32 10.0, %v1141_v39 }
 0x652   :  { %v1119_v46 = vmul.f32 1.442695, %v1116_v10  ;;  %v1131_v60 = vmul.f32 1.442695, %v1128_v50  ;;  %v1146_v1 = vmul.f32 1.442695, %v1143_v9  ;;  %v1115_v41 = vsub.f32 %v3453_v49, %v1092_v4 }
 0x653   :  { %v1121_v54 = vmul.f32 1.442695, %v1117_v61  ;;  %v1127_v33 = vsub.f32 %v3453_v49, %v1100_v37  ;;  %v1133_v32 = vmul.f32 1.442695, %v1129_v43  ;;  %v1142_v57 = vsub.f32 %v3453_v49, %v1106_v17 }
 0x654   :  { %2350 = vpow2.f32 %v1119_v46  ;;  %v1118_v15 = vmul.f32 10.0, %v1115_v41  ;;  %v1148_v53 = vmul.f32 1.442695, %v1144_v21 }
 0x655   :  { %2352 = vpow2.f32 %v1131_v60  ;;  %v1130_v25 = vmul.f32 10.0, %v1127_v33  ;;  %v1145_v29 = vmul.f32 10.0, %v1142_v57 }
 0x656   :  { %2354 = vpow2.f32 %v1146_v1  ;;  %v1123_v30 = vmul.f32 1.442695, %v1118_v15 }
 0x657   :  { %2356 = vpow2.f32 %v1121_v54  ;;  %v1135_v51 = vmul.f32 1.442695, %v1130_v25  ;;  %v1150_v26 = vmul.f32 1.442695, %v1145_v29 }
 0x658   :  { %2358 = vpow2.f32 %v1133_v32 }
 0x659   :  { %2360 = vpow2.f32 %v1148_v53 }
 0x65a   :  { %2362 = vpow2.f32 %v1123_v30 }
 0x65b   :  { %2364 = vpow2.f32 %v1135_v51 }
 0x65c   :  { %2366 = vpow2.f32 %v1150_v26 }
 0x65e   :  { %v2351_v58 = vpop.eup %2350 }
 0x65f   :  { %v2353_v11 = vpop.eup %2352 }
 0x660   :  { %v2355_v14 = vpop.eup %2354  ;;  %v1137_v2 = vadd.f32 %v2353_v11, %v2351_v58 }
 0x661   :  { %v2357_v12 = vpop.eup %2356 }
 0x662   :  { %v2359_v36 = vpop.eup %2358  ;;  %v1152_v35 = vadd.f32 %v2355_v14, %v1137_v2 }
 0x663   :  { %v2361_v19 = vpop.eup %2360  ;;  %v1138_v5 = vadd.f32 %v2359_v36, %v2357_v12 }
 0x664   :  { %v2363_v16 = vpop.eup %2362  ;;  %2368 = vlog2.f32 %v1152_v35 }
 0x665   :  { %v2365_v6 = vpop.eup %2364  ;;  %v1153_v18 = vadd.f32 %v2361_v19, %v1138_v5 }
 0x666   :  { %v1139_v48 = vadd.f32 %v2365_v6, %v2363_v16  ;;  %v2367_v42 = vpop.eup %2366 }
 0x667   :  { %2370 = vlog2.f32 %v1153_v18 }
 0x668   :  { %v1154_v4 = vadd.f32 %v2367_v42, %v1139_v48 }
 0x66a   :  { %2372 = vlog2.f32 %v1154_v4 }
 0x66e   :  { %v2369_v13 = vpop.eup %2368 }
 0x66f   :  { %v1156_v0 = vmul.f32 0.6931472, %v2369_v13 }
 0x671   :  { %v2371_v37 = vpop.eup %2370  ;;  %v1161_v47 = vmul.f32 0.1, %v1156_v0 }
 0x672   :  { %v1158_v23 = vmul.f32 0.6931472, %v2371_v37 }
 0x673   :  { %v1164_v45 = vsub.f32 %v3443_v56, %v1161_v47 }
 0x674   :  { %v2373_v20 = vpop.eup %2372  ;;  %v1162_v34 = vmul.f32 0.1, %v1158_v23 }
 0x675   :  { %v1167_v3 = vadd.f32 %v1164_v45, %v3094_v52  ;;  %v1160_v55 = vmul.f32 0.6931472, %v2373_v20 }
 0x676   :  { %v1165_v28 = vsub.f32 %v3445_v63, %v1162_v34 }
 0x677   :  { %v3463_v31 = vsel %vm1170_vm11, %v1167_v3, %v3412_v8  ;;  %v1163_v38 = vmul.f32 0.1, %v1160_v55  ;;  %vm1605_vm11 = vcmp.eq.s32.totalorder %v3092_v62, 14 }
 0x678   :  { %1182 = vrot.lane.b32.xlu1 %v3463_v31, %s2552_s3  ;;  %v1168_v39 = vadd.f32 %v1165_v28, %v3103_v24  ;;  %v1176_v8 = vrot.slane %v3463_v31, 7 }
 0x679   :  { %v1166_v56 = vsub.f32 %v3453_v49, %v1163_v38 }
 0x67a   :  { %v3471_v17 = vsel %vm1171_vm0, %v1168_v39, %v3420_v59  ;;  %vm1606_vm0 = vcmp.eq.s32.totalorder %v3101_v44, 14 }
 0x67b   :  { %1184 = vrot.lane.b32.xlu0 %v3471_v17, %s2552_s3  ;;  %v1169_v63 = vadd.f32 %v1166_v56, %v3089_v40  ;;  %v1177_v10 = vrot.slane %v3471_v17, 7 }
 0x67d   :  { %v3480_v50 = vsel %vm1172_vm12, %v1169_v63, %v3429_v7  ;;  %v1180_v49 = vsel %vm482_vm10, %v1176_v8, %v1177_v10  ;;  %vm1607_vm12 = vcmp.eq.s32.totalorder %v3087_v27, 14 }
 0x67e   :  { %1186 = vrot.lane.b32.xlu1 %v3480_v50, %s2552_s3  ;;  %v1178_v59 = vrot.slane %v3480_v50, 7 }
 0x680   :  { %v1181_v9 = vsel %vm482_vm10, %v1178_v59, %v1176_v8  ;;  %v1179_v61 = vsel %vm482_vm10, %v1177_v10, %v1178_v59 }
 0x681   :  { %1188 = vrot.lane.b32.xlu0 %v1181_v9, %s2552_s3 }
 0x682   :  { %1190 = vrot.lane.b32.xlu1 %v1180_v49, %s2552_s3 }
 0x685   :  { %1192 = vrot.lane.b32.xlu0 %v1179_v61, %s2552_s3 }
 0x6ea   :  { %v1183_v7 = vpop.permute.xlu1 %1182 }
 0x6eb   :  { %v1194_v46 = vmin.f32 %v1181_v9, %v1183_v7 }
 0x6ed   :  { %v1185_v43 = vpop.permute.xlu0 %1184 }
 0x6ee   :  { %v1195_v60 = vmin.f32 %v1180_v49, %v1185_v43 }
 0x6f0   :  { %v1187_v21 = vpop.permute.xlu1 %1186 }
 0x6f1   :  { %v1196_v32 = vmin.f32 %v1179_v61, %v1187_v21 }
 0x6f3   :  { %v1189_v1 = vpop.permute.xlu0 %1188 }
 0x6f4   :  { %v3494_v41 = vmin.f32 %v1194_v46, %v1189_v1  ;;  %v1191_v54 = vpop.permute.xlu1 %1190 }
 0x6f5   :  { %v3496_v33 = vmin.f32 %v1195_v60, %v1191_v54 }
 0x6f6   :  { %v1200_v15 = vsub.f32 %v3494_v41, %v1181_v9  ;;  %v1212_v57 = vsub.f32 %v3494_v41, %v1183_v7  ;;  %v1227_v53 = vsub.f32 %v3494_v41, %v1189_v1 }
 0x6f7   :  { %v1201_v25 = vsub.f32 %v3496_v33, %v1180_v49  ;;  %v1213_v30 = vsub.f32 %v3496_v33, %v1185_v43  ;;  %v1228_v29 = vsub.f32 %v3496_v33, %v1191_v54  ;;  %v1193_v51 = vpop.permute.xlu0 %1192 }
 0x6f8   :  { %v1203_v26 = vmul.f32 10.0, %v1200_v15  ;;  %v1215_v58 = vmul.f32 10.0, %v1212_v57  ;;  %v1230_v11 = vmul.f32 10.0, %v1227_v53  ;;  %v3504_v14 = vmin.f32 %v1196_v32, %v1193_v51 }
 0x6f9   :  { %v1204_v2 = vmul.f32 10.0, %v1201_v25  ;;  %v1216_v12 = vmul.f32 10.0, %v1213_v30  ;;  %v1231_v36 = vmul.f32 10.0, %v1228_v29 }
 0x6fa   :  { %v1206_v35 = vmul.f32 1.442695, %v1203_v26  ;;  %v1218_v19 = vmul.f32 1.442695, %v1215_v58  ;;  %v1233_v5 = vmul.f32 1.442695, %v1230_v11  ;;  %v1202_v16 = vsub.f32 %v3504_v14, %v1179_v61 }
 0x6fb   :  { %v1208_v6 = vmul.f32 1.442695, %v1204_v2  ;;  %v1214_v18 = vsub.f32 %v3504_v14, %v1187_v21  ;;  %v1220_v48 = vmul.f32 1.442695, %v1216_v12  ;;  %v1229_v4 = vsub.f32 %v3504_v14, %v1193_v51 }
 0x6fc   :  { %2374 = vpow2.f32 %v1206_v35  ;;  %v1205_v42 = vmul.f32 10.0, %v1202_v16  ;;  %v1235_v13 = vmul.f32 1.442695, %v1231_v36 }
 0x6fd   :  { %2376 = vpow2.f32 %v1218_v19  ;;  %v1217_v0 = vmul.f32 10.0, %v1214_v18  ;;  %v1232_v47 = vmul.f32 10.0, %v1229_v4 }
 0x6fe   :  { %2378 = vpow2.f32 %v1233_v5  ;;  %v1210_v37 = vmul.f32 1.442695, %v1205_v42 }
 0x6ff   :  { %2380 = vpow2.f32 %v1208_v6  ;;  %v1222_v23 = vmul.f32 1.442695, %v1217_v0  ;;  %v1237_v45 = vmul.f32 1.442695, %v1232_v47 }
 0x700   :  { %2382 = vpow2.f32 %v1220_v48 }
 0x701   :  { %2384 = vpow2.f32 %v1235_v13 }
 0x702   :  { %2386 = vpow2.f32 %v1210_v37 }
 0x703   :  { %2388 = vpow2.f32 %v1222_v23 }
 0x704   :  { %2390 = vpow2.f32 %v1237_v45 }
 0x706   :  { %v2375_v20 = vpop.eup %2374 }
 0x707   :  { %v2377_v34 = vpop.eup %2376 }
 0x708   :  { %v2379_v3 = vpop.eup %2378  ;;  %v1224_v55 = vadd.f32 %v2377_v34, %v2375_v20 }
 0x709   :  { %v2381_v28 = vpop.eup %2380 }
 0x70a   :  { %v2383_v38 = vpop.eup %2382  ;;  %v1239_v39 = vadd.f32 %v2379_v3, %v1224_v55 }
 0x70b   :  { %v2385_v56 = vpop.eup %2384  ;;  %v1225_v63 = vadd.f32 %v2383_v38, %v2381_v28 }
 0x70c   :  { %v2387_v8 = vpop.eup %2386  ;;  %2392 = vlog2.f32 %v1239_v39 }
 0x70d   :  { %v2389_v10 = vpop.eup %2388  ;;  %v1240_v59 = vadd.f32 %v2385_v56, %v1225_v63 }
 0x70e   :  { %v1226_v9 = vadd.f32 %v2389_v10, %v2387_v8  ;;  %v2391_v49 = vpop.eup %2390 }
 0x70f   :  { %2394 = vlog2.f32 %v1240_v59 }
 0x710   :  { %v1241_v61 = vadd.f32 %v2391_v49, %v1226_v9 }
 0x712   :  { %2396 = vlog2.f32 %v1241_v61 }
 0x716   :  { %v2393_v7 = vpop.eup %2392 }
 0x717   :  { %v1243_v43 = vmul.f32 0.6931472, %v2393_v7 }
 0x719   :  { %v2395_v21 = vpop.eup %2394  ;;  %v1248_v46 = vmul.f32 0.1, %v1243_v43 }
 0x71a   :  { %v1245_v60 = vmul.f32 0.6931472, %v2395_v21 }
 0x71b   :  { %v1251_v1 = vsub.f32 %v3494_v41, %v1248_v46 }
 0x71c   :  { %v2397_v54 = vpop.eup %2396  ;;  %v1249_v32 = vmul.f32 0.1, %v1245_v60 }
 0x71d   :  { %v1254_v15 = vadd.f32 %v1251_v1, %v3094_v52  ;;  %v1247_v57 = vmul.f32 0.6931472, %v2397_v54 }
 0x71e   :  { %v1252_v53 = vsub.f32 %v3496_v33, %v1249_v32 }
 0x71f   :  { %v3514_v25 = vsel %vm1257_vm13, %v1254_v15, %v3463_v31  ;;  %v1250_v30 = vmul.f32 0.1, %v1247_v57  ;;  %vm1692_vm13 = vcmp.eq.s32.totalorder %v3092_v62, 15 }
 0x720   :  { %1269 = vrot.lane.b32.xlu1 %v3514_v25, %s2552_s3  ;;  %v1255_v29 = vadd.f32 %v1252_v53, %v3103_v24  ;;  %v1263_v31 = vrot.slane %v3514_v25, 7 }
 0x721   :  { %v1253_v41 = vsub.f32 %v3504_v14, %v1250_v30 }
 0x722   :  { %v3522_v51 = vsel %vm1258_vm14, %v1255_v29, %v3471_v17  ;;  %vm1693_vm14 = vcmp.eq.s32.totalorder %v3101_v44, 15 }
 0x723   :  { %1271 = vrot.lane.b32.xlu0 %v3522_v51, %s2552_s3  ;;  %v1256_v33 = vadd.f32 %v1253_v41, %v3089_v40  ;;  %v1264_v26 = vrot.slane %v3522_v51, 7 }
 0x725   :  { %v3531_v58 = vsel %vm1259_vm15, %v1256_v33, %v3480_v50  ;;  %v1267_v14 = vsel %vm482_vm10, %v1263_v31, %v1264_v26  ;;  %vm1694_vm15 = vcmp.eq.s32.totalorder %v3087_v27, 15 }
 0x726   :  { %1273 = vrot.lane.b32.xlu1 %v3531_v58, %s2552_s3  ;;  %v1265_v17 = vrot.slane %v3531_v58, 7 }
 0x728   :  { %v1268_v11 = vsel %vm482_vm10, %v1265_v17, %v1263_v31  ;;  %v1266_v2 = vsel %vm482_vm10, %v1264_v26, %v1265_v17 }
 0x729   :  { %1275 = vrot.lane.b32.xlu0 %v1268_v11, %s2552_s3 }
 0x72a   :  { %1277 = vrot.lane.b32.xlu1 %v1267_v14, %s2552_s3 }
 0x72d   :  { %1279 = vrot.lane.b32.xlu0 %v1266_v2, %s2552_s3 }
 0x792   :  { %v1270_v50 = vpop.permute.xlu1 %1269 }
 0x793   :  { %v1281_v35 = vmin.f32 %v1268_v11, %v1270_v50 }
 0x795   :  { %v1272_v12 = vpop.permute.xlu0 %1271 }
 0x796   :  { %v1282_v19 = vmin.f32 %v1267_v14, %v1272_v12 }
 0x798   :  { %v1274_v36 = vpop.permute.xlu1 %1273 }
 0x799   :  { %v1283_v48 = vmin.f32 %v1266_v2, %v1274_v36 }
 0x79b   :  { %v1276_v5 = vpop.permute.xlu0 %1275 }
 0x79c   :  { %v3545_v16 = vmin.f32 %v1281_v35, %v1276_v5  ;;  %v1278_v6 = vpop.permute.xlu1 %1277 }
 0x79d   :  { %v3547_v18 = vmin.f32 %v1282_v19, %v1278_v6 }
 0x79e   :  { %v1287_v42 = vsub.f32 %v3545_v16, %v1268_v11  ;;  %v1299_v4 = vsub.f32 %v3545_v16, %v1270_v50  ;;  %v1314_v13 = vsub.f32 %v3545_v16, %v1276_v5 }
 0x79f   :  { %v1288_v0 = vsub.f32 %v3547_v18, %v1267_v14  ;;  %v1300_v37 = vsub.f32 %v3547_v18, %v1272_v12  ;;  %v1315_v47 = vsub.f32 %v3547_v18, %v1278_v6  ;;  %v1280_v23 = vpop.permute.xlu0 %1279 }
 0x7a0   :  { %v1290_v45 = vmul.f32 10.0, %v1287_v42  ;;  %v1302_v20 = vmul.f32 10.0, %v1299_v4  ;;  %v1317_v34 = vmul.f32 10.0, %v1314_v13  ;;  %v3555_v3 = vmin.f32 %v1283_v48, %v1280_v23 }
 0x7a1   :  { %v1291_v55 = vmul.f32 10.0, %v1288_v0  ;;  %v1303_v28 = vmul.f32 10.0, %v1300_v37  ;;  %v1318_v38 = vmul.f32 10.0, %v1315_v47 }
 0x7a2   :  { %v1293_v39 = vmul.f32 1.442695, %v1290_v45  ;;  %v1305_v56 = vmul.f32 1.442695, %v1302_v20  ;;  %v1320_v63 = vmul.f32 1.442695, %v1317_v34  ;;  %v1289_v8 = vsub.f32 %v3555_v3, %v1266_v2 }
 0x7a3   :  { %v1295_v10 = vmul.f32 1.442695, %v1291_v55  ;;  %v1301_v59 = vsub.f32 %v3555_v3, %v1274_v36  ;;  %v1307_v9 = vmul.f32 1.442695, %v1303_v28  ;;  %v1316_v61 = vsub.f32 %v3555_v3, %v1280_v23 }
 0x7a4   :  { %2398 = vpow2.f32 %v1293_v39  ;;  %v1292_v49 = vmul.f32 10.0, %v1289_v8  ;;  %v1322_v7 = vmul.f32 1.442695, %v1318_v38 }
 0x7a5   :  { %2400 = vpow2.f32 %v1305_v56  ;;  %v1304_v43 = vmul.f32 10.0, %v1301_v59  ;;  %v1319_v46 = vmul.f32 10.0, %v1316_v61 }
 0x7a6   :  { %2402 = vpow2.f32 %v1320_v63  ;;  %v1297_v21 = vmul.f32 1.442695, %v1292_v49 }
 0x7a7   :  { %2404 = vpow2.f32 %v1295_v10  ;;  %v1309_v60 = vmul.f32 1.442695, %v1304_v43  ;;  %v1324_v1 = vmul.f32 1.442695, %v1319_v46 }
 0x7a8   :  { %2406 = vpow2.f32 %v1307_v9 }
 0x7a9   :  { %2408 = vpow2.f32 %v1322_v7 }
 0x7aa   :  { %2410 = vpow2.f32 %v1297_v21 }
 0x7ab   :  { %2412 = vpow2.f32 %v1309_v60 }
 0x7ac   :  { %2414 = vpow2.f32 %v1324_v1 }
 0x7ae   :  { %v2399_v54 = vpop.eup %2398 }
 0x7af   :  { %v2401_v32 = vpop.eup %2400 }
 0x7b0   :  { %v2403_v15 = vpop.eup %2402  ;;  %v1311_v57 = vadd.f32 %v2401_v32, %v2399_v54 }
 0x7b1   :  { %v2405_v53 = vpop.eup %2404 }
 0x7b2   :  { %v2407_v30 = vpop.eup %2406  ;;  %v1326_v29 = vadd.f32 %v2403_v15, %v1311_v57 }
 0x7b3   :  { %v2409_v41 = vpop.eup %2408  ;;  %v1312_v33 = vadd.f32 %v2407_v30, %v2405_v53 }
 0x7b4   :  { %v2411_v31 = vpop.eup %2410  ;;  %2416 = vlog2.f32 %v1326_v29 }
 0x7b5   :  { %v2413_v26 = vpop.eup %2412  ;;  %v1327_v17 = vadd.f32 %v2409_v41, %v1312_v33 }
 0x7b6   :  { %v1313_v11 = vadd.f32 %v2413_v26, %v2411_v31  ;;  %v2415_v14 = vpop.eup %2414 }
 0x7b7   :  { %2418 = vlog2.f32 %v1327_v17 }
 0x7b8   :  { %v1328_v2 = vadd.f32 %v2415_v14, %v1313_v11 }
 0x7ba   :  { %2420 = vlog2.f32 %v1328_v2 }
 0x7be   :  { %v2417_v50 = vpop.eup %2416 }
 0x7bf   :  { %v1330_v12 = vmul.f32 0.6931472, %v2417_v50 }
 0x7c1   :  { %v2419_v36 = vpop.eup %2418  ;;  %v1335_v35 = vmul.f32 0.1, %v1330_v12 }
 0x7c2   :  { %v1332_v19 = vmul.f32 0.6931472, %v2419_v36 }
 0x7c3   :  { %v1338_v5 = vsub.f32 %v3545_v16, %v1335_v35 }
 0x7c4   :  { %v2421_v6 = vpop.eup %2420  ;;  %v1336_v48 = vmul.f32 0.1, %v1332_v19 }
 0x7c5   :  { %v1341_v42 = vadd.f32 %v1338_v5, %v3094_v52  ;;  %v1334_v4 = vmul.f32 0.6931472, %v2421_v6 }
 0x7c6   :  { %v1339_v13 = vsub.f32 %v3547_v18, %v1336_v48 }
 0x7c7   :  { %v3565_v0 = vsel %vm1344_vm1, %v1341_v42, %v3514_v25  ;;  %v1337_v37 = vmul.f32 0.1, %v1334_v4  ;;  %vm2554_vm1 = vmmov 0  }
 0x7c8   :  { %1356 = vrot.lane.b32.xlu1 %v3565_v0, %s2552_s3  ;;  %v1342_v47 = vadd.f32 %v1339_v13, %v3103_v24  ;;  %v1350_v25 = vrot.slane %v3565_v0, 7 }
 0x7c9   :  { %v1340_v16 = vsub.f32 %v3555_v3, %v1337_v37 }
 0x7ca   :  { %v3573_v23 = vsel %vm1345_vm2, %v1342_v47, %v3522_v51  ;;  %vm1779_vm2 = vcmp.eq.s32.totalorder %v3092_v62, 16 }
 0x7cb   :  { %1358 = vrot.lane.b32.xlu0 %v3573_v23, %s2552_s3  ;;  %v1343_v18 = vadd.f32 %v1340_v16, %v3089_v40  ;;  %v1351_v45 = vrot.slane %v3573_v23, 7 }
 0x7cd   :  { %v3582_v20 = vsel %vm1346_vm3, %v1343_v18, %v3531_v58  ;;  %v1354_v3 = vsel %vm482_vm10, %v1350_v25, %v1351_v45  ;;  %vm1780_vm3 = vcmp.eq.s32.totalorder %v3101_v44, 16 }
 0x7ce   :  { %1360 = vrot.lane.b32.xlu1 %v3582_v20, %s2552_s3  ;;  %v1352_v51 = vrot.slane %v3582_v20, 7 }
 0x7d0   :  { %v1355_v34 = vsel %vm482_vm10, %v1352_v51, %v1350_v25  ;;  %v1353_v55 = vsel %vm482_vm10, %v1351_v45, %v1352_v51 }
 0x7d1   :  { %1362 = vrot.lane.b32.xlu0 %v1355_v34, %s2552_s3 }
 0x7d2   :  { %1364 = vrot.lane.b32.xlu1 %v1354_v3, %s2552_s3 }
 0x7d5   :  { %1366 = vrot.lane.b32.xlu0 %v1353_v55, %s2552_s3 }
 0x83a   :  { %v1357_v58 = vpop.permute.xlu1 %1356 }
 0x83b   :  { %v1368_v39 = vmin.f32 %v1355_v34, %v1357_v58 }
 0x83d   :  { %v1359_v28 = vpop.permute.xlu0 %1358 }
 0x83e   :  { %v1369_v56 = vmin.f32 %v1354_v3, %v1359_v28 }
 0x840   :  { %v1361_v38 = vpop.permute.xlu1 %1360 }
 0x841   :  { %v1370_v9 = vmin.f32 %v1353_v55, %v1361_v38 }
 0x843   :  { %v1363_v63 = vpop.permute.xlu0 %1362 }
 0x844   :  { %v3596_v8 = vmin.f32 %v1368_v39, %v1363_v63  ;;  %v1365_v10 = vpop.permute.xlu1 %1364 }
 0x845   :  { %v3598_v59 = vmin.f32 %v1369_v56, %v1365_v10 }
 0x846   :  { %v1374_v49 = vsub.f32 %v3596_v8, %v1355_v34  ;;  %v1386_v61 = vsub.f32 %v3596_v8, %v1357_v58  ;;  %v1401_v7 = vsub.f32 %v3596_v8, %v1363_v63 }
 0x847   :  { %v1375_v43 = vsub.f32 %v3598_v59, %v1354_v3  ;;  %v1387_v21 = vsub.f32 %v3598_v59, %v1359_v28  ;;  %v1402_v46 = vsub.f32 %v3598_v59, %v1365_v10  ;;  %v1367_v60 = vpop.permute.xlu0 %1366 }
 0x848   :  { %v1377_v1 = vmul.f32 10.0, %v1374_v49  ;;  %v1389_v54 = vmul.f32 10.0, %v1386_v61  ;;  %v1404_v32 = vmul.f32 10.0, %v1401_v7  ;;  %v3606_v15 = vmin.f32 %v1370_v9, %v1367_v60 }
 0x849   :  { %v1378_v57 = vmul.f32 10.0, %v1375_v43  ;;  %v1390_v53 = vmul.f32 10.0, %v1387_v21  ;;  %v1405_v30 = vmul.f32 10.0, %v1402_v46 }
 0x84a   :  { %v1380_v29 = vmul.f32 1.442695, %v1377_v1  ;;  %v1392_v41 = vmul.f32 1.442695, %v1389_v54  ;;  %v1407_v33 = vmul.f32 1.442695, %v1404_v32  ;;  %v1376_v31 = vsub.f32 %v3606_v15, %v1353_v55 }
 0x84b   :  { %v1382_v26 = vmul.f32 1.442695, %v1378_v57  ;;  %v1388_v17 = vsub.f32 %v3606_v15, %v1361_v38  ;;  %v1394_v11 = vmul.f32 1.442695, %v1390_v53  ;;  %v1403_v2 = vsub.f32 %v3606_v15, %v1367_v60 }
 0x84c   :  { %2422 = vpow2.f32 %v1380_v29  ;;  %v1379_v14 = vmul.f32 10.0, %v1376_v31  ;;  %v1409_v50 = vmul.f32 1.442695, %v1405_v30 }
 0x84d   :  { %2424 = vpow2.f32 %v1392_v41  ;;  %v1391_v12 = vmul.f32 10.0, %v1388_v17  ;;  %v1406_v35 = vmul.f32 10.0, %v1403_v2 }
 0x84e   :  { %2426 = vpow2.f32 %v1407_v33  ;;  %v1384_v36 = vmul.f32 1.442695, %v1379_v14 }
 0x84f   :  { %2428 = vpow2.f32 %v1382_v26  ;;  %v1396_v19 = vmul.f32 1.442695, %v1391_v12  ;;  %v1411_v5 = vmul.f32 1.442695, %v1406_v35 }
 0x850   :  { %2430 = vpow2.f32 %v1394_v11 }
 0x851   :  { %2432 = vpow2.f32 %v1409_v50 }
 0x852   :  { %2434 = vpow2.f32 %v1384_v36 }
 0x853   :  { %2436 = vpow2.f32 %v1396_v19 }
 0x854   :  { %2438 = vpow2.f32 %v1411_v5 }
 0x856   :  { %v2423_v6 = vpop.eup %2422 }
 0x857   :  { %v2425_v48 = vpop.eup %2424 }
 0x858   :  { %v2427_v42 = vpop.eup %2426  ;;  %v1398_v4 = vadd.f32 %v2425_v48, %v2423_v6 }
 0x859   :  { %v2429_v13 = vpop.eup %2428 }
 0x85a   :  { %v2431_v37 = vpop.eup %2430  ;;  %v1413_v47 = vadd.f32 %v2427_v42, %v1398_v4 }
 0x85b   :  { %v2433_v16 = vpop.eup %2432  ;;  %v1399_v18 = vadd.f32 %v2431_v37, %v2429_v13 }
 0x85c   :  { %v2435_v25 = vpop.eup %2434  ;;  %2440 = vlog2.f32 %v1413_v47 }
 0x85d   :  { %v2437_v45 = vpop.eup %2436  ;;  %v1414_v51 = vadd.f32 %v2433_v16, %v1399_v18 }
 0x85e   :  { %v1400_v34 = vadd.f32 %v2437_v45, %v2435_v25  ;;  %v2439_v3 = vpop.eup %2438 }
 0x85f   :  { %2442 = vlog2.f32 %v1414_v51 }
 0x860   :  { %v1415_v55 = vadd.f32 %v2439_v3, %v1400_v34 }
 0x862   :  { %2444 = vlog2.f32 %v1415_v55 }
 0x866   :  { %v2441_v58 = vpop.eup %2440 }
 0x867   :  { %v1417_v28 = vmul.f32 0.6931472, %v2441_v58 }
 0x869   :  { %v2443_v38 = vpop.eup %2442  ;;  %v1422_v39 = vmul.f32 0.1, %v1417_v28 }
 0x86a   :  { %v1419_v56 = vmul.f32 0.6931472, %v2443_v38 }
 0x86b   :  { %v1425_v63 = vsub.f32 %v3596_v8, %v1422_v39 }
 0x86c   :  { %v2445_v10 = vpop.eup %2444  ;;  %v1423_v9 = vmul.f32 0.1, %v1419_v56 }
 0x86d   :  { %v1421_v49 = vmul.f32 0.6931472, %v2445_v10  ;;  %v1428_v61 = vadd.f32 %v1425_v63, %v3094_v52 }
 0x86e   :  { %v1426_v7 = vsub.f32 %v3598_v59, %v1423_v9 }
 0x86f   :  { %v1424_v43 = vmul.f32 0.1, %v1421_v49  ;;  %v3616_v21 = vsel %vm1431_vm4, %v1428_v61, %v3565_v0  ;;  %vm1781_vm4 = vcmp.eq.s32.totalorder %v3087_v27, 16 }
 0x870   :  { %1443 = vrot.lane.b32.xlu1 %v3616_v21, %s2552_s3  ;;  %v1429_v46 = vadd.f32 %v1426_v7, %v3103_v24  ;;  %v1437_v0 = vrot.slane %v3616_v21, 7 }
 0x871   :  { %v1427_v8 = vsub.f32 %v3606_v15, %v1424_v43 }
 0x872   :  { %v3624_v60 = vsel %vm1432_vm5, %v1429_v46, %v3573_v23  ;;  %vm1793_vm5 = vcmask 195584  }
 0x873   :  { %1445 = vrot.lane.b32.xlu0 %v3624_v60, %s2552_s3  ;;  %v1430_v59 = vadd.f32 %v1427_v8, %v3089_v40  ;;  %v1438_v1 = vrot.slane %v3624_v60, 7 }
 0x875   :  { %v3633_v54 = vsel %vm1433_vm6, %v1430_v59, %v3582_v20  ;;  %v1441_v15 = vsel %vm482_vm10, %v1437_v0, %v1438_v1  ;;  %vm1941_vm6 = vcmask 9216  }
 0x876   :  { %1447 = vrot.lane.b32.xlu1 %v3633_v54, %s2552_s3  ;;  %v1439_v23 = vrot.slane %v3633_v54, 7 }
 0x878   :  { %v1442_v32 = vsel %vm482_vm10, %v1439_v23, %v1437_v0  ;;  %v1440_v57 = vsel %vm482_vm10, %v1438_v1, %v1439_v23 }
 0x879   :  { %1449 = vrot.lane.b32.xlu0 %v1442_v32, %s2552_s3 }
 0x87a   :  { %1451 = vrot.lane.b32.xlu1 %v1441_v15, %s2552_s3 }
 0x87d   :  { %1453 = vrot.lane.b32.xlu0 %v1440_v57, %s2552_s3 }
 0x8e2   :  { %v1444_v20 = vpop.permute.xlu1 %1443 }
 0x8e3   :  { %v1455_v29 = vmin.f32 %v1442_v32, %v1444_v20 }
 0x8e5   :  { %v1446_v53 = vpop.permute.xlu0 %1445 }
 0x8e6   :  { %v1456_v41 = vmin.f32 %v1441_v15, %v1446_v53 }
 0x8e8   :  { %v1448_v30 = vpop.permute.xlu1 %1447 }
 0x8e9   :  { %v1457_v11 = vmin.f32 %v1440_v57, %v1448_v30 }
 0x8eb   :  { %v1450_v33 = vpop.permute.xlu0 %1449 }
 0x8ec   :  { %v3647_v31 = vmin.f32 %v1455_v29, %v1450_v33  ;;  %v1452_v26 = vpop.permute.xlu1 %1451 }
 0x8ed   :  { %v3649_v17 = vmin.f32 %v1456_v41, %v1452_v26 }
 0x8ee   :  { %v1461_v14 = vsub.f32 %v3647_v31, %v1442_v32  ;;  %v1473_v2 = vsub.f32 %v3647_v31, %v1444_v20  ;;  %v1488_v50 = vsub.f32 %v3647_v31, %v1450_v33 }
 0x8ef   :  { %v1462_v12 = vsub.f32 %v3649_v17, %v1441_v15  ;;  %v1474_v36 = vsub.f32 %v3649_v17, %v1446_v53  ;;  %v1489_v35 = vsub.f32 %v3649_v17, %v1452_v26  ;;  %v1454_v19 = vpop.permute.xlu0 %1453 }
 0x8f0   :  { %v1464_v5 = vmul.f32 10.0, %v1461_v14  ;;  %v1476_v6 = vmul.f32 10.0, %v1473_v2  ;;  %v1491_v48 = vmul.f32 10.0, %v1488_v50  ;;  %v3657_v42 = vmin.f32 %v1457_v11, %v1454_v19 }
 0x8f1   :  { %v1465_v4 = vmul.f32 10.0, %v1462_v12  ;;  %v1477_v13 = vmul.f32 10.0, %v1474_v36  ;;  %v1492_v37 = vmul.f32 10.0, %v1489_v35 }
 0x8f2   :  { %v1467_v47 = vmul.f32 1.442695, %v1464_v5  ;;  %v1479_v16 = vmul.f32 1.442695, %v1476_v6  ;;  %v1494_v18 = vmul.f32 1.442695, %v1491_v48  ;;  %v1463_v25 = vsub.f32 %v3657_v42, %v1440_v57 }
 0x8f3   :  { %v1469_v45 = vmul.f32 1.442695, %v1465_v4  ;;  %v1475_v51 = vsub.f32 %v3657_v42, %v1448_v30  ;;  %v1481_v34 = vmul.f32 1.442695, %v1477_v13  ;;  %v1490_v55 = vsub.f32 %v3657_v42, %v1454_v19 }
 0x8f4   :  { %2446 = vpow2.f32 %v1467_v47  ;;  %v1466_v3 = vmul.f32 10.0, %v1463_v25  ;;  %v1496_v58 = vmul.f32 1.442695, %v1492_v37 }
 0x8f5   :  { %2448 = vpow2.f32 %v1479_v16  ;;  %v1478_v28 = vmul.f32 10.0, %v1475_v51  ;;  %v1493_v39 = vmul.f32 10.0, %v1490_v55 }
 0x8f6   :  { %2450 = vpow2.f32 %v1494_v18  ;;  %v1471_v38 = vmul.f32 1.442695, %v1466_v3 }
 0x8f7   :  { %2452 = vpow2.f32 %v1469_v45  ;;  %v1483_v56 = vmul.f32 1.442695, %v1478_v28  ;;  %v1498_v63 = vmul.f32 1.442695, %v1493_v39 }
 0x8f8   :  { %2454 = vpow2.f32 %v1481_v34 }
 0x8f9   :  { %2456 = vpow2.f32 %v1496_v58 }
 0x8fa   :  { %2458 = vpow2.f32 %v1471_v38 }
 0x8fb   :  { %2460 = vpow2.f32 %v1483_v56 }
 0x8fc   :  { %2462 = vpow2.f32 %v1498_v63 }
 0x8fe   :  { %v2447_v10 = vpop.eup %2446 }
 0x8ff   :  { %v2449_v9 = vpop.eup %2448 }
 0x900   :  { %v2451_v49 = vpop.eup %2450  ;;  %v1485_v61 = vadd.f32 %v2449_v9, %v2447_v10 }
 0x901   :  { %v2453_v7 = vpop.eup %2452 }
 0x902   :  { %v2455_v43 = vpop.eup %2454  ;;  %v1500_v46 = vadd.f32 %v2451_v49, %v1485_v61 }
 0x903   :  { %v2457_v8 = vpop.eup %2456  ;;  %v1486_v59 = vadd.f32 %v2455_v43, %v2453_v7 }
 0x904   :  { %v2459_v0 = vpop.eup %2458  ;;  %2464 = vlog2.f32 %v1500_v46 }
 0x905   :  { %v2461_v1 = vpop.eup %2460  ;;  %v1501_v23 = vadd.f32 %v2457_v8, %v1486_v59 }
 0x906   :  { %v1487_v32 = vadd.f32 %v2461_v1, %v2459_v0  ;;  %v2463_v15 = vpop.eup %2462 }
 0x907   :  { %2466 = vlog2.f32 %v1501_v23 }
 0x908   :  { %v1502_v57 = vadd.f32 %v2463_v15, %v1487_v32 }
 0x90a   :  { %2468 = vlog2.f32 %v1502_v57 }
 0x90e   :  { %v2465_v20 = vpop.eup %2464 }
 0x90f   :  { %v1504_v53 = vmul.f32 0.6931472, %v2465_v20 }
 0x911   :  { %v2467_v30 = vpop.eup %2466  ;;  %v1509_v29 = vmul.f32 0.1, %v1504_v53 }
 0x912   :  { %v1506_v41 = vmul.f32 0.6931472, %v2467_v30 }
 0x913   :  { %v1512_v33 = vsub.f32 %v3647_v31, %v1509_v29 }
 0x914   :  { %v2469_v26 = vpop.eup %2468  ;;  %v1510_v11 = vmul.f32 0.1, %v1506_v41 }
 0x915   :  { %v1508_v14 = vmul.f32 0.6931472, %v2469_v26  ;;  %v1515_v2 = vadd.f32 %v1512_v33, %v3094_v52 }
 0x916   :  { %v1513_v50 = vsub.f32 %v3649_v17, %v1510_v11 }
 0x917   :  { %v1511_v12 = vmul.f32 0.1, %v1508_v14  ;;  %v3667_v36 = vsel %vm1518_vm7, %v1515_v2, %v3616_v21 }
 0x918   :  { %1530 = vrot.lane.b32.xlu1 %v3667_v36, %s2552_s3  ;;  %v1516_v35 = vadd.f32 %v1513_v50, %v3103_v24  ;;  %v1524_v21 = vrot.slane %v3667_v36, 7 }
 0x919   :  { %v1514_v31 = vsub.f32 %v3657_v42, %v1511_v12 }
 0x91a   :  { %v3675_v19 = vsel %vm1519_vm9, %v1516_v35, %v3624_v60  ;;  %vm1998_vm9 = vcmask 8192  }
 0x91b   :  { %1532 = vrot.lane.b32.xlu0 %v3675_v19, %s2552_s3  ;;  %v1517_v17 = vadd.f32 %v1514_v31, %v3089_v40  ;;  %v1525_v5 = vrot.slane %v3675_v19, 7 }
 0x91d   :  { %v3684_v6 = vsel %vm1520_vm8, %v1517_v17, %v3633_v54  ;;  %v1528_v42 = vsel %vm482_vm10, %v1524_v21, %v1525_v5  ;;  %vm1964_vm8 = vcmask 1024  }
 0x91e   :  { %1534 = vrot.lane.b32.xlu1 %v3684_v6, %s2552_s3  ;;  %v1526_v60 = vrot.slane %v3684_v6, 7 }
 0x920   :  { %v1529_v48 = vsel %vm482_vm10, %v1526_v60, %v1524_v21  ;;  %v1527_v4 = vsel %vm482_vm10, %v1525_v5, %v1526_v60 }
 0x921   :  { %1536 = vrot.lane.b32.xlu0 %v1529_v48, %s2552_s3 }
 0x922   :  { %1538 = vrot.lane.b32.xlu1 %v1528_v42, %s2552_s3 }
 0x925   :  { %1540 = vrot.lane.b32.xlu0 %v1527_v4, %s2552_s3 }
 0x98a   :  { %v1531_v54 = vpop.permute.xlu1 %1530 }
 0x98b   :  { %v1542_v47 = vmin.f32 %v1529_v48, %v1531_v54 }
 0x98d   :  { %v1533_v13 = vpop.permute.xlu0 %1532 }
 0x98e   :  { %v1543_v16 = vmin.f32 %v1528_v42, %v1533_v13 }
 0x990   :  { %v1535_v37 = vpop.permute.xlu1 %1534 }
 0x991   :  { %v1544_v34 = vmin.f32 %v1527_v4, %v1535_v37 }
 0x993   :  { %v1537_v18 = vpop.permute.xlu0 %1536 }
 0x994   :  { %v3698_v25 = vmin.f32 %v1542_v47, %v1537_v18  ;;  %v1539_v45 = vpop.permute.xlu1 %1538 }
 0x995   :  { %v3700_v51 = vmin.f32 %v1543_v16, %v1539_v45 }
 0x996   :  { %v1548_v3 = vsub.f32 %v3698_v25, %v1529_v48  ;;  %v1560_v55 = vsub.f32 %v3698_v25, %v1531_v54  ;;  %v1575_v58 = vsub.f32 %v3698_v25, %v1537_v18 }
 0x997   :  { %v1549_v28 = vsub.f32 %v3700_v51, %v1528_v42  ;;  %v1561_v38 = vsub.f32 %v3700_v51, %v1533_v13  ;;  %v1576_v39 = vsub.f32 %v3700_v51, %v1539_v45  ;;  %v1541_v56 = vpop.permute.xlu0 %1540 }
 0x998   :  { %v1551_v63 = vmul.f32 10.0, %v1548_v3  ;;  %v1563_v10 = vmul.f32 10.0, %v1560_v55  ;;  %v1578_v9 = vmul.f32 10.0, %v1575_v58  ;;  %v3708_v49 = vmin.f32 %v1544_v34, %v1541_v56 }
 0x999   :  { %v1552_v61 = vmul.f32 10.0, %v1549_v28  ;;  %v1564_v7 = vmul.f32 10.0, %v1561_v38  ;;  %v1579_v43 = vmul.f32 10.0, %v1576_v39 }
 0x99a   :  { %v1554_v46 = vmul.f32 1.442695, %v1551_v63  ;;  %v1566_v8 = vmul.f32 1.442695, %v1563_v10  ;;  %v1581_v59 = vmul.f32 1.442695, %v1578_v9  ;;  %v1550_v0 = vsub.f32 %v3708_v49, %v1527_v4 }
 0x99b   :  { %v1556_v1 = vmul.f32 1.442695, %v1552_v61  ;;  %v1562_v23 = vsub.f32 %v3708_v49, %v1535_v37  ;;  %v1568_v32 = vmul.f32 1.442695, %v1564_v7  ;;  %v1577_v57 = vsub.f32 %v3708_v49, %v1541_v56 }
 0x99c   :  { %2470 = vpow2.f32 %v1554_v46  ;;  %v1553_v15 = vmul.f32 10.0, %v1550_v0  ;;  %v1583_v20 = vmul.f32 1.442695, %v1579_v43 }
 0x99d   :  { %2472 = vpow2.f32 %v1566_v8  ;;  %v1565_v53 = vmul.f32 10.0, %v1562_v23  ;;  %v1580_v29 = vmul.f32 10.0, %v1577_v57 }
 0x99e   :  { %2474 = vpow2.f32 %v1581_v59  ;;  %v1558_v30 = vmul.f32 1.442695, %v1553_v15 }
 0x99f   :  { %2476 = vpow2.f32 %v1556_v1  ;;  %v1570_v41 = vmul.f32 1.442695, %v1565_v53  ;;  %v1585_v33 = vmul.f32 1.442695, %v1580_v29 }
 0x9a0   :  { %2478 = vpow2.f32 %v1568_v32 }
 0x9a1   :  { %2480 = vpow2.f32 %v1583_v20 }
 0x9a2   :  { %2482 = vpow2.f32 %v1558_v30 }
 0x9a3   :  { %2484 = vpow2.f32 %v1570_v41 }
 0x9a4   :  { %2486 = vpow2.f32 %v1585_v33 }
 0x9a6   :  { %v2471_v26 = vpop.eup %2470 }
 0x9a7   :  { %v2473_v11 = vpop.eup %2472 }
 0x9a8   :  { %v2475_v14 = vpop.eup %2474  ;;  %v1572_v2 = vadd.f32 %v2473_v11, %v2471_v26 }
 0x9a9   :  { %v2477_v50 = vpop.eup %2476 }
 0x9aa   :  { %v2479_v12 = vpop.eup %2478  ;;  %v1587_v35 = vadd.f32 %v2475_v14, %v1572_v2 }
 0x9ab   :  { %v2481_v31 = vpop.eup %2480  ;;  %v1573_v17 = vadd.f32 %v2479_v12, %v2477_v50 }
 0x9ac   :  { %v2483_v21 = vpop.eup %2482  ;;  %2488 = vlog2.f32 %v1587_v35 }
 0x9ad   :  { %v2485_v5 = vpop.eup %2484  ;;  %v1588_v60 = vadd.f32 %v2481_v31, %v1573_v17 }
 0x9ae   :  { %v1574_v48 = vadd.f32 %v2485_v5, %v2483_v21  ;;  %v2487_v42 = vpop.eup %2486 }
 0x9af   :  { %2490 = vlog2.f32 %v1588_v60 }
 0x9b0   :  { %v1589_v4 = vadd.f32 %v2487_v42, %v1574_v48 }
 0x9b2   :  { %2492 = vlog2.f32 %v1589_v4 }
 0x9b6   :  { %v2489_v54 = vpop.eup %2488 }
 0x9b7   :  { %v1591_v13 = vmul.f32 0.6931472, %v2489_v54 }
 0x9b9   :  { %v2491_v37 = vpop.eup %2490  ;;  %v1596_v47 = vmul.f32 0.1, %v1591_v13 }
 0x9ba   :  { %v1593_v16 = vmul.f32 0.6931472, %v2491_v37 }
 0x9bb   :  { %v1599_v18 = vsub.f32 %v3698_v25, %v1596_v47 }
 0x9bc   :  { %v2493_v45 = vpop.eup %2492  ;;  %v1597_v34 = vmul.f32 0.1, %v1593_v16 }
 0x9bd   :  { %v1595_v3 = vmul.f32 0.6931472, %v2493_v45  ;;  %v1602_v55 = vadd.f32 %v1599_v18, %v3094_v52 }
 0x9be   :  { %v1600_v58 = vsub.f32 %v3700_v51, %v1597_v34 }
 0x9bf   :  { %v1598_v28 = vmul.f32 0.1, %v1595_v3  ;;  %v3718_v38 = vsel %vm1605_vm11, %v1602_v55, %v3667_v36 }
 0x9c0   :  { %1617 = vrot.lane.b32.xlu1 %v3718_v38, %s2552_s3  ;;  %v1603_v39 = vadd.f32 %v1600_v58, %v3103_v24  ;;  %v1611_v36 = vrot.slane %v3718_v38, 7 }
 0x9c1   :  { %v1601_v25 = vsub.f32 %v3708_v49, %v1598_v28 }
 0x9c2   :  { %v3726_v56 = vsel %vm1606_vm0, %v1603_v39, %v3675_v19 }
 0x9c3   :  { %1619 = vrot.lane.b32.xlu0 %v3726_v56, %s2552_s3  ;;  %v1604_v51 = vadd.f32 %v1601_v25, %v3089_v40  ;;  %v1612_v63 = vrot.slane %v3726_v56, 7 }
 0x9c5   :  { %v3735_v10 = vsel %vm1607_vm12, %v1604_v51, %v3684_v6  ;;  %v1615_v49 = vsel %vm482_vm10, %v1611_v36, %v1612_v63 }
 0x9c6   :  { %1621 = vrot.lane.b32.xlu1 %v3735_v10, %s2552_s3  ;;  %v1613_v19 = vrot.slane %v3735_v10, 7 }
 0x9c8   :  { %v1616_v9 = vsel %vm482_vm10, %v1613_v19, %v1611_v36  ;;  %v1614_v61 = vsel %vm482_vm10, %v1612_v63, %v1613_v19 }
 0x9c9   :  { %1623 = vrot.lane.b32.xlu0 %v1616_v9, %s2552_s3 }
 0x9ca   :  { %1625 = vrot.lane.b32.xlu1 %v1615_v49, %s2552_s3 }
 0x9cd   :  { %1627 = vrot.lane.b32.xlu0 %v1614_v61, %s2552_s3 }
 0xa32   :  { %v1618_v6 = vpop.permute.xlu1 %1617 }
 0xa33   :  { %v1629_v46 = vmin.f32 %v1616_v9, %v1618_v6 }
 0xa35   :  { %v1620_v7 = vpop.permute.xlu0 %1619 }
 0xa36   :  { %v1630_v8 = vmin.f32 %v1615_v49, %v1620_v7 }
 0xa38   :  { %v1622_v43 = vpop.permute.xlu1 %1621 }
 0xa39   :  { %v1631_v32 = vmin.f32 %v1614_v61, %v1622_v43 }
 0xa3b   :  { %v1624_v59 = vpop.permute.xlu0 %1623 }
 0xa3c   :  { %v3749_v0 = vmin.f32 %v1629_v46, %v1624_v59  ;;  %v1626_v1 = vpop.permute.xlu1 %1625 }
 0xa3d   :  { %v3751_v23 = vmin.f32 %v1630_v8, %v1626_v1 }
 0xa3e   :  { %v1635_v15 = vsub.f32 %v3749_v0, %v1616_v9  ;;  %v1647_v57 = vsub.f32 %v3749_v0, %v1618_v6  ;;  %v1662_v20 = vsub.f32 %v3749_v0, %v1624_v59 }
 0xa3f   :  { %v1636_v53 = vsub.f32 %v3751_v23, %v1615_v49  ;;  %v1648_v30 = vsub.f32 %v3751_v23, %v1620_v7  ;;  %v1663_v29 = vsub.f32 %v3751_v23, %v1626_v1  ;;  %v1628_v41 = vpop.permute.xlu0 %1627 }
 0xa40   :  { %v1638_v33 = vmul.f32 10.0, %v1635_v15  ;;  %v1650_v26 = vmul.f32 10.0, %v1647_v57  ;;  %v1665_v11 = vmul.f32 10.0, %v1662_v20  ;;  %v3759_v14 = vmin.f32 %v1631_v32, %v1628_v41 }
 0xa41   :  { %v1639_v2 = vmul.f32 10.0, %v1636_v53  ;;  %v1651_v50 = vmul.f32 10.0, %v1648_v30  ;;  %v1666_v12 = vmul.f32 10.0, %v1663_v29 }
 0xa42   :  { %v1641_v35 = vmul.f32 1.442695, %v1638_v33  ;;  %v1653_v31 = vmul.f32 1.442695, %v1650_v26  ;;  %v1668_v17 = vmul.f32 1.442695, %v1665_v11  ;;  %v1637_v21 = vsub.f32 %v3759_v14, %v1614_v61 }
 0xa43   :  { %v1643_v5 = vmul.f32 1.442695, %v1639_v2  ;;  %v1649_v60 = vsub.f32 %v3759_v14, %v1622_v43  ;;  %v1655_v48 = vmul.f32 1.442695, %v1651_v50  ;;  %v1664_v4 = vsub.f32 %v3759_v14, %v1628_v41 }
 0xa44   :  { %2494 = vpow2.f32 %v1641_v35  ;;  %v1640_v42 = vmul.f32 10.0, %v1637_v21  ;;  %v1670_v54 = vmul.f32 1.442695, %v1666_v12  ;;  %v2553_v50 = vmov 0.0|0.0  }
 0xa45   :  { %2496 = vpow2.f32 %v1653_v31  ;;  %v1652_v13 = vmul.f32 10.0, %v1649_v60  ;;  %v1667_v47 = vmul.f32 10.0, %v1664_v4  ;;  %2080 = vmatprep.subr.bf16.mxu1 %v2553_v50 }
 0xa46   :  { %2498 = vpow2.f32 %v1668_v17  ;;  %v1645_v37 = vmul.f32 1.442695, %v1640_v42 }
 0xa47   :  { %2500 = vpow2.f32 %v1643_v5  ;;  %v1657_v16 = vmul.f32 1.442695, %v1652_v13  ;;  %v1672_v18 = vmul.f32 1.442695, %v1667_v47 }
 0xa48   :  { %2502 = vpow2.f32 %v1655_v48 }
 0xa49   :  { %2504 = vpow2.f32 %v1670_v54 }
 0xa4a   :  { %2506 = vpow2.f32 %v1645_v37 }
 0xa4b   :  { %2508 = vpow2.f32 %v1657_v16 }
 0xa4c   :  { %2510 = vpow2.f32 %v1672_v18 }
 0xa4e   :  { %v2495_v45 = vpop.eup %2494 }
 0xa4f   :  { %v2497_v34 = vpop.eup %2496 }
 0xa50   :  { %v2499_v3 = vpop.eup %2498  ;;  %v1659_v55 = vadd.f32 %v2497_v34, %v2495_v45 }
 0xa51   :  { %v2501_v58 = vpop.eup %2500 }
 0xa52   :  { %v2503_v28 = vpop.eup %2502  ;;  %v1674_v39 = vadd.f32 %v2499_v3, %v1659_v55 }
 0xa53   :  { %v2505_v25 = vpop.eup %2504  ;;  %v1660_v51 = vadd.f32 %v2503_v28, %v2501_v58 }
 0xa54   :  { %v2507_v36 = vpop.eup %2506  ;;  %2512 = vlog2.f32 %v1674_v39 }
 0xa55   :  { %v2509_v63 = vpop.eup %2508  ;;  %v1675_v19 = vadd.f32 %v2505_v25, %v1660_v51 }
 0xa56   :  { %v1661_v9 = vadd.f32 %v2509_v63, %v2507_v36  ;;  %v2511_v49 = vpop.eup %2510 }
 0xa57   :  { %2514 = vlog2.f32 %v1675_v19 }
 0xa58   :  { %v1676_v61 = vadd.f32 %v2511_v49, %v1661_v9 }
 0xa5a   :  { %2516 = vlog2.f32 %v1676_v61 }
 0xa5e   :  { %v2513_v6 = vpop.eup %2512 }
 0xa5f   :  { %v1678_v7 = vmul.f32 0.6931472, %v2513_v6 }
 0xa61   :  { %v2515_v43 = vpop.eup %2514  ;;  %v1683_v46 = vmul.f32 0.1, %v1678_v7 }
 0xa62   :  { %v1680_v8 = vmul.f32 0.6931472, %v2515_v43 }
 0xa63   :  { %v1686_v59 = vsub.f32 %v3749_v0, %v1683_v46 }
 0xa64   :  { %v2517_v1 = vpop.eup %2516  ;;  %v1684_v32 = vmul.f32 0.1, %v1680_v8 }
 0xa65   :  { %v1682_v15 = vmul.f32 0.6931472, %v2517_v1  ;;  %v1689_v57 = vadd.f32 %v1686_v59, %v3094_v52 }
 0xa66   :  { %v1687_v20 = vsub.f32 %v3751_v23, %v1684_v32 }
 0xa67   :  { %v1685_v53 = vmul.f32 0.1, %v1682_v15  ;;  %v3769_v30 = vsel %vm1692_vm13, %v1689_v57, %v3718_v38 }
 0xa68   :  { %1704 = vrot.lane.b32.xlu1 %v3769_v30, %s2552_s3  ;;  %v1690_v29 = vadd.f32 %v1687_v20, %v3103_v24  ;;  %v1698_v41 = vrot.slane %v3769_v30, 7 }
 0xa69   :  { %v1688_v0 = vsub.f32 %v3759_v14, %v1685_v53 }
 0xa6a   :  { %v3778_v33 = vsel %vm1693_vm14, %v1690_v29, %v3726_v56 }
 0xa6b   :  { %v1691_v23 = vadd.f32 %v1688_v0, %v3089_v40  ;;  %1706 = vrot.lane.b32.xlu0 %v3778_v33, %s2552_s3  ;;  %v1699_v38 = vrot.slane %v3778_v33, 7 }
 0xa6d   :  { %v1702_v26 = vsel %vm482_vm10, %v1698_v41, %v1699_v38  ;;  %v3788_v11 = vsel %vm1694_vm15, %v1691_v23, %v3735_v10  ;;  %v2555_v10 = vmov 0.0  }
 0xa6e   :  { %v1700_v14 = vrot.slane %v3788_v11, 7  ;;  %2072 = vmatprep.mubr.msk.f32.mxu1 %vm2554_vm1, %v2555_v10 }
 0xa6f   :  { %1712 = vrot.lane.b32.xlu0 %v1702_v26, %s2552_s3 }
 0xa70   :  { %v1703_v56 = vsel %vm482_vm10, %v1700_v14, %v1698_v41  ;;  %v1701_v2 = vsel %vm482_vm10, %v1699_v38, %v1700_v14 }
 0xa71   :  { %1710 = vrot.lane.b32.xlu1 %v1703_v56, %s2552_s3 }
 0xa73   :  { %1714 = vrot.lane.b32.xlu0 %v1701_v2, %s2552_s3 }
 0xa75   :  { %1708 = vrot.lane.b32.xlu1 %v3788_v11, %s2552_s3 }
 0xada   :  { %v1705_v35 = vpop.permute.xlu1 %1704 }
 0xadb   :  { %v1716_v21 = vmin.f32 %v1703_v56, %v1705_v35 }
 0xadd   :  { %v1707_v12 = vpop.permute.xlu0 %1706 }
 0xade   :  { %v1717_v31 = vmin.f32 %v1702_v26, %v1707_v12 }
 0xae1   :  { %v1713_v17 = vpop.permute.xlu0 %1712 }
 0xae2   :  { %v3802_v5 = vmin.f32 %v1717_v31, %v1713_v17 }
 0xae3   :  { %v1711_v60 = vpop.permute.xlu1 %1710 }
 0xae4   :  { %v1723_v48 = vsub.f32 %v3802_v5, %v1702_v26  ;;  %v1735_v42 = vsub.f32 %v3802_v5, %v1707_v12  ;;  %v1750_v4 = vsub.f32 %v3802_v5, %v1713_v17  ;;  %v3807_v54 = vmin.f32 %v1716_v21, %v1711_v60 }
 0xae5   :  { %v1715_v36 = vpop.permute.xlu0 %1714  ;;  %v1787_v17 = vmul.u32 9, %v2790_v22 }
 0xae6   :  { %v1726_v13 = vmul.f32 10.0, %v1723_v48  ;;  %v1738_v37 = vmul.f32 10.0, %v1735_v42  ;;  %v1753_v47 = vmul.f32 10.0, %v1750_v4  ;;  %v1722_v16 = vsub.f32 %v3807_v54, %v1703_v56 }
 0xae7   :  { %v1734_v18 = vsub.f32 %v3807_v54, %v1705_v35  ;;  %v1749_v45 = vsub.f32 %v3807_v54, %v1711_v60  ;;  %v1709_v34 = vpop.permute.xlu1 %1708 }
 0xae8   :  { %v1730_v3 = vmul.f32 1.442695, %v1726_v13  ;;  %v1742_v55 = vmul.f32 1.442695, %v1738_v37  ;;  %v1757_v58 = vmul.f32 1.442695, %v1753_v47  ;;  %v1718_v28 = vmin.f32 %v1701_v2, %v1709_v34 }
 0xae9   :  { %v1725_v39 = vmul.f32 10.0, %v1722_v16  ;;  %v1737_v25 = vmul.f32 10.0, %v1734_v18  ;;  %v1752_v51 = vmul.f32 10.0, %v1749_v45  ;;  %v3870_v13 = vlaneseq }
 0xaea   :  { %2518 = vpow2.f32 %v1730_v3  ;;  %v3812_v63 = vmin.f32 %v1718_v28, %v1715_v36  ;;  %v1788_v47 = vadd.s32 8, %v1787_v17 }
 0xaeb   :  { %2520 = vpow2.f32 %v1742_v55  ;;  %v1728_v19 = vmul.f32 1.442695, %v1725_v39  ;;  %v1740_v9 = vmul.f32 1.442695, %v1737_v25  ;;  %v1755_v49 = vmul.f32 1.442695, %v1752_v51 }
 0xaec   :  { %2522 = vpow2.f32 %v1757_v58  ;;  %v1724_v61 = vsub.f32 %v3812_v63, %v1701_v2  ;;  %v1736_v6 = vsub.f32 %v3812_v63, %v1709_v34  ;;  %v1751_v7 = vsub.f32 %v3812_v63, %v1715_v36 }
 0xaed   :  { %2524 = vpow2.f32 %v1728_v19  ;;  %v3820_v37 = vand.u32 127, %v3870_v13 }
 0xaee   :  { %2526 = vpow2.f32 %v1740_v9  ;;  %v1727_v43 = vmul.f32 10.0, %v1724_v61  ;;  %v1739_v46 = vmul.f32 10.0, %v1736_v6  ;;  %v1754_v8 = vmul.f32 10.0, %v1751_v7 }
 0xaef   :  { %2528 = vpow2.f32 %v1755_v49  ;;  %vm1789_vm10 = vcmp.eq.s32.totalorder %v3820_v37, %v1788_v47  ;;  %vm1937_vm7 = vcmp.eq.s32.totalorder %v2790_v22, %v3820_v37  ;;  %vm2015_vm11 = vcmp.eq.s32.totalorder %v3820_v37, 0 }
 0xaf0   :  { %v1732_v59 = vmul.f32 1.442695, %v1727_v43  ;;  %v1744_v1 = vmul.f32 1.442695, %v1739_v46  ;;  %v1759_v32 = vmul.f32 1.442695, %v1754_v8 }
 0xaf2   :  { %2530 = vpow2.f32 %v1732_v59 }
 0xaf3   :  { %2532 = vpow2.f32 %v1744_v1 }
 0xaf4   :  { %v2519_v15 = vpop.eup %2518  ;;  %2534 = vpow2.f32 %v1759_v32 }
 0xaf5   :  { %v2521_v57 = vpop.eup %2520 }
 0xaf6   :  { %v2523_v20 = vpop.eup %2522  ;;  %v1747_v53 = vadd.f32 %v2521_v57, %v2519_v15 }
 0xaf7   :  { %v2525_v29 = vpop.eup %2524 }
 0xaf8   :  { %v2527_v0 = vpop.eup %2526  ;;  %v1762_v41 = vadd.f32 %v2523_v20, %v1747_v53 }
 0xaf9   :  { %v1746_v23 = vadd.f32 %v2527_v0, %v2525_v29  ;;  %v2529_v38 = vpop.eup %2528 }
 0xafa   :  { %2536 = vlog2.f32 %v1762_v41  ;;  %v2029_v41 = vsel %vm1937_vm7, 1.0, %v2555_v10 }
 0xafb   :  { %v1761_v26 = vadd.f32 %v2529_v38, %v1746_v23 }
 0xafc   :  { %v2531_v14 = vpop.eup %2530 }
 0xafd   :  { %v2533_v56 = vpop.eup %2532  ;;  %2538 = vlog2.f32 %v1761_v26 }
 0xafe   :  { %v1748_v2 = vadd.f32 %v2533_v56, %v2531_v14  ;;  %v2535_v50 = vpop.eup %2534 }
 0xb00   :  { %v1763_v12 = vadd.f32 %v2535_v50, %v1748_v2 }
 0xb02   :  { %2540 = vlog2.f32 %v1763_v12 }
 0xb04   :  { %v2537_v35 = vpop.eup %2536 }
 0xb05   :  { %v1767_v31 = vmul.f32 0.6931472, %v2537_v35 }
 0xb07   :  { %v2539_v21 = vpop.eup %2538  ;;  %v1771_v60 = vmul.f32 0.1, %v1767_v31 }
 0xb08   :  { %v1765_v48 = vmul.f32 0.6931472, %v2539_v21 }
 0xb09   :  { %v1774_v42 = vsub.f32 %v3802_v5, %v1771_v60 }
 0xb0a   :  { %v1770_v4 = vmul.f32 0.1, %v1765_v48 }
 0xb0b   :  { %v1777_v45 = vadd.f32 %v1774_v42, %v3103_v24  ;;  %v2026_v24 = vsel %vm1789_vm10, 1.0, %v2555_v10 }
 0xb0c   :  { %v2541_v16 = vpop.eup %2540  ;;  %v1773_v18 = vsub.f32 %v3807_v54, %v1770_v4  ;;  %v1792_v62 = vmul.f32 -1.0, %v2026_v24 }
 0xb0d   :  { %v1769_v34 = vmul.f32 0.6931472, %v2541_v16  ;;  %v1783_v58 = vsel %vm1780_vm3, %v1777_v45, %v3778_v33 }
 0xb0e   :  { %v1776_v3 = vadd.f32 %v1773_v18, %v3094_v52 }
 0xb0f   :  { %v1772_v5 = vmul.f32 0.1, %v1769_v34 }
 0xb10   :  { %v1782_v55 = vsel %vm1779_vm2, %v1776_v3, %v3769_v30  ;;  %v2556_v30 = vmov 1.0  }
 0xb11   :  { %v2081_v28 = vpack.c.bf16 %v1783_v58, %v1782_v55  ;;  %v1775_v39 = vsub.f32 %v3812_v63, %v1772_v5 }
 0xb13   :  { %2082 = vmatpush3.bf16.msra.mxu1 %v2081_v28  ;;  %v1778_v52 = vadd.f32 %v1775_v39, %v3089_v40 }
 0xb14   :  { %2070 = vmatprep.subr.mxu1 %v2555_v10 }
 0xb15   :  { %v1784_v44 = vsel %vm1781_vm4, %v1778_v52, %v3788_v11 }
 0xb17   :  { %2071 = vmatpush3.msra.mxu1 %v1784_v44 }
 0xb18   :  { %2073 = vmatmul.mubr.msk.f32.vlgmr.msra.gmra.mrb[0].mxu1 %vm1793_vm5, %v1792_v62  ;;  %2075 = vmatprep.subr.mxu1 %v2555_v10 }
 0xb19   :  { %2077 = vmatprep.mubr.msk.f32.mxu1 %vm2554_vm1, %v2555_v10 }
 0xb1e   :  { %2076 = vmatpush3.xpose.msk.msra.mxu1 %vm1789_vm10, %v2556_v30 }
 0xbeb   :  { %v1863_v40 = vpop.f32.mrb[0].mxu1 }
 0xbec   :  { %v2074_v33 = vpop.f32.mrb[1].mxu1  ;;  %2078 = vmatmul.mubr.f32.vlgmr.msra.gmra.mrb[2].mxu1 %v1863_v40 }
 0xcbf   :  { %v1933_v27 = vpop.f32.mrb[2].mxu1 }
 0xcc0   :  { %v2079_v54 = vpop.f32.mrb[3].mxu1  ;;  %v1952_v11 = vsel %vm1941_vm6, %v1933_v27, -inf  ;;  %v1940_v26 = vmul.f32 %v2029_v41, %v1933_v27 }
 0xcc1   :  { %1953 = vmax.xlane.f32.xlu1 %v1952_v11  ;;  %v1979_v25 = vrot.slane %v1952_v11, 4 }
 0xcc2   :  { %v1942_v14 = vsel %vm1941_vm6, %v1940_v26, 0.0 }
 0xcc3   :  { %v1980_v51 = vmax.f32 %v1952_v11, %v1979_v25 }
 0xcc5   :  { %v1981_v36 = vrot.slane %v1980_v51, 2 }
 0xcc7   :  { %v1982_v63 = vmax.f32 %v1980_v51, %v1981_v36 }
 0xcc9   :  { %v1983_v19 = vrot.slane %v1982_v63, 1 }
 0xccb   :  { %v1984_v9 = vmax.f32 %v1982_v63, %v1983_v19 }
 0xccd   :  { %v1985_v49 = vsub.f32 %v1933_v27, %v1984_v9 }
 0xccf   :  { %v1986_v61 = vmul.f32 1.442695, %v1985_v49 }
 0xcd1   :  { %2542 = vpow2.f32 %v1986_v61 }
 0xcdb   :  { %v2543_v6 = vpop.eup %2542 }
 0xcdc   :  { %v1988_v7 = vsel %vm1941_vm6, %v2543_v6, 0.0 }
 0xcdd   :  { %v1989_v43 = vrot.slane %v1988_v7, 4 }
 0xcdf   :  { %v1990_v46 = vadd.f32 %v1989_v43, %v1988_v7 }
 0xce1   :  { %v1991_v8 = vrot.slane %v1990_v46, 2 }
 0xce3   :  { %v1992_v59 = vadd.f32 %v1991_v8, %v1990_v46 }
 0xce5   :  { %v1993_v1 = vrot.slane %v1992_v59, 1 }
 0xce7   :  { %v1994_v32 = vadd.f32 %v1993_v1, %v1992_v59 }
 0xce9   :  { %2544 = vlog2.f32 %v1994_v32 }
 0xcf3   :  { %v2545_v15 = vpop.eup %2544 }
 0xcf4   :  { %v1996_v57 = vmul.f32 0.6931472, %v2545_v15 }
 0xcf6   :  { %v1997_v20 = vadd.f32 %v1996_v57, %v1984_v9 }
 0xcf8   :  { %v1999_v56 = vsel %vm1998_vm9, %v1997_v20, 0.0 }
 0xd4e   :  { %v1954_v53 = vpop.xlane.xlu1 %1953 }
 0xd4f   :  { %v1955_v29 = vsub.f32 %v1933_v27, %v1954_v53 }
 0xd51   :  { %v1956_v0 = vmul.f32 1.442695, %v1955_v29 }
 0xd53   :  { %2546 = vpow2.f32 %v1956_v0 }
 0xd5d   :  { %v2547_v23 = vpop.eup %2546 }
 0xd5e   :  { %v1958_v38 = vsel %vm1941_vm6, %v2547_v23, 0.0 }
 0xd5f   :  { %1959 = vadd.xlane.f32.xlu0 %v1958_v38 }
 0xd63   :  { %1943 = vadd.xlane.f32.xlu0 %v1942_v14 }
 0xd67   :  { %2000 = vadd.xlane.f32.xlu0 %v1999_v56 }
 0xdec   :  { %v1960_v2 = vpop.xlane.xlu0 %1959 }
 0xded   :  { %2548 = vlog2.f32 %v1960_v2 }
 0xdf0   :  { %v1944_v50 = vpop.xlane.xlu0 %1943 }
 0xdf1   :  { %v1945_v12 = vrot.slane %v1944_v50, 4 }
 0xdf3   :  { %v1946_v35 = vadd.f32 %v1945_v12, %v1944_v50 }
 0xdf4   :  { %v2001_v4 = vpop.xlane.xlu0 %2000 }
 0xdf5   :  { %v1947_v31 = vrot.slane %v1946_v35, 2  ;;  %v2002_v13 = vrot.slane %v2001_v4, 4 }
 0xdf7   :  { %v2549_v22 = vpop.eup %2548  ;;  %v1948_v17 = vadd.f32 %v1947_v31, %v1946_v35  ;;  %v2003_v47 = vadd.f32 %v2002_v13, %v2001_v4 }
 0xdf8   :  { %v1962_v10 = vmul.f32 0.6931472, %v2549_v22 }
 0xdf9   :  { %v1949_v21 = vrot.slane %v1948_v17, 1  ;;  %v2004_v16 = vrot.slane %v2003_v47, 2 }
 0xdfa   :  { %v1963_v60 = vadd.f32 %v1962_v10, %v1954_v53 }
 0xdfb   :  { %v1950_v48 = vadd.f32 %v1949_v21, %v1948_v17  ;;  %v2005_v3 = vadd.f32 %v2004_v16, %v2003_v47 }
 0xdfc   :  { %v1965_v42 = vsel %vm1964_vm8, %v1963_v60, 0.0 }
 0xdfd   :  { %1966 = vadd.xlane.f32.xlu1 %v1965_v42  ;;  %2091 = vpush %v1950_v48  ;;  %v2006_v58 = vrot.slane %v2005_v3, 1 }
 0xdff   :  { %v2007_v24 = vadd.f32 %v2006_v58, %v2005_v3 }
 0xe2e   :  { %s2092_s6 = spop %2091 }
 0xe8a   :  { %v1967_v18 = vpop.xlane.xlu1 %1966 }
 0xe8b   :  { %v1968_v45 = vrot.slane %v1967_v18, 4 }
 0xe8d   :  { %v1969_v34 = vadd.f32 %v1968_v45, %v1967_v18 }
 0xe8f   :  { %v1970_v5 = vrot.slane %v1969_v34, 2 }
 0xe91   :  { %v1971_v55 = vadd.f32 %v1970_v5, %v1969_v34 }
 0xe93   :  { %v1972_v28 = vrot.slane %v1971_v55, 1 }
 0xe95   :  { %v1973_v39 = vadd.f32 %v1972_v28, %v1971_v55 }
 0xe97   :  { %2093 = vpush %v1973_v39 }
 0xe98   :  { %2095 = vpush %v2007_v24 }
 0xec8   :  { %s2094_s7 = spop %2093 }
 0xec9   :  { %s1975_s8 = ssub.f32 %s2094_s7, %s2092_s6  ;;  %s2096_s9 = spop %2095 }
 0xeca   :  { %s2009_s10 = ssub.f32 %s2096_s9, %s2092_s6 }
 0xecb   :  { %s1978_s11 = smul.f32 0.5, %s1975_s8 }
 0xecc   :  { %s2012_s12 = smul.f32 0.5, %s2009_s10 }
 0xece   :  { %s2013_s13 = sadd.f32 %s2012_s12, %s1978_s11 }
 0xed0   :  { %s2014_s14 = smul.f32 0.5, %s2013_s13 }
 0xed2   :  { %v2016_v52 = vstv %s2014_s14 }
 0xed3   :  { %v2017_v62 = vsel %vm2015_vm11, %v2016_v52, 0.0 }
 0xed4   :  { %2019 = vst [vmem:[%s3858_s4] sm:$0x1] %v2017_v62 }

</bundles_post_ra>
